<compile_context>
chip_gen: v5e
topology: v5e:2x2
jax: 0.10.0
libtpu: 0.0.40
codegen_flags: <defaults>
</compile_context>

<pallas_src>
import functools

import jax
import jax.numpy as jnp
from jax.experimental import pallas as pl
from jax.experimental.pallas import tpu as pltpu


D = 8
W = 256
INPUT_CH = 128
OUTPUT_CH = 3
OUT_PAD = 128          # lane-dense padded output width
SKIPS = (4,)

_NUM_W = 9             # w0|w5_x (packed), w1..w4, w5_h, w6, w7, w_last(pad)
_NUM_B = 9             # b0..b7, b_last(pad)


def _normal_mlp_kernel(x_ref, *refs):
    w = refs[:_NUM_W]
    b = [refs[_NUM_W + i][...] for i in range(_NUM_B)]   # hoist bias loads
    out_ref = refs[_NUM_W + _NUM_B]

    # In-kernel bf16 cast: wrapper passes f32 straight through; the cast is
    # hidden behind the MXU work.
    x = x_ref[...].astype(jnp.bfloat16)                   # (tile_n, 128)

    def dense(h_f32, w_ref, bias):
        return jnp.dot(h_f32.astype(jnp.bfloat16), w_ref[...],
                       preferred_element_type=jnp.float32) + bias

    # Layer 0 fused with the skip branch's x @ W5_x: one K=128 MXU pass
    # against the packed (128, 512) weight instead of two half-depth passes.
    s = jnp.dot(x, w[0][...], preferred_element_type=jnp.float32)  # (tile_n, 2W)
    h = jnp.maximum(s[:, :W] + b[0], 0.0)
    skip = s[:, W:]                                        # f32, used at layer 5

    # Layers 1..4: 256 -> 256
    for i in range(1, 5):
        h = jnp.maximum(dense(h, w[i], b[i]), 0.0)

    # Layer 5 (skip): cat([x, h]) @ W5 + b5  ==  x @ W5_x + h @ W5_h + b5
    h = jnp.maximum(skip + dense(h, w[5], b[5]), 0.0)

    # Layers 6, 7: 256 -> 256
    h = jnp.maximum(dense(h, w[6], b[6]), 0.0)
    h = jnp.maximum(dense(h, w[7], b[7]), 0.0)

    # Last layer: 256 -> 128 lanes (only the first OUTPUT_CH lanes are real).
    out_ref[...] = dense(h, w[8], b[8]).astype(out_ref.dtype)


def init_params(key):
    """Deterministic parameter init matching the PyTorch layer shapes.

    Weights are pre-transposed to (in_dim, out_dim); biases are (1, out_dim).
    Layer 5 takes W + INPUT_CH inputs because of the skip at layer 4."""
    in_dims = [INPUT_CH] + [
        W if i not in SKIPS else W + INPUT_CH for i in range(D - 1)
    ]
    weights, biases = [], []
    for in_dim in in_dims:
        kw, kb, key = jax.random.split(key, 3)
        bound = 1.0 / jnp.sqrt(in_dim)
        weights.append(
            jax.random.uniform(kw, (in_dim, W), jnp.float32, -bound, bound))
        biases.append(
            jax.random.uniform(kb, (1, W), jnp.float32, -bound, bound))
    kw, kb, key = jax.random.split(key, 3)
    bound = 1.0 / jnp.sqrt(W)
    w_last = jax.random.uniform(kw, (W, OUTPUT_CH), jnp.float32, -bound, bound)
    b_last = jax.random.uniform(kb, (1, OUTPUT_CH), jnp.float32, -bound, bound)
    return weights, biases, w_last, b_last


def prepare_params(weights, biases, w_last, b_last):
    """One-time (outside jit) parameter prep: split the skip-layer weight,
    column-pack W0 with W5_x, pad the last layer to 128 lanes, cast weights
    to bf16.  Call once at parameter-load time and reuse the result."""
    w5 = weights[5]                               # (INPUT_CH + W, W)
    w5_x, w5_h = w5[:INPUT_CH], w5[INPUT_CH:]     # rows 0:128 multiply features
    w0_w5x = jnp.concatenate([weights[0], w5_x], axis=1)          # (128, 2W)
    w_last_pad = jnp.zeros((W, OUT_PAD), jnp.float32).at[:, :OUTPUT_CH].set(w_last)
    b_last_pad = jnp.zeros((1, OUT_PAD), jnp.float32).at[:, :OUTPUT_CH].set(b_last)
    ws = [w0_w5x, weights[1], weights[2], weights[3], weights[4],
          w5_h, weights[6], weights[7], w_last_pad]
    ws = tuple(w.astype(jnp.bfloat16) for w in ws)
    bs = tuple([jnp.asarray(b, jnp.float32).reshape(1, W) for b in biases]
               + [b_last_pad])
    return ws, bs


def _round_up(x, m):
    return (x + m - 1) // m * m


def _choose_tile_n(n, max_tile):
    """Row-tile size: as large as useful (amortizes ~0.35 us/step grid
    overhead), multiple of 8 (f32 sublane), never larger than needed, and
    giving >= 2 grid steps when possible so both v7x TensorCores get work."""
    tile = max(8, min(max_tile, _round_up(n, 8)))
    if n > 8 and pl.cdiv(n, tile) < 2:
        tile = max(8, _round_up(pl.cdiv(n, 2), 8))
    return tile


@functools.partial(jax.jit, static_argnames=("max_tile_n",))
def normal_forward(features, ws, bs, *, max_tile_n=1024):
    """Fused MLP forward.  `ws`/`bs` come from `prepare_params` (done once,
    outside this function).  Ragged N is handled in-kernel via partial last
    tile with masked writeback -- no pad / cast passes over HBM."""
    n, in_ch = features.shape
    assert in_ch == INPUT_CH

    tile_n = _choose_tile_n(n, max_tile_n)
    grid = (pl.cdiv(n, tile_n),)

    row_map = lambda i: (i, 0)
    const_map = lambda i: (0, 0)      # weights/biases resident; no re-DMA

    in_specs = [pl.BlockSpec((tile_n, INPUT_CH), row_map)]
    in_specs += [pl.BlockSpec(w.shape, const_map) for w in ws]
    in_specs += [pl.BlockSpec(b.shape, const_map) for b in bs]
    out_spec = pl.BlockSpec((tile_n, OUT_PAD), row_map)

    # Advisory cost estimate so XLA schedules around the (compute-bound) call.
    macs_per_row = (INPUT_CH * 2 * W          # packed layer 0 + skip branch
                    + 4 * W * W               # layers 1..4
                    + W * W                   # layer 5 (h part)
                    + 2 * W * W               # layers 6, 7
                    + W * OUT_PAD)            # padded last layer
    weight_bytes = (sum(int(w.size) * w.dtype.itemsize for w in ws)
                    + sum(int(b.size) * b.dtype.itemsize for b in bs))
    cost = pl.CostEstimate(
        flops=2 * n * macs_per_row,
        transcendentals=0,
        bytes_accessed=n * INPUT_CH * 4 + n * OUT_PAD * 4 + weight_bytes)

    out = pl.pallas_call(
        _normal_mlp_kernel,
        out_shape=jax.ShapeDtypeStruct((n, OUT_PAD), jnp.float32),
        grid_spec=pltpu.PrefetchScalarGridSpec(
            num_scalar_prefetch=0,
            grid=grid,
            in_specs=in_specs,
            out_specs=out_spec,
        ),
        compiler_params=pltpu.CompilerParams(
            dimension_semantics=("parallel",)),
        cost_estimate=cost,
    )(features, *ws, *bs)

    # Consumers that can read the lane-padded (n, 128) buffer directly should
    # do so and skip this last (cheap) channel-slice pass.
    return out[:, :OUTPUT_CH]


def normal_forward_ref(features, weights, biases, w_last, b_last):
    """Pure-JAX reference mirroring the PyTorch forward exactly (concat skip,
    unsplit layer-5 weight, unpadded output), using the same bf16-matmul-input
    / f32-accumulation policy as the kernel."""
    def dot_bf16(a, b):
        return jnp.dot(a.astype(jnp.bfloat16), b.astype(jnp.bfloat16),
                       preferred_element_type=jnp.float32)

    x = features
    h = x
    for i in range(D):
        h = jnp.maximum(dot_bf16(h, weights[i]) + biases[i], 0.0)
        if i in SKIPS:
            h = jnp.concatenate([x, h], axis=-1)
    return dot_bf16(h, w_last) + b_last


if __name__ == "__main__":
    key = jax.random.PRNGKey(0)
    k_params, k_x = jax.random.split(key)

    weights, biases, w_last, b_last = init_params(k_params)
    # Parameter prep happens once, outside the jitted forward.
    ws, bs = prepare_params(weights, biases, w_last, b_last)

    # Small batch, deliberately ragged (not a tile multiple) so both the
    # two-grid-step path and the masked partial last tile get exercised.
    n = 200
    features = jax.random.normal(k_x, (n, INPUT_CH), jnp.float32)

    out = normal_forward(features, ws, bs)
    out = jax.block_until_ready(out)

    ref = normal_forward_ref(features, weights, biases, w_last, b_last)
    assert out.shape == (n, OUTPUT_CH)
    assert jnp.allclose(out, ref, atol=2e-3, rtol=2e-3), (
        "mismatch vs reference: max abs diff = %f"
        % float(jnp.max(jnp.abs(out - ref))))

    print("KERNEL_OK")
</pallas_src>

<mosaic_0001>
module attributes {stable_mosaic.version = 11 : i64} {
  func.func @_normal_mlp_kernel(%arg0: i32, %arg1: memref<104x128xf32, #tpu.memory_space<vmem>>, %arg2: memref<128x512xbf16, #tpu.memory_space<vmem>>, %arg3: memref<256x256xbf16, #tpu.memory_space<vmem>>, %arg4: memref<256x256xbf16, #tpu.memory_space<vmem>>, %arg5: memref<256x256xbf16, #tpu.memory_space<vmem>>, %arg6: memref<256x256xbf16, #tpu.memory_space<vmem>>, %arg7: memref<256x256xbf16, #tpu.memory_space<vmem>>, %arg8: memref<256x256xbf16, #tpu.memory_space<vmem>>, %arg9: memref<256x256xbf16, #tpu.memory_space<vmem>>, %arg10: memref<256x128xbf16, #tpu.memory_space<vmem>>, %arg11: memref<1x256xf32, #tpu.memory_space<vmem>>, %arg12: memref<1x256xf32, #tpu.memory_space<vmem>>, %arg13: memref<1x256xf32, #tpu.memory_space<vmem>>, %arg14: memref<1x256xf32, #tpu.memory_space<vmem>>, %arg15: memref<1x256xf32, #tpu.memory_space<vmem>>, %arg16: memref<1x256xf32, #tpu.memory_space<vmem>>, %arg17: memref<1x256xf32, #tpu.memory_space<vmem>>, %arg18: memref<1x256xf32, #tpu.memory_space<vmem>>, %arg19: memref<1x128xf32, #tpu.memory_space<vmem>>, %arg20: memref<104x128xf32, #tpu.memory_space<vmem>>) attributes {dimension_semantics = [#tpu.dimension_semantics<parallel>], iteration_bounds = array<i64: 2>, scalar_prefetch = 0 : i64, scratch_operands = 0 : i64, tpu.core_type = #tpu.core_type<tc>, window_params = [{transform_indices = @transform_0, window_bounds = array<i64: 104, 128>}, {pipeline_mode = #tpu.pipeline_mode<synchronous>, transform_indices = @transform_1, window_bounds = array<i64: 128, 512>}, {pipeline_mode = #tpu.pipeline_mode<synchronous>, transform_indices = @transform_2, window_bounds = array<i64: 256, 256>}, {pipeline_mode = #tpu.pipeline_mode<synchronous>, transform_indices = @transform_3, window_bounds = array<i64: 256, 256>}, {pipeline_mode = #tpu.pipeline_mode<synchronous>, transform_indices = @transform_4, window_bounds = array<i64: 256, 256>}, {pipeline_mode = #tpu.pipeline_mode<synchronous>, transform_indices = @transform_5, window_bounds = array<i64: 256, 256>}, {pipeline_mode = #tpu.pipeline_mode<synchronous>, transform_indices = @transform_6, window_bounds = array<i64: 256, 256>}, {pipeline_mode = #tpu.pipeline_mode<synchronous>, transform_indices = @transform_7, window_bounds = array<i64: 256, 256>}, {pipeline_mode = #tpu.pipeline_mode<synchronous>, transform_indices = @transform_8, window_bounds = array<i64: 256, 256>}, {pipeline_mode = #tpu.pipeline_mode<synchronous>, transform_indices = @transform_9, window_bounds = array<i64: 256, 128>}, {pipeline_mode = #tpu.pipeline_mode<synchronous>, transform_indices = @transform_10, window_bounds = array<i64: 1, 256>}, {pipeline_mode = #tpu.pipeline_mode<synchronous>, transform_indices = @transform_11, window_bounds = array<i64: 1, 256>}, {pipeline_mode = #tpu.pipeline_mode<synchronous>, transform_indices = @transform_12, window_bounds = array<i64: 1, 256>}, {pipeline_mode = #tpu.pipeline_mode<synchronous>, transform_indices = @transform_13, window_bounds = array<i64: 1, 256>}, {pipeline_mode = #tpu.pipeline_mode<synchronous>, transform_indices = @transform_14, window_bounds = array<i64: 1, 256>}, {pipeline_mode = #tpu.pipeline_mode<synchronous>, transform_indices = @transform_15, window_bounds = array<i64: 1, 256>}, {pipeline_mode = #tpu.pipeline_mode<synchronous>, transform_indices = @transform_16, window_bounds = array<i64: 1, 256>}, {pipeline_mode = #tpu.pipeline_mode<synchronous>, transform_indices = @transform_17, window_bounds = array<i64: 1, 256>}, {pipeline_mode = #tpu.pipeline_mode<synchronous>, transform_indices = @transform_18, window_bounds = array<i64: 1, 128>}, {transform_indices = @transform_19, window_bounds = array<i64: 104, 128>}]} {
    %c0 = arith.constant 0 : index
    %c0_0 = arith.constant 0 : index
    %0 = vector.load %arg11[%c0, %c0_0] : memref<1x256xf32, #tpu.memory_space<vmem>>, vector<1x256xf32>
    %c0_1 = arith.constant 0 : index
    %c0_2 = arith.constant 0 : index
    %1 = vector.load %arg12[%c0_1, %c0_2] : memref<1x256xf32, #tpu.memory_space<vmem>>, vector<1x256xf32>
    %c0_3 = arith.constant 0 : index
    %c0_4 = arith.constant 0 : index
    %2 = vector.load %arg13[%c0_3, %c0_4] : memref<1x256xf32, #tpu.memory_space<vmem>>, vector<1x256xf32>
    %c0_5 = arith.constant 0 : index
    %c0_6 = arith.constant 0 : index
    %3 = vector.load %arg14[%c0_5, %c0_6] : memref<1x256xf32, #tpu.memory_space<vmem>>, vector<1x256xf32>
    %c0_7 = arith.constant 0 : index
    %c0_8 = arith.constant 0 : index
    %4 = vector.load %arg15[%c0_7, %c0_8] : memref<1x256xf32, #tpu.memory_space<vmem>>, vector<1x256xf32>
    %c0_9 = arith.constant 0 : index
    %c0_10 = arith.constant 0 : index
    %5 = vector.load %arg16[%c0_9, %c0_10] : memref<1x256xf32, #tpu.memory_space<vmem>>, vector<1x256xf32>
    %c0_11 = arith.constant 0 : index
    %c0_12 = arith.constant 0 : index
    %6 = vector.load %arg17[%c0_11, %c0_12] : memref<1x256xf32, #tpu.memory_space<vmem>>, vector<1x256xf32>
    %c0_13 = arith.constant 0 : index
    %c0_14 = arith.constant 0 : index
    %7 = vector.load %arg18[%c0_13, %c0_14] : memref<1x256xf32, #tpu.memory_space<vmem>>, vector<1x256xf32>
    %c0_15 = arith.constant 0 : index
    %c0_16 = arith.constant 0 : index
    %8 = vector.load %arg19[%c0_15, %c0_16] : memref<1x128xf32, #tpu.memory_space<vmem>>, vector<1x128xf32>
    %c0_17 = arith.constant 0 : index
    %c0_18 = arith.constant 0 : index
    %9 = vector.load %arg1[%c0_17, %c0_18] : memref<104x128xf32, #tpu.memory_space<vmem>>, vector<104x128xf32>
    %10 = arith.truncf %9 : vector<104x128xf32> to vector<104x128xbf16>
    %c0_19 = arith.constant 0 : index
    %c0_20 = arith.constant 0 : index
    %11 = vector.load %arg2[%c0_19, %c0_20] : memref<128x512xbf16, #tpu.memory_space<vmem>>, vector<128x512xbf16>
    %cst = arith.constant dense<0.000000e+00> : vector<104x512xf32>
    %12 = tpu.matmul %10, %11, %cst {dimension_numbers = #tpu.dot_dimension_numbers<[1], [0], [0], [1], [0, 0, 1, 1], [], []>} : vector<104x128xbf16>, vector<128x512xbf16>, vector<104x512xf32> -> vector<104x512xf32>
    %13 = vector.extract_strided_slice %12 {offsets = [0, 0], sizes = [104, 256], strides = [1, 1]} : vector<104x512xf32> to vector<104x256xf32>
    %14 = vector.broadcast %0 : vector<1x256xf32> to vector<104x256xf32>
    %15 = arith.addf %13, %14 : vector<104x256xf32>
    %cst_21 = arith.constant 0.000000e+00 : f32
    %16 = vector.broadcast %cst_21 : f32 to vector<104x256xf32>
    %17 = arith.maximumf %15, %16 : vector<104x256xf32>
    %18 = vector.extract_strided_slice %12 {offsets = [0, 256], sizes = [104, 256], strides = [1, 1]} : vector<104x512xf32> to vector<104x256xf32>
    %19 = arith.truncf %17 : vector<104x256xf32> to vector<104x256xbf16>
    %c0_22 = arith.constant 0 : index
    %c0_23 = arith.constant 0 : index
    %20 = vector.load %arg3[%c0_22, %c0_23] : memref<256x256xbf16, #tpu.memory_space<vmem>>, vector<256x256xbf16>
    %cst_24 = arith.constant dense<0.000000e+00> : vector<104x256xf32>
    %21 = tpu.matmul %19, %20, %cst_24 {dimension_numbers = #tpu.dot_dimension_numbers<[1], [0], [0], [1], [0, 0, 1, 1], [], []>} : vector<104x256xbf16>, vector<256x256xbf16>, vector<104x256xf32> -> vector<104x256xf32>
    %22 = vector.broadcast %1 : vector<1x256xf32> to vector<104x256xf32>
    %23 = arith.addf %21, %22 : vector<104x256xf32>
    %cst_25 = arith.constant 0.000000e+00 : f32
    %24 = vector.broadcast %cst_25 : f32 to vector<104x256xf32>
    %25 = arith.maximumf %23, %24 : vector<104x256xf32>
    %26 = arith.truncf %25 : vector<104x256xf32> to vector<104x256xbf16>
    %c0_26 = arith.constant 0 : index
    %c0_27 = arith.constant 0 : index
    %27 = vector.load %arg4[%c0_26, %c0_27] : memref<256x256xbf16, #tpu.memory_space<vmem>>, vector<256x256xbf16>
    %cst_28 = arith.constant dense<0.000000e+00> : vector<104x256xf32>
    %28 = tpu.matmul %26, %27, %cst_28 {dimension_numbers = #tpu.dot_dimension_numbers<[1], [0], [0], [1], [0, 0, 1, 1], [], []>} : vector<104x256xbf16>, vector<256x256xbf16>, vector<104x256xf32> -> vector<104x256xf32>
    %29 = vector.broadcast %2 : vector<1x256xf32> to vector<104x256xf32>
    %30 = arith.addf %28, %29 : vector<104x256xf32>
    %cst_29 = arith.constant 0.000000e+00 : f32
    %31 = vector.broadcast %cst_29 : f32 to vector<104x256xf32>
    %32 = arith.maximumf %30, %31 : vector<104x256xf32>
    %33 = arith.truncf %32 : vector<104x256xf32> to vector<104x256xbf16>
    %c0_30 = arith.constant 0 : index
    %c0_31 = arith.constant 0 : index
    %34 = vector.load %arg5[%c0_30, %c0_31] : memref<256x256xbf16, #tpu.memory_space<vmem>>, vector<256x256xbf16>
    %cst_32 = arith.constant dense<0.000000e+00> : vector<104x256xf32>
    %35 = tpu.matmul %33, %34, %cst_32 {dimension_numbers = #tpu.dot_dimension_numbers<[1], [0], [0], [1], [0, 0, 1, 1], [], []>} : vector<104x256xbf16>, vector<256x256xbf16>, vector<104x256xf32> -> vector<104x256xf32>
    %36 = vector.broadcast %3 : vector<1x256xf32> to vector<104x256xf32>
    %37 = arith.addf %35, %36 : vector<104x256xf32>
    %cst_33 = arith.constant 0.000000e+00 : f32
    %38 = vector.broadcast %cst_33 : f32 to vector<104x256xf32>
    %39 = arith.maximumf %37, %38 : vector<104x256xf32>
    %40 = arith.truncf %39 : vector<104x256xf32> to vector<104x256xbf16>
    %c0_34 = arith.constant 0 : index
    %c0_35 = arith.constant 0 : index
    %41 = vector.load %arg6[%c0_34, %c0_35] : memref<256x256xbf16, #tpu.memory_space<vmem>>, vector<256x256xbf16>
    %cst_36 = arith.constant dense<0.000000e+00> : vector<104x256xf32>
    %42 = tpu.matmul %40, %41, %cst_36 {dimension_numbers = #tpu.dot_dimension_numbers<[1], [0], [0], [1], [0, 0, 1, 1], [], []>} : vector<104x256xbf16>, vector<256x256xbf16>, vector<104x256xf32> -> vector<104x256xf32>
    %43 = vector.broadcast %4 : vector<1x256xf32> to vector<104x256xf32>
    %44 = arith.addf %42, %43 : vector<104x256xf32>
    %cst_37 = arith.constant 0.000000e+00 : f32
    %45 = vector.broadcast %cst_37 : f32 to vector<104x256xf32>
    %46 = arith.maximumf %44, %45 : vector<104x256xf32>
    %47 = arith.truncf %46 : vector<104x256xf32> to vector<104x256xbf16>
    %c0_38 = arith.constant 0 : index
    %c0_39 = arith.constant 0 : index
    %48 = vector.load %arg7[%c0_38, %c0_39] : memref<256x256xbf16, #tpu.memory_space<vmem>>, vector<256x256xbf16>
    %cst_40 = arith.constant dense<0.000000e+00> : vector<104x256xf32>
    %49 = tpu.matmul %47, %48, %cst_40 {dimension_numbers = #tpu.dot_dimension_numbers<[1], [0], [0], [1], [0, 0, 1, 1], [], []>} : vector<104x256xbf16>, vector<256x256xbf16>, vector<104x256xf32> -> vector<104x256xf32>
    %50 = vector.broadcast %5 : vector<1x256xf32> to vector<104x256xf32>
    %51 = arith.addf %49, %50 : vector<104x256xf32>
    %52 = arith.addf %18, %51 : vector<104x256xf32>
    %cst_41 = arith.constant 0.000000e+00 : f32
    %53 = vector.broadcast %cst_41 : f32 to vector<104x256xf32>
    %54 = arith.maximumf %52, %53 : vector<104x256xf32>
    %55 = arith.truncf %54 : vector<104x256xf32> to vector<104x256xbf16>
    %c0_42 = arith.constant 0 : index
    %c0_43 = arith.constant 0 : index
    %56 = vector.load %arg8[%c0_42, %c0_43] : memref<256x256xbf16, #tpu.memory_space<vmem>>, vector<256x256xbf16>
    %cst_44 = arith.constant dense<0.000000e+00> : vector<104x256xf32>
    %57 = tpu.matmul %55, %56, %cst_44 {dimension_numbers = #tpu.dot_dimension_numbers<[1], [0], [0], [1], [0, 0, 1, 1], [], []>} : vector<104x256xbf16>, vector<256x256xbf16>, vector<104x256xf32> -> vector<104x256xf32>
    %58 = vector.broadcast %6 : vector<1x256xf32> to vector<104x256xf32>
    %59 = arith.addf %57, %58 : vector<104x256xf32>
    %cst_45 = arith.constant 0.000000e+00 : f32
    %60 = vector.broadcast %cst_45 : f32 to vector<104x256xf32>
    %61 = arith.maximumf %59, %60 : vector<104x256xf32>
    %62 = arith.truncf %61 : vector<104x256xf32> to vector<104x256xbf16>
    %c0_46 = arith.constant 0 : index
    %c0_47 = arith.constant 0 : index
    %63 = vector.load %arg9[%c0_46, %c0_47] : memref<256x256xbf16, #tpu.memory_space<vmem>>, vector<256x256xbf16>
    %cst_48 = arith.constant dense<0.000000e+00> : vector<104x256xf32>
    %64 = tpu.matmul %62, %63, %cst_48 {dimension_numbers = #tpu.dot_dimension_numbers<[1], [0], [0], [1], [0, 0, 1, 1], [], []>} : vector<104x256xbf16>, vector<256x256xbf16>, vector<104x256xf32> -> vector<104x256xf32>
    %65 = vector.broadcast %7 : vector<1x256xf32> to vector<104x256xf32>
    %66 = arith.addf %64, %65 : vector<104x256xf32>
    %cst_49 = arith.constant 0.000000e+00 : f32
    %67 = vector.broadcast %cst_49 : f32 to vector<104x256xf32>
    %68 = arith.maximumf %66, %67 : vector<104x256xf32>
    %69 = arith.truncf %68 : vector<104x256xf32> to vector<104x256xbf16>
    %c0_50 = arith.constant 0 : index
    %c0_51 = arith.constant 0 : index
    %70 = vector.load %arg10[%c0_50, %c0_51] : memref<256x128xbf16, #tpu.memory_space<vmem>>, vector<256x128xbf16>
    %cst_52 = arith.constant dense<0.000000e+00> : vector<104x128xf32>
    %71 = tpu.matmul %69, %70, %cst_52 {dimension_numbers = #tpu.dot_dimension_numbers<[1], [0], [0], [1], [0, 0, 1, 1], [], []>} : vector<104x256xbf16>, vector<256x128xbf16>, vector<104x128xf32> -> vector<104x128xf32>
    %72 = vector.broadcast %8 : vector<1x128xf32> to vector<104x128xf32>
    %73 = arith.addf %71, %72 : vector<104x128xf32>
    %c0_53 = arith.constant 0 : index
    %c0_54 = arith.constant 0 : index
    %74 = vector.load %arg20[%c0_53, %c0_54] : memref<104x128xf32, #tpu.memory_space<vmem>>, vector<104x128xf32>
    tpu.vector_store %arg20[%c0_53, %c0_54], %73 {strides = array<i32>} : memref<104x128xf32, #tpu.memory_space<vmem>>, vector<104x128xf32>,
    return
  }
  func.func @transform_0(%arg0: i32) -> (i32, i32) {
    %c0_i32 = arith.constant 0 : i32
    %c0_i32_0 = arith.constant 0 : i32
    return %arg0, %c0_i32 : i32, i32
  }
  func.func @transform_1(%arg0: i32) -> (i32, i32) {
    %c0_i32 = arith.constant 0 : i32
    %c0_i32_0 = arith.constant 0 : i32
    %c0_i32_1 = arith.constant 0 : i32
    return %c0_i32, %c0_i32_0 : i32, i32
  }
  func.func @transform_2(%arg0: i32) -> (i32, i32) {
    %c0_i32 = arith.constant 0 : i32
    %c0_i32_0 = arith.constant 0 : i32
    %c0_i32_1 = arith.constant 0 : i32
    return %c0_i32, %c0_i32_0 : i32, i32
  }
  func.func @transform_3(%arg0: i32) -> (i32, i32) {
    %c0_i32 = arith.constant 0 : i32
    %c0_i32_0 = arith.constant 0 : i32
    %c0_i32_1 = arith.constant 0 : i32
    return %c0_i32, %c0_i32_0 : i32, i32
  }
  func.func @transform_4(%arg0: i32) -> (i32, i32) {
    %c0_i32 = arith.constant 0 : i32
    %c0_i32_0 = arith.constant 0 : i32
    %c0_i32_1 = arith.constant 0 : i32
    return %c0_i32, %c0_i32_0 : i32, i32
  }
  func.func @transform_5(%arg0: i32) -> (i32, i32) {
    %c0_i32 = arith.constant 0 : i32
    %c0_i32_0 = arith.constant 0 : i32
    %c0_i32_1 = arith.constant 0 : i32
    return %c0_i32, %c0_i32_0 : i32, i32
  }
  func.func @transform_6(%arg0: i32) -> (i32, i32) {
    %c0_i32 = arith.constant 0 : i32
    %c0_i32_0 = arith.constant 0 : i32
    %c0_i32_1 = arith.constant 0 : i32
    return %c0_i32, %c0_i32_0 : i32, i32
  }
  func.func @transform_7(%arg0: i32) -> (i32, i32) {
    %c0_i32 = arith.constant 0 : i32
    %c0_i32_0 = arith.constant 0 : i32
    %c0_i32_1 = arith.constant 0 : i32
    return %c0_i32, %c0_i32_0 : i32, i32
  }
  func.func @transform_8(%arg0: i32) -> (i32, i32) {
    %c0_i32 = arith.constant 0 : i32
    %c0_i32_0 = arith.constant 0 : i32
    %c0_i32_1 = arith.constant 0 : i32
    return %c0_i32, %c0_i32_0 : i32, i32
  }
  func.func @transform_9(%arg0: i32) -> (i32, i32) {
    %c0_i32 = arith.constant 0 : i32
    %c0_i32_0 = arith.constant 0 : i32
    %c0_i32_1 = arith.constant 0 : i32
    return %c0_i32, %c0_i32_0 : i32, i32
  }
  func.func @transform_10(%arg0: i32) -> (i32, i32) {
    %c0_i32 = arith.constant 0 : i32
    %c0_i32_0 = arith.constant 0 : i32
    %c0_i32_1 = arith.constant 0 : i32
    return %c0_i32, %c0_i32_0 : i32, i32
  }
  func.func @transform_11(%arg0: i32) -> (i32, i32) {
    %c0_i32 = arith.constant 0 : i32
    %c0_i32_0 = arith.constant 0 : i32
    %c0_i32_1 = arith.constant 0 : i32
    return %c0_i32, %c0_i32_0 : i32, i32
  }
  func.func @transform_12(%arg0: i32) -> (i32, i32) {
    %c0_i32 = arith.constant 0 : i32
    %c0_i32_0 = arith.constant 0 : i32
    %c0_i32_1 = arith.constant 0 : i32
    return %c0_i32, %c0_i32_0 : i32, i32
  }
  func.func @transform_13(%arg0: i32) -> (i32, i32) {
    %c0_i32 = arith.constant 0 : i32
    %c0_i32_0 = arith.constant 0 : i32
    %c0_i32_1 = arith.constant 0 : i32
    return %c0_i32, %c0_i32_0 : i32, i32
  }
  func.func @transform_14(%arg0: i32) -> (i32, i32) {
    %c0_i32 = arith.constant 0 : i32
    %c0_i32_0 = arith.constant 0 : i32
    %c0_i32_1 = arith.constant 0 : i32
    return %c0_i32, %c0_i32_0 : i32, i32
  }
  func.func @transform_15(%arg0: i32) -> (i32, i32) {
    %c0_i32 = arith.constant 0 : i32
    %c0_i32_0 = arith.constant 0 : i32
    %c0_i32_1 = arith.constant 0 : i32
    return %c0_i32, %c0_i32_0 : i32, i32
  }
  func.func @transform_16(%arg0: i32) -> (i32, i32) {
    %c0_i32 = arith.constant 0 : i32
    %c0_i32_0 = arith.constant 0 : i32
    %c0_i32_1 = arith.constant 0 : i32
    return %c0_i32, %c0_i32_0 : i32, i32
  }
  func.func @transform_17(%arg0: i32) -> (i32, i32) {
    %c0_i32 = arith.constant 0 : i32
    %c0_i32_0 = arith.constant 0 : i32
    %c0_i32_1 = arith.constant 0 : i32
    return %c0_i32, %c0_i32_0 : i32, i32
  }
  func.func @transform_18(%arg0: i32) -> (i32, i32) {
    %c0_i32 = arith.constant 0 : i32
    %c0_i32_0 = arith.constant 0 : i32
    %c0_i32_1 = arith.constant 0 : i32
    return %c0_i32, %c0_i32_0 : i32, i32
  }
  func.func @transform_19(%arg0: i32) -> (i32, i32) {
    %c0_i32 = arith.constant 0 : i32
    %c0_i32_0 = arith.constant 0 : i32
    return %arg0, %c0_i32 : i32, i32
  }
}

</mosaic_0001>

<bundles_post_ra>
// kernel: normal_forward.1
= control target key start
LH: loop header
LB: loop body
LE: loop exit
PB: predicated region body
PF: predicated region fallthrough
CT: control target
= control target key end

     0   :  { %s7699_s0 = inlined_call_operand.hbm [shape: f32[200,128], index: 0, kind: input, shape index: {}]   ;;  %s7700_s1 = inlined_call_operand.hbm [shape: bf16[128,512], index: 1, kind: input, shape index: {}]   ;;  %s7701_s2 = inlined_call_operand.hbm [shape: bf16[256,256], index: 2, kind: input, shape index: {}]   ;;  %s7702_s3 = inlined_call_operand.hbm [shape: bf16[256,256], index: 3, kind: input, shape index: {}]   ;;  %s7703_s4 = inlined_call_operand.hbm [shape: bf16[256,256], index: 4, kind: input, shape index: {}]   ;;  %s7704_s5 = inlined_call_operand.hbm [shape: bf16[256,256], index: 5, kind: input, shape index: {}]   ;;  %s7705_s6 = inlined_call_operand.hbm [shape: bf16[256,256], index: 6, kind: input, shape index: {}]   ;;  %s7706_s7 = inlined_call_operand.hbm [shape: bf16[256,256], index: 7, kind: input, shape index: {}]   ;;  %s7707_s8 = inlined_call_operand.hbm [shape: bf16[256,256], index: 8, kind: input, shape index: {}]   ;;  %s7708_s9 = inlined_call_operand.hbm [shape: bf16[256,128], index: 9, kind: input, shape index: {}]   ;;  %s7709_s10 = inlined_call_operand.vmem [shape: f32[1,256], index: 10, kind: input, shape index: {}]   ;;  %s7710_s11 = inlined_call_operand.vmem [shape: f32[1,256], index: 11, kind: input, shape index: {}]   ;;  %s7711_s12 = inlined_call_operand.vmem [shape: f32[1,256], index: 12, kind: input, shape index: {}]   ;;  %s7712_s13 = inlined_call_operand.vmem [shape: f32[1,256], index: 13, kind: input, shape index: {}]   ;;  %s7713_s14 = inlined_call_operand.vmem [shape: f32[1,256], index: 14, kind: input, shape index: {}]   ;;  %s7714_s15 = inlined_call_operand.vmem [shape: f32[1,256], index: 15, kind: input, shape index: {}]   ;;  %s7715_s16 = inlined_call_operand.vmem [shape: f32[1,256], index: 16, kind: input, shape index: {}]   ;;  %s7716_s17 = inlined_call_operand.vmem [shape: f32[1,256], index: 17, kind: input, shape index: {}]   ;;  %s7717_s18 = inlined_call_operand.vmem [shape: f32[1,128], index: 18, kind: input, shape index: {}]   ;;  %s7718_s19 = inlined_call_operand.vmem [shape: f32[200,128], index: 19, kind: output, shape index: {}]  }
   0x1   :  { %7724 = sst [smem:[#allocation28_spill]] %s7699_s0 }
   0x2   :  { %7725 = sst [smem:[#allocation29_spill]] %s7700_s1 }
   0x3   :  { %7726 = sst [smem:[#allocation30_spill]] %s7701_s2 }
   0x4   :  { %7727 = sst [smem:[#allocation31_spill]] %s7702_s3 }
   0x5   :  { %7728 = sst [smem:[#allocation32_spill]] %s7704_s5 }
   0x6   :  { %7729 = sst [smem:[#allocation33_spill]] %s7712_s13 }
   0x7   :  { %7730 = sst [smem:[#allocation34_spill]] %s7713_s14 }
   0x8   :  { %7731 = sst [smem:[#allocation35_spill]] %s7714_s15 }
   0x9   :  { %7732 = sst [smem:[#allocation36_spill]] %s7715_s16 }
   0xa   :  { %7733 = sst [smem:[#allocation37_spill]] %s7716_s17 }
   0xb   :  { %7734 = sst [smem:[#allocation38_spill]] %s7717_s18 }
   0xc   :  { %7735 = sst [smem:[#allocation39_spill]] %s7718_s19 }
   0xd   :  { %24 = vsyncpa [#allocation3], 0 }
   0xe   :  { %26 = vsyncpa [#allocation3 + $0x1], 0 }
   0xf   :  { %27 = vsyncpa [#allocation5], 0 }
  0x10   :  { %28 = vsyncpa [#allocation8], 0 }
  0x11   :  { %29 = vsyncpa [#allocation11], 0 }
  0x12   :  { %30 = vsyncpa [#allocation14], 0 }
  0x13   :  { %31 = vsyncpa [#allocation17], 0  ;;  %s6901_s0 = smov 0   ;;  %s6903_s30 = smov 0  }
  0x14   :  { %s6905_s20 = smov 0   ;;  %s6907_s21 = smov 0  }
  0x15 LB: > { %s6920_s1 = sadd.s32 4294967295, %s6749_s21   ;;  %s6923_s22 = sadd.s32 1, %s6749_s21   ;;  %s6749_s21 = sphi %s6907_s21, %s7773_s21   ;;  %s6745_s20 = sphi %s6905_s20, %s7777_s20   ;;  %s6741_s30 = sphi %s6903_s30, %s7776_s30   ;;  %s6737_s0 = sphi %s6901_s0, %s7775_s0  }
  0x16   : > { %7736 = sst [smem:[#allocation25_spill]] %s6923_s22  ;;  %s41_s2 = ssub.s32 %s6749_s21, %s6923_s22 }
  0x17   : > { %s44_s23 = sadd.s32 1, %s6745_s20  ;;  %p42_p0 = scmp.eq.s32.totalorder %s41_s2, 0 }
  0x18   : > { %p51_p1 = scmp.ne.s32.totalorder %s6745_s20, %s6741_s30  ;;  %p52_p2 = scmp.eq.s32.totalorder %s6749_s21, 0 }
  0x19   : > { %p57_p3 = scmp.ne.s32.totalorder %s6741_s30, %s6737_s0  ;;  %p7723_p5 = scmp.eq.s32.totalorder %s6920_s1, 0 }
  0x1a   : > { %s6933_s24 = scalar_select %p42_p0, %s6745_s20, %s44_s23  }
  0x1b   : > { %p6935_p4 = por %p52_p2, %p51_p1  ;;  %p459_p6 = scmp.eq.s32.totalorder %s6920_s1, 1 }
  0x1c   : > { %7737 = sst [smem:[#allocation26_spill]] %s6933_s24  ;;  %p4732_p7 = scmp.ge.s32.totalorder %s6749_s21, 1 }
  0x1d   : > { %p6944_p8 = por %p7723_p5, %p57_p3  ;;  %p472_p9 = scmp.lt.s32.totalorder %s6749_s21, 3 }
  0x1e   : > { %p6949_p10 = por %p459_p6, %p51_p1  ;;  %s7743_s0 = sld [smem:[#allocation29_spill]] }
  0x1f   : > { %p6953_p11 = pnand %p4732_p7, %p472_p9  ;;  %s6783_s23 = smov [#allocation4]  }
  0x20   : > { %s7740_s26 = scalar_select %p6949_p10, 1, 0 }
  0x21   : > { %p6187_p12 = pneg %p6953_p11  ;;  %s485_s24 = sshll.u32 %s6783_s23, 4  ;;  %s486_s24 = int_to_ptr.vmem [resolvable:$true] %s485_s24 }
  0x22   : > { %7741 = sst [smem:[#allocation27_spill]] %s7740_s26  ;;  %s6784_s28 = smov 256  }
  0x23   : > { %p6964_p13 = pnand %p6187_p12, %p7723_p5  ;;  %s7745_s18 = sld [smem:[#allocation31_spill]] }
  0x24   : > { %s483_s2 = sshll.u32 %s7743_s0, 4  ;;  %s6785_s29 = smov 16   ;;  %s484_s2 = int_to_ptr.hbm [resolvable:$true] %s483_s2 }
  0x25   : > { %6190 = dma.hbm_to_vmem [thread:$0]  (!%p6964_p13), %s484_s2, 4096, %s486_s24, [#allocation5], %s6784_s28, %s6784_s28, %s6785_s29  }
  0x26   : > { %s6786_s0 = smov [#allocation7]   ;;  %s7746_s5 = sld [smem:[#allocation32_spill]] }
  0x27   : > { %s513_s23 = sshll.u32 %s6786_s0, 4  ;;  %s6787_s13 = smov 128   ;;  %s514_s23 = int_to_ptr.vmem [resolvable:$true] %s513_s23 }
  0x28   : > { %s6788_s19 = smov 8   ;;  %s567_s24 = sshll.u32 %s7706_s7, 4  ;;  %s568_s24 = int_to_ptr.hbm [resolvable:$true] %s567_s24 }
  0x29   : > { %s511_s17 = sshll.u32 %s7745_s18, 4  ;;  %s6789_s2 = smov [#allocation10]   ;;  %s512_s17 = int_to_ptr.hbm [resolvable:$true] %s511_s17 }
  0x2a   : > { %6196 = dma.hbm_to_vmem [thread:$0]  (!%p6964_p13), %s512_s17, 4096, %s514_s23, [#allocation8], %s6787_s13, %s6787_s13, %s6788_s19  }
  0x2b   : > { %s541_s28 = sshll.u32 %s6789_s2, 4  ;;  %s6790_s15 = smov [#allocation13]   ;;  %s542_s28 = int_to_ptr.vmem [resolvable:$true] %s541_s28 }
  0x2c   : > { %s539_s14 = sshll.u32 %s7746_s5, 4  ;;  %s569_s16 = sshll.u32 %s6790_s15, 4  ;;  %s540_s14 = int_to_ptr.hbm [resolvable:$true] %s539_s14  ;;  %s570_s16 = int_to_ptr.vmem [resolvable:$true] %s569_s16 }
  0x2d   : > { %6202 = dma.hbm_to_vmem [thread:$0]  (!%p6964_p13), %s540_s14, 4096, %s542_s28, [#allocation11], %s6787_s13, %s6787_s13, %s6788_s19  }
  0x2e   : > { %s7747_s5 = sld [smem:[#allocation30_spill]]  ;;  %s525_s26 = sshll.u32 %s7703_s4, 4  ;;  %s526_s26 = int_to_ptr.hbm [resolvable:$true] %s525_s26 }
  0x2f   : > { %6208 = dma.hbm_to_vmem [thread:$0]  (!%p6964_p13), %s568_s24, 4096, %s570_s16, [#allocation14], %s6787_s13, %s6787_s13, %s6788_s19  }
  0x30   : > { %s6791_s2 = smov [#allocation6]   ;;  %s553_s24 = sshll.u32 %s7705_s6, 4  ;;  %s554_s24 = int_to_ptr.hbm [resolvable:$true] %s553_s24 }
  0x31   : > { %s499_s14 = sshll.u32 %s6791_s2, 4  ;;  %s581_s23 = sshll.u32 %s7707_s8, 4  ;;  %s500_s14 = int_to_ptr.vmem [resolvable:$true] %s499_s14  ;;  %s582_s23 = int_to_ptr.hbm [resolvable:$true] %s581_s23 }
  0x32   : > { %s6793_s18 = smov [#allocation12]   ;;  %s6794_s2 = smov [#allocation15]  }
  0x33   : > { %s6796_s16 = smov 64   ;;  %s6797_s0 = smov 4  }
  0x34   : > { %s497_s17 = sshll.u32 %s7747_s5, 4  ;;  %s6792_s5 = smov [#allocation9]   ;;  %s498_s17 = int_to_ptr.hbm [resolvable:$true] %s497_s17 }
  0x35   : > { %6193 = dma.hbm_to_vmem [thread:$0]  (!%p6964_p13), %s498_s17, 4096, %s500_s14, [#allocation5], %s6787_s13, %s6787_s13, %s6788_s19  }
  0x36   : > { %s527_s28 = sshll.u32 %s6792_s5, 4  ;;  %s555_s17 = sshll.u32 %s6793_s18, 4  ;;  %s528_s28 = int_to_ptr.vmem [resolvable:$true] %s527_s28  ;;  %s556_s17 = int_to_ptr.vmem [resolvable:$true] %s555_s17 }
  0x37   : > { %6199 = dma.hbm_to_vmem [thread:$0]  (!%p6964_p13), %s526_s26, 4096, %s528_s28, [#allocation8], %s6787_s13, %s6787_s13, %s6788_s19  }
  0x38   : > { %6205 = dma.hbm_to_vmem [thread:$0]  (!%p6964_p13), %s554_s24, 4096, %s556_s17, [#allocation11], %s6787_s13, %s6787_s13, %s6788_s19  }
  0x39   : > { %s583_s14 = sshll.u32 %s6794_s2, 4  ;;  %s595_s26 = sshll.u32 %s7708_s9, 4  ;;  %s584_s14 = int_to_ptr.vmem [resolvable:$true] %s583_s14  ;;  %s596_s26 = int_to_ptr.hbm [resolvable:$true] %s595_s26 }
  0x3a   : > { %6211 = dma.hbm_to_vmem [thread:$0]  (!%p6964_p13), %s582_s23, 4096, %s584_s14, [#allocation14], %s6787_s13, %s6787_s13, %s6788_s19  }
  0x3b   : > { %s6795_s28 = smov [#allocation16]   ;;  %p4742_p0 = scmp.ge.s32.totalorder %s6749_s21, 2 }
  0x3c   : > { %s597_s29 = sshll.u32 %s6795_s28, 4  ;;  %s598_s29 = int_to_ptr.vmem [resolvable:$true] %s597_s29 }
  0x3d   : > { %6214 = dma.hbm_to_vmem [thread:$0]  (!%p6964_p13), %s596_s26, 2048, %s598_s29, [#allocation17], %s6796_s16, %s6796_s16, %s6797_s0  }
  0x3e   : > { %634 = sbr.rel (%p4742_p0) target bundleno = 111 (0x6f), region = 88 }
  0x43   : > { %637 = sbr.rel (!%p6935_p4) target bundleno = 111 (0x6f), region = 92  ;;  %s638_s24 = sand.u32 (%p6935_p4), 1, %s6745_s20  }
  0x44   : > { %s643_s18 = smul.u32 (%p6935_p4), 13, %s6749_s21  ;;  %s7039_s23 = scalar_lea.sflag (%p6935_p4), [#allocation3], %s638_s24 }
  0x45   : > { %s6148_s17 = smul.u32 (%p6935_p4), 104, %s638_s24 }
  0x46   : > { %s644_s2 = ssub.s32 (%p6935_p4), 25, %s643_s18 }
  0x47   : > { %p645_p1 = scmp.lt.s32.totalorder (%p6935_p4), %s644_s2, 13  ;;  %s642_s14 = scalar_lea.vmem (%p6935_p4), [#allocation2], %s6148_s17 }
  0x49   : > { %s7779_s2 = smov (!%p645_p1, %s644_s2), 13 }
  0x4a   : > { %s4743_s13 = sshll.u32 %s7779_s2, 3 }
  0x4b   : > { %s648_s19 = ssub.s32 104, %s4743_s13 }
  0x4c   : > { %s649_s22 = sshll.u32 %s648_s19, 4 }
  0x4d   : > { %650 = vsyncadd %s7039_s23, %s649_s22  ;;  %p7042_p2 = scmp.ne.s32.totalorder %s4743_s13, 0  ;;  %s5858_s5 = smul.u32 104, %s6749_s21 }
  0x4e   : > { %s7047_s15 = sshll.u32 %s642_s14, 4  ;;  %s4747_s26 = sshll.u32 %s7779_s2, 7  ;;  %s658_s15 = int_to_ptr.vmem [resolvable:$true] %s7047_s15 }
  0x4f   : > { %s7749_s16 = sld [smem:[#allocation28_spill]]  ;;  %s6626_s17 = sshrl.u32 %s4747_s26, 4 }
  0x55   : > { %s653_s0 = scalar_lea.hbm %s7749_s16, %s5858_s5  ;;  %s6635_s22 = scalar_lea.hbm %s7749_s16, 200 }
  0x56   : > { %s655_s24 = sshll.u32 %s653_s0, 4  ;;  %s7054_s24 = int_to_ptr.hbm [resolvable:$true] %s655_s24 }
  0x57   : > { %s6624_s18 = sshra.s32 %s7054_s24, 4  ;;  %s6625_s18 = int_to_ptr.hbm [resolvable:$true] %s6624_s18 }
  0x58   : > { %s6631_s13 = scalar_lea.hbm %s6625_s18, %s6626_s17  ;;  %p6636_p7 = scmp.lt.s32.totalorder %s6625_s18, %s7749_s16 }
  0x59   : > { %p6632_p3 = scmp.ne.s32.totalorder %s6625_s18, %s6631_s13  ;;  %p6637_p9 = scmp.lt.s32.totalorder %s6635_s22, %s6631_s13 }
  0x5b   : > { %p6633_p4 = pnand %p6632_p3, %p7042_p2  ;;  %p6638_p12 = por %p6637_p9, %p6636_p7 }
  0x5d   : > { %p6634_p6 = pneg %p6633_p4 }
  0x5f   : > { %p6639_p13 = pnand %p6638_p12, %p6634_p6 }
  0x61   : > { %6642 = shalt.err (!%p6639_p13)
}
  0x62   : > { %s6643_s28 = sshra.s32 %s658_s15, 4  ;;  %s6798_s0 = smov [#allocation2]   ;;  %s6644_s28 = int_to_ptr.vmem [resolvable:$true] %s6643_s28 }
  0x63   : > { %s6650_s29 = scalar_lea.vmem %s6644_s28, %s6626_s17  ;;  %s6654_s21 = scalar_lea.vmem %s6798_s0, 208 }
  0x64   : > { %p6651_p0 = scmp.ne.s32.totalorder %s6644_s28, %s6650_s29  ;;  %p6656_p4 = scmp.lt.s32.totalorder %s6654_s21, %s6650_s29 }
  0x66   : > { %p6652_p1 = pnand %p6651_p0, %p7042_p2 }
  0x68   : > { %p6653_p3 = pneg %p6652_p1 }
  0x6a   : > { %p6658_p5 = pnand %p6656_p4, %p6653_p3 }
  0x6c   : > { %6661 = shalt.err (!%p6658_p5)
}
  0x6d   : > { %s6799_s18 = smov 128   ;;  %s6800_s13 = smov 8  }
  0x6e   : > { %663 = dma.hbm_to_vmem [thread:$0]  (%p7042_p2), %s7054_s24, %s4747_s26, %s658_s15, %s7039_s23, %s6799_s18, %s6799_s18, %s6800_s13  }
  0x6f PF: > { %669 = sbr.rel (%p6953_p11) target bundleno = 1644 (0x66c), region = 96  ;;  %s671_s17 = sand.u32 (!%p6953_p11), 1, %s6741_s30  }
  0x70   : > { %s7082_s19 = smul.u32 (!%p6953_p11), 104, %s671_s17  ;;  %s672_s22 = scalar_lea.sflag (!%p6953_p11), [#allocation3], %s671_s17 }
  0x72   : > { %s7085_s14 = scalar_lea.vmem (!%p6953_p11), [#allocation2], %s7082_s19 }
  0x74   : > { %6712 = dma.done.wait (%p6944_p8), %s672_s22, 1664  }
  0x75   : > { %6714 = vsyncadd (%p6944_p8), %s672_s22, 4294965632  ;;  %p7750_p5 = scmp.eq.s32.totalorder %s6920_s1, 0 }
  0x77   : > { %6716 = dma.done.wait (%p7750_p5), [#allocation5], 8192   ;;  %p7751_p2 = pmov %p7750_p5 }
  0x79   : > { %6718 = vsyncadd (%p7751_p2), [#allocation5], 4294959104  ;;  %p7752_p11 = pmov %p7751_p2 }
  0x7a   : > { %p7753_p6 = pmov %p7751_p2 }
  0x7b   : > { %6720 = dma.done.wait (%p7752_p11), [#allocation8], 8192  }
  0x7c   : > { %6722 = vsyncadd (%p7753_p6), [#allocation8], 4294959104  ;;  %p7754_p7 = pmov %p7751_p2 }
  0x7d   : > { %p7755_p9 = pmov %p7751_p2 }
  0x7e   : > { %6724 = dma.done.wait (%p7754_p7), [#allocation11], 8192  }
  0x7f   : > { %6726 = vsyncadd (%p7755_p9), [#allocation11], 4294959104  ;;  %p7756_p8 = pmov %p7751_p2 }
  0x80   : > { %p7757_p12 = pmov %p7751_p2 }
  0x81   : > { %6728 = dma.done.wait (%p7756_p8), [#allocation14], 8192  }
  0x82   : > { %6730 = vsyncadd (%p7757_p12), [#allocation14], 4294959104  ;;  %p7758_p13 = pmov %p7751_p2 }
  0x83   : > { %p7759_p0 = pmov %p7751_p2 }
  0x84   : > { %6732 = dma.done.wait (%p7758_p13), [#allocation17], 2048  }
  0x85   : > { %6734 = vsyncadd (%p7759_p0), [#allocation17], 4294965248  ;;  %v4872_v0 = vld [vmem:[#allocation4 + $0xe0] sm:$0xf]  ;;  %v5889_v1 = vld [vmem:[#allocation4 + $0xec] sm:$0xf0] }
  0x86   : > { %v5887_v2 = vld [vmem:[#allocation4 + $0xe4] sm:$0xf]  ;;  %v4873_v3 = vor.u32 %v5889_v1, %v4872_v0  ;;  %v4874_v4 = vld [vmem:[#allocation4 + $0xf0] sm:$0xf0]  ;;  %v4856_v5 = vld [vmem:[#allocation4 + $0xc0] sm:$0xf] }
  0x87   : > { %v5885_v6 = vld [vmem:[#allocation4 + $0xcc] sm:$0xf0]  ;;  %v4877_v7 = vor.u32 %v5887_v2, %v4874_v4  ;;  %v5883_v8 = vld [vmem:[#allocation4 + $0xc4] sm:$0xf]  ;;  %v4858_v9 = vld [vmem:[#allocation4 + $0xd0] sm:$0xf0] }
  0x88   : > { %1006 = vmatpush.bf16.msra.mxu0 %v4873_v3  ;;  %6132 = vmatpush.bf16.msra.mxu2 %v4873_v3  ;;  %v4857_v10 = vor.u32 %v5885_v6, %v4856_v5  ;;  %v4861_v11 = vor.u32 %v5883_v8, %v4858_v9  ;;  %v4840_v12 = vld [vmem:[#allocation4 + $0xa0] sm:$0xf]  ;;  %v5881_v13 = vld [vmem:[#allocation4 + $0xac] sm:$0xf0]  ;;  %v5879_v14 = vld [vmem:[#allocation4 + $0xa4] sm:$0xf] }
  0x89   : > { %1049 = vmatpush.bf16.msra.mxu1 %v4877_v7  ;;  %6140 = vmatpush.bf16.msra.mxu3 %v4877_v7  ;;  %v4842_v15 = vld [vmem:[#allocation4 + $0xb0] sm:$0xf0]  ;;  %v4841_v16 = vor.u32 %v5881_v13, %v4840_v12  ;;  %v4824_v18 = vld [vmem:[#allocation4 + $0x80] sm:$0xf]  ;;  %v5877_v19 = vld [vmem:[#allocation4 + $0x8c] sm:$0xf0] }
  0x8a   : > { %v4845_v17 = vor.u32 %v5879_v14, %v4842_v15  ;;  %v5875_v20 = vld [vmem:[#allocation4 + $0x84] sm:$0xf]  ;;  %v4826_v21 = vld [vmem:[#allocation4 + $0x90] sm:$0xf0]  ;;  %v4825_v22 = vor.u32 %v5877_v19, %v4824_v18  ;;  %v4808_v24 = vld [vmem:[#allocation4 + $0x60] sm:$0xf] }
  0x8b   : > { %v4829_v23 = vor.u32 %v5875_v20, %v4826_v21  ;;  %v5873_v25 = vld [vmem:[#allocation4 + $0x6c] sm:$0xf0]  ;;  %v5871_v26 = vld [vmem:[#allocation4 + $0x64] sm:$0xf]  ;;  %v4810_v27 = vld [vmem:[#allocation4 + $0x70] sm:$0xf0] }
  0x8c   : > { %1007 = vmatpush.bf16.msra.mxu0 %v4857_v10  ;;  %6133 = vmatpush.bf16.msra.mxu2 %v4857_v10  ;;  %v4809_v28 = vor.u32 %v5873_v25, %v4808_v24  ;;  %v4813_v29 = vor.u32 %v5871_v26, %v4810_v27  ;;  %v4792_v30 = vld [vmem:[#allocation4 + $0x40] sm:$0xf]  ;;  %v5869_v31 = vld [vmem:[#allocation4 + $0x4c] sm:$0xf0]  ;;  %v5867_v32 = vld [vmem:[#allocation4 + $0x44] sm:$0xf] }
  0x8d   : > { %1050 = vmatpush.bf16.msra.mxu1 %v4861_v11  ;;  %6141 = vmatpush.bf16.msra.mxu3 %v4861_v11  ;;  %v4794_v33 = vld [vmem:[#allocation4 + $0x50] sm:$0xf0]  ;;  %v4793_v34 = vor.u32 %v5869_v31, %v4792_v30  ;;  %v4776_v36 = vld [vmem:[#allocation4 + $0x20] sm:$0xf]  ;;  %v5865_v37 = vld [vmem:[#allocation4 + $0x2c] sm:$0xf0] }
  0x8e   : > { %v4797_v35 = vor.u32 %v5867_v32, %v4794_v33  ;;  %v5863_v38 = vld [vmem:[#allocation4 + $0x24] sm:$0xf]  ;;  %v4778_v39 = vld [vmem:[#allocation4 + $0x30] sm:$0xf0]  ;;  %v4777_v40 = vor.u32 %v5865_v37, %v4776_v36  ;;  %v4760_v42 = vld [vmem:[#allocation4] sm:$0xf] }
  0x8f   : > { %v4781_v41 = vor.u32 %v5863_v38, %v4778_v39  ;;  %v5861_v43 = vld [vmem:[#allocation4 + $0xc] sm:$0xf0]  ;;  %v5859_v44 = vld [vmem:[#allocation4 + $0x4] sm:$0xf]  ;;  %v4762_v45 = vld [vmem:[#allocation4 + $0x10] sm:$0xf0] }
  0x90   : > { %1008 = vmatpush.bf16.msra.mxu0 %v4841_v16  ;;  %6134 = vmatpush.bf16.msra.mxu2 %v4841_v16  ;;  %v794_v46 = vld [vmem:[%s7085_s14] sm:$0xff]  ;;  %v4880_v47 = vld [vmem:[#allocation4 + $0xe8] sm:$0xf]  ;;  %v5888_v49 = vld [vmem:[#allocation4 + $0xec] sm:$0xf]  ;;  %v4761_v51 = vor.u32 %v5861_v43, %v4760_v42  ;;  %v4765_v55 = vor.u32 %v5859_v44, %v4762_v45  ;;  %s7760_s5 = sld [smem:[#allocation33_spill]] }
  0x91   : > { %1051 = vmatpush.bf16.msra.mxu1 %v4845_v17  ;;  %6142 = vmatpush.bf16.msra.mxu3 %v4845_v17  ;;  %v5890_v48 = vld [vmem:[#allocation4 + $0xf4] sm:$0xf0]  ;;  %v4882_v50 = vld [vmem:[#allocation4 + $0xf8] sm:$0xf0]  ;;  %v4864_v58 = vld [vmem:[#allocation4 + $0xc8] sm:$0xf] }
  0x92   : > { %v795_v52 = vld [vmem:[%s7085_s14 + $0x8] sm:$0xff]  ;;  %v802_v53 = vld [vmem:[%s7085_s14 + $0x40] sm:$0xff]  ;;  %v4881_v56 = vor.u32 %v5890_v48, %v4880_v47  ;;  %v4885_v57 = vor.u32 %v5888_v49, %v4882_v50  ;;  %v5884_v62 = vld [vmem:[#allocation4 + $0xcc] sm:$0xf]  ;;  %s7761_s0 = sld [smem:[#allocation34_spill]]  ;;  %s7588_s26 = scalar_lea.vmem [#allocation18], %s7082_s19  }
  0x93   : > { %v803_v54 = vld [vmem:[%s7085_s14 + $0x48] sm:$0xff]  ;;  %v7115_v59 = vpack.c.bf16 %v795_v52, %v794_v46  ;;  %v4848_v2 = vld [vmem:[#allocation4 + $0xa8] sm:$0xf]  ;;  %v5880_v4 = vld [vmem:[#allocation4 + $0xac] sm:$0xf]  ;;  %s7762_s13 = sld [smem:[#allocation35_spill]] }
  0x94   : > { %1009 = vmatpush.bf16.msra.mxu0 %v4825_v22  ;;  %6135 = vmatpush.bf16.msra.mxu2 %v4825_v22  ;;  %v7117_v60 = vpack.c.bf16 %v803_v54, %v802_v53  ;;  %v5886_v61 = vld [vmem:[#allocation4 + $0xd4] sm:$0xf0]  ;;  %v4866_v63 = vld [vmem:[#allocation4 + $0xd8] sm:$0xf0]  ;;  %v4832_v8 = vld [vmem:[#allocation4 + $0x88] sm:$0xf] }
  0x95   : > { %1052 = vmatpush.bf16.msra.mxu1 %v4829_v23  ;;  %6143 = vmatpush.bf16.msra.mxu3 %v4829_v23  ;;  %v4865_v0 = vor.u32 %v5886_v61, %v4864_v58  ;;  %v4869_v1 = vor.u32 %v5884_v62, %v4866_v63  ;;  %v5882_v3 = vld [vmem:[#allocation4 + $0xb4] sm:$0xf0]  ;;  %v4850_v5 = vld [vmem:[#allocation4 + $0xb8] sm:$0xf0]  ;;  %v5876_v10 = vld [vmem:[#allocation4 + $0x8c] sm:$0xf] }
  0x96   : > { %v4849_v6 = vor.u32 %v5882_v3, %v4848_v2  ;;  %v4853_v7 = vor.u32 %v5880_v4, %v4850_v5  ;;  %v5878_v9 = vld [vmem:[#allocation4 + $0x94] sm:$0xf0]  ;;  %v4834_v11 = vld [vmem:[#allocation4 + $0x98] sm:$0xf0]  ;;  %v796_v12 = vld [vmem:[%s7085_s14 + $0x10] sm:$0xff]  ;;  %s7764_s2 = sld [smem:[#allocation37_spill]] }
  0x97   : > { %v4833_v13 = vor.u32 %v5878_v9, %v4832_v8  ;;  %v4837_v14 = vor.u32 %v5876_v10, %v4834_v11  ;;  %v4816_v15 = vld [vmem:[#allocation4 + $0x68] sm:$0xf]  ;;  %v5874_v16 = vld [vmem:[#allocation4 + $0x74] sm:$0xf0]  ;;  %v5872_v17 = vld [vmem:[#allocation4 + $0x6c] sm:$0xf] }
  0x98   : > { %1010 = vmatpush.bf16.msra.mxu0 %v4809_v28  ;;  %6136 = vmatpush.bf16.msra.mxu2 %v4809_v28  ;;  %v4818_v18 = vld [vmem:[#allocation4 + $0x78] sm:$0xf0]  ;;  %v797_v19 = vld [vmem:[%s7085_s14 + $0x18] sm:$0xff]  ;;  %v804_v20 = vld [vmem:[%s7085_s14 + $0x50] sm:$0xff]  ;;  %v4817_v22 = vor.u32 %v5874_v16, %v4816_v15  ;;  %s7765_s15 = sld [smem:[#allocation38_spill]]  ;;  %s4375_s24 = smul.u32 (%p6949_p10), 13, %s6920_s1 }
  0x99   : > { %1053 = vmatpush.bf16.msra.mxu1 %v4813_v29  ;;  %6144 = vmatpush.bf16.msra.mxu3 %v4813_v29  ;;  %v805_v21 = vld [vmem:[%s7085_s14 + $0x58] sm:$0xff]  ;;  %v4821_v23 = vor.u32 %v5872_v17, %v4818_v18  ;;  %v7127_v25 = vpack.c.bf16 %v797_v19, %v796_v12  ;;  %v5870_v27 = vld [vmem:[#allocation4 + $0x54] sm:$0xf0]  ;;  %v4802_v29 = vld [vmem:[#allocation4 + $0x58] sm:$0xf0]  ;;  %s7767_s21 = sld [smem:[#allocation39_spill]] (%p6949_p10) }
  0x9a   : > { %v4800_v24 = vld [vmem:[#allocation4 + $0x48] sm:$0xf]  ;;  %v7129_v26 = vpack.c.bf16 %v805_v21, %v804_v20  ;;  %v5868_v28 = vld [vmem:[#allocation4 + $0x4c] sm:$0xf]  ;;  %v5866_v33 = vld [vmem:[#allocation4 + $0x34] sm:$0xf0] }
  0x9b   : > { %v4801_v30 = vor.u32 %v5870_v27, %v4800_v24  ;;  %v4805_v31 = vor.u32 %v5868_v28, %v4802_v29  ;;  %v4784_v32 = vld [vmem:[#allocation4 + $0x28] sm:$0xf]  ;;  %v5862_v39 = vld [vmem:[#allocation4 + $0x14] sm:$0xf0]  ;;  %v5905_v42 = vld [vmem:[#allocation6 + $0x74] sm:$0xf] }
  0x9c   : > { %1011 = vmatpush.bf16.msra.mxu0 %v4793_v34  ;;  %6137 = vmatpush.bf16.msra.mxu2 %v4793_v34  ;;  %v5864_v34 = vld [vmem:[#allocation4 + $0x2c] sm:$0xf]  ;;  %v4785_v36 = vor.u32 %v5866_v33, %v4784_v32  ;;  %v4768_v38 = vld [vmem:[#allocation4 + $0x8] sm:$0xf]  ;;  %v4946_v43 = vld [vmem:[#allocation6 + $0x78] sm:$0xf0] }
  0x9d   : > { %1054 = vmatpush.bf16.msra.mxu1 %v4797_v35  ;;  %6145 = vmatpush.bf16.msra.mxu3 %v4797_v35  ;;  %v4786_v35 = vld [vmem:[#allocation4 + $0x38] sm:$0xf0]  ;;  %v5921_v44 = vld [vmem:[#allocation6 + $0xf4] sm:$0xf]  ;;  %v4769_v46 = vor.u32 %v5862_v39, %v4768_v38  ;;  %v4949_v48 = vor.u32 %v5905_v42, %v4946_v43  ;;  %v5903_v53 = vld [vmem:[#allocation6 + $0x64] sm:$0xf] }
  0x9e   : > { %v4789_v37 = vor.u32 %v5864_v34, %v4786_v35  ;;  %v5010_v45 = vld [vmem:[#allocation6 + $0xf8] sm:$0xf0]  ;;  %v4938_v54 = vld [vmem:[#allocation6 + $0x68] sm:$0xf0]  ;;  %v5919_v58 = vld [vmem:[#allocation6 + $0xe4] sm:$0xf] }
  0x9f   : > { %v5013_v49 = vor.u32 %v5921_v44, %v5010_v45  ;;  %v798_v50 = vld [vmem:[%s7085_s14 + $0x20] sm:$0xff]  ;;  %v5002_v61 = vld [vmem:[#allocation6 + $0xe8] sm:$0xf0]  ;;  %v5899_v8 = vld [vmem:[#allocation6 + $0x44] sm:$0xf]  ;;  %s4376_s28 = ssub.s32 (%p6949_p10), 25, %s4375_s24 }
  0xa0   : > { %1012 = vmatpush.bf16.msra.mxu0 %v4777_v40  ;;  %6138 = vmatpush.bf16.msra.mxu2 %v4777_v40  ;;  %v5860_v40 = vld [vmem:[#allocation4 + $0xc] sm:$0xf]  ;;  %v806_v52 = vld [vmem:[%s7085_s14 + $0x60] sm:$0xff]  ;;  %v5005_v63 = vor.u32 %v5919_v58, %v5002_v61  ;;  %v5915_v10 = vld [vmem:[#allocation6 + $0xc4] sm:$0xf]  ;;  %p4377_p1 = scmp.lt.s32.totalorder (%p6949_p10), %s4376_s28, 13 }
  0xa1   : > { %1055 = vmatpush.bf16.msra.mxu1 %v4781_v41  ;;  %6146 = vmatpush.bf16.msra.mxu3 %v4781_v41  ;;  %v4770_v41 = vld [vmem:[#allocation4 + $0x18] sm:$0xf0]  ;;  %v5901_v62 = vld [vmem:[#allocation6 + $0x54] sm:$0xf]  ;;  %v800_v5 = vld [vmem:[%s7085_s14 + $0x30] sm:$0xff] }
  0xa2   : > { %v4773_v47 = vor.u32 %v5860_v40, %v4770_v41  ;;  %v4994_v2 = vld [vmem:[#allocation6 + $0xd8] sm:$0xf0]  ;;  %v4922_v9 = vld [vmem:[#allocation6 + $0x48] sm:$0xf0]  ;;  %v5906_v15 = vld [vmem:[#allocation6 + $0x74] sm:$0xf0] }
  0xa3   : > { %v4925_v11 = vor.u32 %v5899_v8, %v4922_v9  ;;  %v4986_v12 = vld [vmem:[#allocation6 + $0xc8] sm:$0xf0]  ;;  %v5008_v16 = vld [vmem:[#allocation6 + $0xf0] sm:$0xf]  ;;  %v5922_v18 = vld [vmem:[#allocation6 + $0xf4] sm:$0xf0] }
  0xa4   : > { %1013 = vmatpush.bf16.msra.mxu0 %v4761_v51  ;;  %6139 = vmatpush.bf16.msra.mxu2 %v4761_v51  ;;  %v799_v51 = vld [vmem:[%s7085_s14 + $0x28] sm:$0xff]  ;;  %v5897_v19 = vld [vmem:[#allocation6 + $0x34] sm:$0xf]  ;;  %v5904_v28 = vld [vmem:[#allocation6 + $0x64] sm:$0xf0] }
  0xa5   : > { %1056 = vmatpush.bf16.msra.mxu1 %v4765_v55  ;;  %6147 = vmatpush.bf16.msra.mxu3 %v4765_v55  ;;  %v7138_v55 = vpack.c.bf16 %v799_v51, %v798_v50  ;;  %v4914_v20 = vld [vmem:[#allocation6 + $0x38] sm:$0xf0]  ;;  %v4936_v24 = vld [vmem:[#allocation6 + $0x60] sm:$0xf]  ;;  %v4928_v32 = vld [vmem:[#allocation6 + $0x50] sm:$0xf] }
  0xa6   : > { %v4917_v21 = vor.u32 %v5897_v19, %v4914_v20  ;;  %v5000_v29 = vld [vmem:[#allocation6 + $0xe0] sm:$0xf]  ;;  %v5902_v33 = vld [vmem:[#allocation6 + $0x54] sm:$0xf0]  ;;  %v4992_v34 = vld [vmem:[#allocation6 + $0xd0] sm:$0xf] }
  0xa7   : > { %1014 = vmatmul.bf16.vlgmr.msra.gmra.mxu0 %v7115_v59  ;;  %1034 = vmatmul.bf16.vlgmr.msra.gmra.mxu2 %v7117_v60  ;;  %v4929_v35 = vor.u32 %v5902_v33, %v4928_v32  ;;  %v4906_v38 = vld [vmem:[#allocation6 + $0x28] sm:$0xf0]  ;;  %v5911_v41 = vld [vmem:[#allocation6 + $0xa4] sm:$0xf]  ;;  %v4920_v43 = vld [vmem:[#allocation6 + $0x40] sm:$0xf] }
  0xa8   : > { %1092 = vmatpush.bf16.msrb.mxu2 %v4881_v56  ;;  %1057 = vmatmul.bf16.vlgmr.msra.gmra.mxu1 %v7115_v59  ;;  %v7140_v56 = vpack.c.bf16 %v806_v52, %v806_v52  ;;  %v4970_v42 = vld [vmem:[#allocation6 + $0xa8] sm:$0xf0]  ;;  %v5900_v45 = vld [vmem:[#allocation6 + $0x44] sm:$0xf0]  ;;  %v4912_v50 = vld [vmem:[#allocation6 + $0x30] sm:$0xf] }
  0xa9   : > { %1135 = vmatpush.bf16.msrb.mxu3 %v4885_v57  ;;  %v4941_v57 = vor.u32 %v5903_v53, %v4938_v54  ;;  %v4973_v44 = vor.u32 %v5911_v41, %v4970_v42  ;;  %v5898_v51 = vld [vmem:[#allocation6 + $0x34] sm:$0xf0]  ;;  %v4976_v52 = vld [vmem:[#allocation6 + $0xb0] sm:$0xf]  ;;  %v5896_v58 = vld [vmem:[#allocation6 + $0x24] sm:$0xf0] }
  0xaa   : > { %1077 = vmatmul.bf16.vlgmr.msra.gmra.mxu3 %v7117_v60  ;;  %v4913_v53 = vor.u32 %v5898_v51, %v4912_v50  ;;  %v5914_v54 = vld [vmem:[#allocation6 + $0xb4] sm:$0xf0]  ;;  %v4968_v61 = vld [vmem:[#allocation6 + $0xa0] sm:$0xf]  ;;  %v5893_v8 = vld [vmem:[#allocation6 + $0x14] sm:$0xf] }
  0xab   : > { %v4898_v9 = vld [vmem:[#allocation6 + $0x18] sm:$0xf0]  ;;  %v5891_v19 = vld [vmem:[#allocation6 + $0x4] sm:$0xf]  ;;  %v4890_v20 = vld [vmem:[#allocation6 + $0x8] sm:$0xf0] }
  0xac   : > { %1093 = vmatpush.bf16.msrb.mxu2 %v4865_v0  ;;  %v4930_v0 = vld [vmem:[#allocation6 + $0x58] sm:$0xf0] }
  0xad   : > { %1136 = vmatpush.bf16.msrb.mxu3 %v4869_v1  ;;  %v5917_v1 = vld [vmem:[#allocation6 + $0xd4] sm:$0xf]  ;;  %v4933_v3 = vor.u32 %v5901_v62, %v4930_v0 }
  0xae   : > { %v4997_v4 = vor.u32 %v5917_v1, %v4994_v2  ;;  %v4896_v1 = vld [vmem:[#allocation6 + $0x10] sm:$0xf]  ;;  %v5894_v2 = vld [vmem:[#allocation6 + $0x14] sm:$0xf0] }
  0xb0   : > { %1094 = vmatpush.bf16.msrb.mxu2 %v4849_v6  ;;  %v801_v6 = vld [vmem:[%s7085_s14 + $0x38] sm:$0xff]  ;;  %s7763_s14 = sld [smem:[#allocation36_spill]] }
  0xb1   : > { %1137 = vmatpush.bf16.msrb.mxu3 %v4853_v7  ;;  %v7148_v7 = vpack.c.bf16 %v801_v6, %v800_v5  ;;  %v5910_v5 = vld [vmem:[#allocation6 + $0x94] sm:$0xf0] }
  0xb4   : > { %1095 = vmatpush.bf16.msrb.mxu2 %v4833_v13  ;;  %v4989_v13 = vor.u32 %v5915_v10, %v4986_v12  ;;  %v4888_v10 = vld [vmem:[#allocation6] sm:$0xf]  ;;  %v5892_v12 = vld [vmem:[#allocation6 + $0x4] sm:$0xf0] }
  0xb5   : > { %1138 = vmatpush.bf16.msrb.mxu3 %v4837_v14  ;;  %v4944_v14 = vld [vmem:[#allocation6 + $0x70] sm:$0xf] }
  0xb6   : > { %v4945_v17 = vor.u32 %v5906_v15, %v4944_v14  ;;  %v5908_v14 = vld [vmem:[#allocation6 + $0x84] sm:$0xf0]  ;;  %v5909_v15 = vld [vmem:[#allocation6 + $0x94] sm:$0xf] }
  0xb7   : > { %1019 = vmatmul.bf16.gmra.mxu0 %v7127_v25  ;;  %1039 = vmatmul.bf16.gmra.mxu2 %v7129_v26 }
  0xb8   : > { %1096 = vmatpush.bf16.msrb.mxu2 %v4817_v22  ;;  %1062 = vmatmul.bf16.gmra.mxu1 %v7127_v25  ;;  %v5913_v22 = vld [vmem:[#allocation6 + $0xb4] sm:$0xf] }
  0xb9   : > { %1139 = vmatpush.bf16.msrb.mxu3 %v4821_v23  ;;  %v4978_v23 = vld [vmem:[#allocation6 + $0xb8] sm:$0xf0]  ;;  %1446 = vmatpush.bf16.msrb.mxu0 %v4945_v17 }
  0xba   : > { %1082 = vmatmul.bf16.gmra.mxu3 %v7129_v26  ;;  %v4981_v27 = vor.u32 %v5913_v22, %v4978_v23  ;;  %v4954_v22 = vld [vmem:[#allocation6 + $0x88] sm:$0xf0] }
  0xbc   : > { %1097 = vmatpush.bf16.msrb.mxu2 %v4801_v30  ;;  %v5920_v30 = vld [vmem:[#allocation6 + $0xe4] sm:$0xf0] }
  0xbd   : > { %1140 = vmatpush.bf16.msrb.mxu3 %v4805_v31  ;;  %v5001_v31 = vor.u32 %v5920_v30, %v5000_v29 }
  0xc0   : > { %1098 = vmatpush.bf16.msrb.mxu2 %v4785_v36  ;;  %v5918_v36 = vld [vmem:[#allocation6 + $0xd4] sm:$0xf0] }
  0xc1   : > { %1141 = vmatpush.bf16.msrb.mxu3 %v4789_v37  ;;  %v5895_v37 = vld [vmem:[#allocation6 + $0x24] sm:$0xf]  ;;  %v4993_v39 = vor.u32 %v5918_v36, %v4992_v34 }
  0xc2   : > { %v4909_v40 = vor.u32 %v5895_v37, %v4906_v38 }
  0xc4   : > { %1099 = vmatpush.bf16.msrb.mxu2 %v4769_v46  ;;  %v4984_v46 = vld [vmem:[#allocation6 + $0xc0] sm:$0xf] }
  0xc5   : > { %1142 = vmatpush.bf16.msrb.mxu3 %v4773_v47  ;;  %v5916_v47 = vld [vmem:[#allocation6 + $0xc4] sm:$0xf0] }
  0xc7   : > { %1024 = vmatmul.bf16.gmra.mxu0 %v7138_v55  ;;  %1044 = vmatmul.bf16.gmra.mxu2 %v7140_v56 }
  0xc8   : > { %1532 = vmatpush.bf16.msra.mxu2 %v4949_v48  ;;  %1067 = vmatmul.bf16.gmra.mxu1 %v7138_v55  ;;  %v4921_v48 = vor.u32 %v5900_v45, %v4920_v43 }
  0xc9   : > { %1575 = vmatpush.bf16.msra.mxu3 %v5013_v49  ;;  %v4985_v49 = vor.u32 %v5916_v47, %v4984_v46 }
  0xca   : > { %1087 = vmatmul.bf16.gmra.mxu3 %v7140_v56 }
  0xcc   : > { %1533 = vmatpush.bf16.msra.mxu2 %v4941_v57  ;;  %v4904_v57 = vld [vmem:[#allocation6 + $0x20] sm:$0xf] }
  0xcd   : > { %1576 = vmatpush.bf16.msra.mxu3 %v5005_v63  ;;  %v4905_v62 = vor.u32 %v5896_v58, %v4904_v57  ;;  %v5912_v63 = vld [vmem:[#allocation6 + $0xa4] sm:$0xf0] }
  0xce   : > { %v4969_v0 = vor.u32 %v5912_v63, %v4968_v61 }
  0xd0   : > { %1534 = vmatpush.bf16.msra.mxu2 %v4933_v3  ;;  %v4960_v3 = vld [vmem:[#allocation6 + $0x90] sm:$0xf] }
  0xd1   : > { %1577 = vmatpush.bf16.msra.mxu3 %v4997_v4  ;;  %v4897_v4 = vor.u32 %v5894_v2, %v4896_v1  ;;  %v4961_v6 = vor.u32 %v5910_v5, %v4960_v3 }
  0xd4   : > { %1535 = vmatpush.bf16.msra.mxu2 %v4925_v11  ;;  %v4901_v11 = vor.u32 %v5893_v8, %v4898_v9 }
  0xd5   : > { %1578 = vmatpush.bf16.msra.mxu3 %v4989_v13  ;;  %v4952_v13 = vld [vmem:[#allocation6 + $0x80] sm:$0xf] }
  0xd6   : > { %v4953_v17 = vor.u32 %v5908_v14, %v4952_v13 }
  0xd7   : > { %1029 = vmatmul.bf16.gmra.mxu0 %v7148_v7  ;;  %1100 = vmatmul.bf16.vlgmr.msrb.gmra.mxu2 %v7115_v59 }
  0xd8   : > { %1072 = vmatmul.bf16.gmra.mxu1 %v7148_v7  ;;  %1536 = vmatpush.bf16.msra.mxu2 %v4917_v21  ;;  %v5907_v21 = vld [vmem:[#allocation6 + $0x84] sm:$0xf] }
  0xd9   : > { %1579 = vmatpush.bf16.msra.mxu3 %v4981_v27  ;;  %v4957_v23 = vor.u32 %v5907_v21, %v4954_v22  ;;  %v5074_v21 = vld [vmem:[#allocation7 + $0x78] sm:$0xf0] }
  0xda   : > { %1143 = vmatmul.bf16.vlgmr.msrb.gmra.mxu3 %v7115_v59  ;;  %v5009_v59 = vor.u32 %v5922_v18, %v5008_v16  ;;  %v4889_v16 = vor.u32 %v5892_v12, %v4888_v10 }
  0xdc   : > { %1489 = vmatpush.bf16.msrb.mxu1 %v5009_v59  ;;  %1537 = vmatpush.bf16.msra.mxu2 %v4909_v40  ;;  %v4893_v59 = vor.u32 %v5891_v19, %v4890_v20 }
  0xdd   : > { %1580 = vmatpush.bf16.msra.mxu3 %v4973_v44 }
  0xe0   : > { %1490 = vmatpush.bf16.msrb.mxu1 %v5001_v31  ;;  %1538 = vmatpush.bf16.msra.mxu2 %v4901_v11 }
  0xe4   : > { %1491 = vmatpush.bf16.msrb.mxu1 %v4993_v39  ;;  %1539 = vmatpush.bf16.msra.mxu2 %v4893_v59  ;;  %v5937_v59 = vld [vmem:[#allocation7 + $0x74] sm:$0xf] }
  0xe7   : > { %1105 = vmatmul.bf16.gmra.mxu2 %v7127_v25 }
  0xe8   : > { %1492 = vmatpush.bf16.msrb.mxu1 %v4985_v49 }
  0xea   : > { %1148 = vmatmul.bf16.gmra.mxu3 %v7127_v25  ;;  %v4937_v25 = vor.u32 %v5904_v28, %v4936_v24  ;;  %v785_v24 = vld [vmem:[%s7709_s10] sm:$0x3] }
  0xeb   : > { %v7165_v29 = vperm.slane %v785_v24, 1  ;;  %v7167_v30 = vperm.slane %v785_v24, 0  ;;  %v5077_v24 = vor.u32 %v5937_v59, %v5074_v21 }
  0xec   : > { %1447 = vmatpush.bf16.msrb.mxu0 %v4937_v25 }
  0xed   : > { %1941 = vmatpush.bf16.msrb.mxu2 %v5077_v24  ;;  %v5058_v24 = vld [vmem:[#allocation7 + $0x58] sm:$0xf0] }
  0xf0   : > { %1448 = vmatpush.bf16.msrb.mxu0 %v4929_v35 }
  0xf4   : > { %1449 = vmatpush.bf16.msrb.mxu0 %v4921_v48 }
  0xf7   : > { %1110 = vmatmul.bf16.gmra.mxu2 %v7138_v55 }
  0xf8   : > { %1450 = vmatpush.bf16.msrb.mxu0 %v4913_v53 }
  0xfa   : > { %1153 = vmatmul.bf16.gmra.mxu3 %v7138_v55  ;;  %v4977_v55 = vor.u32 %v5914_v54, %v4976_v52 }
  0xfc   : > { %1493 = vmatpush.bf16.msrb.mxu1 %v4977_v55  ;;  %1451 = vmatpush.bf16.msrb.mxu0 %v4905_v62 }
 0x100   : > { %1494 = vmatpush.bf16.msrb.mxu1 %v4969_v0  ;;  %1452 = vmatpush.bf16.msrb.mxu0 %v4897_v4 }
 0x104   : > { %1495 = vmatpush.bf16.msrb.mxu1 %v4961_v6  ;;  %1453 = vmatpush.bf16.msrb.mxu0 %v4889_v16 }
 0x107   : > { %1115 = vmatmul.bf16.gmra.mxu2 %v7148_v7 }
 0x108   : > { %1496 = vmatpush.bf16.msrb.mxu1 %v4953_v17 }
 0x10a   : > { %1158 = vmatmul.bf16.gmra.mxu3 %v7148_v7  ;;  %v4962_v7 = vld [vmem:[#allocation6 + $0x98] sm:$0xf0] }
 0x10b   : > { %v4965_v18 = vor.u32 %v5909_v15, %v4962_v7 }
 0x10d   : > { %1581 = vmatpush.bf16.msra.mxu3 %v4965_v18 }
 0x111   : > { %1582 = vmatpush.bf16.msra.mxu3 %v4957_v23 }
 0x117   : > { %1120 = vmatmul.bf16.gmra.mxu2 %v7117_v60 }
 0x11a   : > { %1163 = vmatmul.bf16.gmra.mxu3 %v7117_v60 }
 0x124   : > { %v1015_v27 = vpop.f32.mrf.mxu0 }
 0x125   : > { %v1058_v28 = vpop.f32.mrf.mxu1  ;;  %v1183_v60 = vadd.f32 %v7167_v30, %v1015_v27 }
 0x126   : > { %v1184_v25 = vadd.f32 %v7165_v29, %v1058_v28 }
 0x127   : > { %1125 = vmatmul.bf16.gmra.mxu2 %v7129_v26  ;;  %v1209_v36 = vmax.f32 %v1183_v60, 0.0 }
 0x128   : > { %v1210_v39 = vmax.f32 %v1184_v25, 0.0 }
 0x12a   : > { %1168 = vmatmul.bf16.gmra.mxu3 %v7129_v26  ;;  %v1035_v31 = vpop.f32.mrf.mxu2 }
 0x12b   : > { %v1199_v32 = vadd.f32 %v7167_v30, %v1035_v31  ;;  %v5953_v31 = vld [vmem:[#allocation7 + $0xf4] sm:$0xf] }
 0x12c   : > { %v1017_v35 = vpop.f32.mrf.mxu0 }
 0x12d   : > { %v1078_v33 = vpop.f32.mrf.mxu3  ;;  %v1185_v37 = vadd.f32 %v7167_v30, %v1017_v35  ;;  %v1060_v38 = vpop.f32.mrf.mxu1  ;;  %v1225_v49 = vmax.f32 %v1199_v32, 0.0  ;;  %v5138_v32 = vld [vmem:[#allocation7 + $0xf8] sm:$0xf0] }
 0x12e   : > { %v1200_v34 = vadd.f32 %v7165_v29, %v1078_v33  ;;  %v1186_v40 = vadd.f32 %v7165_v29, %v1060_v38  ;;  %v5072_v33 = vld [vmem:[#allocation7 + $0x70] sm:$0xf] }
 0x12f   : > { %v1211_v41 = vmax.f32 %v1185_v37, 0.0  ;;  %v5938_v37 = vld [vmem:[#allocation7 + $0x74] sm:$0xf0]  ;;  %v5136_v38 = vld [vmem:[#allocation7 + $0xf0] sm:$0xf] }
 0x130   : > { %v1212_v26 = vmax.f32 %v1186_v40, 0.0  ;;  %v1226_v52 = vmax.f32 %v1200_v34, 0.0 }
 0x131   : > { %v1235_v42 = vpack.c.bf16 %v1211_v41, %v1209_v36  ;;  %v5141_v36 = vor.u32 %v5953_v31, %v5138_v32  ;;  %v5934_v31 = vld [vmem:[#allocation7 + $0x54] sm:$0xf0] }
 0x132   : > { %v1037_v43 = vpop.f32.mrf.mxu2  ;;  %v1236_v44 = vpack.c.bf16 %v1212_v26, %v1210_v39  ;;  %v5954_v39 = vld [vmem:[#allocation7 + $0xf4] sm:$0xf0] }
 0x133   : > { %v1201_v45 = vadd.f32 %v7167_v30, %v1037_v43  ;;  %1454 = vmatmul.bf16.vlgmr.msrb.gmra.mxu0 %v1235_v42  ;;  %v5137_v43 = vor.u32 %v5954_v39, %v5136_v38  ;;  %1984 = vmatpush.bf16.msrb.mxu3 %v5141_v36  ;;  %v5120_v36 = vld [vmem:[#allocation7 + $0xd0] sm:$0xf] }
 0x134   : > { %1497 = vmatmul.bf16.vlgmr.msrb.gmra.mxu1 %v1236_v44  ;;  %v1020_v48 = vpop.f32.mrf.mxu0 }
 0x135   : > { %v1080_v46 = vpop.f32.mrf.mxu3  ;;  %v1227_v50 = vmax.f32 %v1201_v45, 0.0  ;;  %v1063_v51 = vpop.f32.mrf.mxu1  ;;  %v1187_v57 = vadd.f32 %v7167_v30, %v1020_v48  ;;  %1898 = vmatpush.bf16.msra.mxu1 %v5137_v43 }
 0x136   : > { %v1202_v47 = vadd.f32 %v7165_v29, %v1080_v46  ;;  %v1188_v58 = vadd.f32 %v7165_v29, %v1063_v51 }
 0x137   : > { %1130 = vmatmul.bf16.gmra.mxu2 %v7140_v56  ;;  %v7180_v54 = vpack.c.bf16 %v1227_v50, %v1225_v49  ;;  %v1213_v2 = vmax.f32 %v1187_v57, 0.0  ;;  %v5935_v57 = vld [vmem:[#allocation7 + $0x64] sm:$0xf] }
 0x138   : > { %v1228_v53 = vmax.f32 %v1202_v47, 0.0  ;;  %v1214_v5 = vmax.f32 %v1188_v58, 0.0  ;;  %v5066_v58 = vld [vmem:[#allocation7 + $0x68] sm:$0xf0] }
 0x13a   : > { %1173 = vmatmul.bf16.gmra.mxu3 %v7140_v56  ;;  %v7183_v55 = vpack.c.bf16 %v1228_v53, %v1226_v52  ;;  %v1040_v61 = vpop.f32.mrf.mxu2 }
 0x13b   : > { %v1203_v62 = vadd.f32 %v7167_v30, %v1040_v61 }
 0x13c   : > { %v1022_v1 = vpop.f32.mrf.mxu0 }
 0x13d   : > { %v1083_v63 = vpop.f32.mrf.mxu3  ;;  %v1189_v3 = vadd.f32 %v7167_v30, %v1022_v1  ;;  %v1065_v4 = vpop.f32.mrf.mxu1  ;;  %v1229_v7 = vmax.f32 %v1203_v62, 0.0  ;;  %v5069_v62 = vor.u32 %v5935_v57, %v5066_v58  ;;  %v5929_v57 = vld [vmem:[#allocation7 + $0x34] sm:$0xf]  ;;  %v5042_v58 = vld [vmem:[#allocation7 + $0x38] sm:$0xf0] }
 0x13e   : > { %v1204_v0 = vadd.f32 %v7165_v29, %v1083_v63  ;;  %v1190_v56 = vadd.f32 %v7165_v29, %v1065_v4  ;;  %v5951_v63 = vld [vmem:[#allocation7 + $0xe4] sm:$0xf] }
 0x13f   : > { %v1215_v6 = vmax.f32 %v1189_v3, 0.0  ;;  %1942 = vmatpush.bf16.msrb.mxu2 %v5069_v62 }
 0x140   : > { %v1216_v8 = vmax.f32 %v1190_v56, 0.0  ;;  %v1230_v18 = vmax.f32 %v1204_v0, 0.0  ;;  %v5130_v0 = vld [vmem:[#allocation7 + $0xe8] sm:$0xf0]  ;;  %v5936_v56 = vld [vmem:[#allocation7 + $0x64] sm:$0xf0] }
 0x141   : > { %v1237_v9 = vpack.c.bf16 %v1215_v6, %v1213_v2  ;;  %v5133_v3 = vor.u32 %v5951_v63, %v5130_v0  ;;  %v5128_v6 = vld [vmem:[#allocation7 + $0xe0] sm:$0xf]  ;;  %v5945_v0 = vld [vmem:[#allocation7 + $0xb4] sm:$0xf] }
 0x142   : > { %v1042_v10 = vpop.f32.mrf.mxu2  ;;  %v1238_v11 = vpack.c.bf16 %v1216_v8, %v1214_v5  ;;  %v5064_v5 = vld [vmem:[#allocation7 + $0x60] sm:$0xf] }
 0x143   : > { %v1205_v12 = vadd.f32 %v7167_v30, %v1042_v10  ;;  %1459 = vmatmul.bf16.gmra.mxu0 %v1237_v9  ;;  %1985 = vmatpush.bf16.msrb.mxu3 %v5133_v3  ;;  %v5952_v10 = vld [vmem:[#allocation7 + $0xe4] sm:$0xf0]  ;;  %v5040_v3 = vld [vmem:[#allocation7 + $0x30] sm:$0xf] }
 0x144   : > { %1502 = vmatmul.bf16.gmra.mxu1 %v1238_v11  ;;  %v1025_v15 = vpop.f32.mrf.mxu0 }
 0x145   : > { %v1085_v13 = vpop.f32.mrf.mxu3  ;;  %v1231_v16 = vmax.f32 %v1205_v12, 0.0  ;;  %v1068_v17 = vpop.f32.mrf.mxu1  ;;  %v1191_v23 = vadd.f32 %v7167_v30, %v1025_v15 }
 0x146   : > { %v1206_v14 = vadd.f32 %v7165_v29, %v1085_v13  ;;  %v1192_v27 = vadd.f32 %v7165_v29, %v1068_v17 }
 0x147   : > { %1540 = vmatmul.bf16.vlgmr.msra.gmra.mxu2 %v1235_v42  ;;  %v7193_v20 = vpack.c.bf16 %v1231_v16, %v1229_v7  ;;  %v1217_v40 = vmax.f32 %v1191_v23, 0.0  ;;  %v5073_v42 = vor.u32 %v5938_v37, %v5072_v33  ;;  %v5933_v23 = vld [vmem:[#allocation7 + $0x54] sm:$0xf]  ;;  %v5950_v37 = vld [vmem:[#allocation7 + $0xd4] sm:$0xf0] }
 0x148   : > { %v1232_v19 = vmax.f32 %v1206_v14, 0.0  ;;  %v5129_v14 = vor.u32 %v5952_v10, %v5128_v6  ;;  %v5121_v38 = vor.u32 %v5950_v37, %v5120_v36  ;;  %v5026_v37 = vld [vmem:[#allocation7 + $0x18] sm:$0xf0] }
 0x149   : > { %1855 = vmatpush.bf16.msra.mxu0 %v5073_v42  ;;  %v5947_v42 = vld [vmem:[#allocation7 + $0xc4] sm:$0xf] }
 0x14a   : > { %1583 = vmatmul.bf16.vlgmr.msra.gmra.mxu3 %v1236_v44  ;;  %v7195_v22 = vpack.c.bf16 %v1232_v19, %v1230_v18  ;;  %v1045_v28 = vpop.f32.mrf.mxu2  ;;  %v1218_v44 = vmax.f32 %v1192_v27, 0.0  ;;  %1899 = vmatpush.bf16.msra.mxu1 %v5129_v14  ;;  %v5949_v27 = vld [vmem:[#allocation7 + $0xd4] sm:$0xf]  ;;  %v5034_v14 = vld [vmem:[#allocation7 + $0x28] sm:$0xf0] }
 0x14b   : > { %v7200_v60 = vadd.f32 %v7167_v30, %v1045_v28  ;;  %v5056_v28 = vld [vmem:[#allocation7 + $0x50] sm:$0xf] }
 0x14c   : > { %v1027_v35 = vpop.f32.mrf.mxu0  ;;  %v5057_v33 = vor.u32 %v5934_v31, %v5056_v28  ;;  %v5926_v31 = vld [vmem:[#allocation7 + $0x14] sm:$0xf0] }
 0x14d   : > { %v1088_v25 = vpop.f32.mrf.mxu3  ;;  %v1193_v41 = vadd.f32 %v7167_v30, %v1027_v35  ;;  %v1070_v26 = vpop.f32.mrf.mxu1 }
 0x14e   : > { %v7203_v34 = vadd.f32 %v7165_v29, %v1088_v25  ;;  %v1194_v45 = vadd.f32 %v7165_v29, %v1070_v26  ;;  %1900 = vmatpush.bf16.msra.mxu1 %v5121_v38  ;;  %v5050_v26 = vld [vmem:[#allocation7 + $0x48] sm:$0xf0] }
 0x14f   : > { %v1219_v46 = vmax.f32 %v1193_v41, 0.0  ;;  %v5931_v41 = vld [vmem:[#allocation7 + $0x44] sm:$0xf] }
 0x150   : > { %v1220_v47 = vmax.f32 %v1194_v45, 0.0  ;;  %v5053_v43 = vor.u32 %v5931_v41, %v5050_v26 }
 0x151   : > { %v1239_v48 = vpack.c.bf16 %v1219_v46, %v1217_v40  ;;  %v5048_v46 = vld [vmem:[#allocation7 + $0x40] sm:$0xf] }
 0x152   : > { %v1047_v49 = vpop.f32.mrf.mxu2  ;;  %v1240_v50 = vpack.c.bf16 %v1220_v47, %v1218_v44  ;;  %v5114_v44 = vld [vmem:[#allocation7 + $0xc8] sm:$0xf0]  ;;  %v5932_v47 = vld [vmem:[#allocation7 + $0x44] sm:$0xf0] }
 0x153   : > { %1464 = vmatmul.bf16.gmra.mxu0 %v1239_v48  ;;  %v5117_v45 = vor.u32 %v5947_v42, %v5114_v44  ;;  %v5049_v49 = vor.u32 %v5932_v47, %v5048_v46  ;;  %v5016_v42 = vld [vmem:[#allocation7] sm:$0xf]  ;;  %v5941_v46 = vld [vmem:[#allocation7 + $0x94] sm:$0xf]  ;;  %v5090_v47 = vld [vmem:[#allocation7 + $0x98] sm:$0xf0] }
 0x154   : > { %1507 = vmatmul.bf16.gmra.mxu1 %v1240_v50  ;;  %v1030_v52 = vpop.f32.mrf.mxu0 }
 0x155   : > { %v1090_v51 = vpop.f32.mrf.mxu3  ;;  %v1073_v53 = vpop.f32.mrf.mxu1  ;;  %v1195_v61 = vadd.f32 %v7167_v30, %v1030_v52 }
 0x156   : > { %v1196_v1 = vadd.f32 %v7165_v29, %v1073_v53 }
 0x157   : > { %1545 = vmatmul.bf16.gmra.mxu2 %v1237_v9  ;;  %v5065_v9 = vor.u32 %v5936_v56, %v5064_v5  ;;  %v5930_v56 = vld [vmem:[#allocation7 + $0x34] sm:$0xf0] }
 0x158   : > { %v1222_v15 = vmax.f32 %v1196_v1, 0.0  ;;  %v5106_v1 = vld [vmem:[#allocation7 + $0xb8] sm:$0xf0]  ;;  %v5041_v6 = vor.u32 %v5930_v56, %v5040_v3  ;;  %v5082_v56 = vld [vmem:[#allocation7 + $0x88] sm:$0xf0] }
 0x159   : > { %1856 = vmatpush.bf16.msra.mxu0 %v5065_v9  ;;  %v5109_v5 = vor.u32 %v5945_v0, %v5106_v1  ;;  %v5946_v9 = vld [vmem:[#allocation7 + $0xb4] sm:$0xf0]  ;;  %v786_v1 = vld [vmem:[%s7710_s11] sm:$0x3] }
 0x15a   : > { %1588 = vmatmul.bf16.gmra.mxu3 %v1238_v11  ;;  %v7209_v2 = vpop.f32.mrf.mxu2  ;;  %v1221_v11 = vmax.f32 %v1195_v61, 0.0  ;;  %v5045_v61 = vor.u32 %v5929_v57, %v5042_v58  ;;  %v5942_v57 = vld [vmem:[#allocation7 + $0x94] sm:$0xf0]  ;;  %v7268_v3 = vperm.slane %v786_v1, 0 }
 0x15c   : > { %v1032_v8 = vpop.f32.mrf.mxu0 }
 0x15d   : > { %v7211_v4 = vpop.f32.mrf.mxu3  ;;  %v1197_v12 = vadd.f32 %v7167_v30, %v1032_v8  ;;  %v1075_v13 = vpop.f32.mrf.mxu1  ;;  %v5061_v30 = vor.u32 %v5933_v23, %v5058_v24  ;;  %1857 = vmatpush.bf16.msra.mxu0 %v5057_v33  ;;  %v5104_v8 = vld [vmem:[#allocation7 + $0xb0] sm:$0xf]  ;;  %v5928_v23 = vld [vmem:[#allocation7 + $0x24] sm:$0xf0]  ;;  %v5943_v24 = vld [vmem:[#allocation7 + $0xa4] sm:$0xf] }
 0x15e   : > { %v1198_v7 = vadd.f32 %v7165_v29, %v1075_v13  ;;  %v5122_v29 = vld [vmem:[#allocation7 + $0xd8] sm:$0xf0]  ;;  %v5105_v10 = vor.u32 %v5946_v9, %v5104_v8  ;;  %v5927_v13 = vld [vmem:[#allocation7 + $0x24] sm:$0xf]  ;;  %v5925_v33 = vld [vmem:[#allocation7 + $0x14] sm:$0xf] }
 0x15f   : > { %v1223_v16 = vmax.f32 %v1197_v12, 0.0  ;;  %1943 = vmatpush.bf16.msrb.mxu2 %v5061_v30  ;;  %v5125_v25 = vor.u32 %v5949_v27, %v5122_v29  ;;  %v5098_v30 = vld [vmem:[#allocation7 + $0xa8] sm:$0xf0]  ;;  %v5096_v29 = vld [vmem:[#allocation7 + $0xa0] sm:$0xf]  ;;  %v5029_v41 = vor.u32 %v5925_v33, %v5026_v37 }
 0x160   : > { %v1224_v17 = vmax.f32 %v1198_v7, 0.0  ;;  %v1233_v7 = vmax.f32 %v7200_v60, 0.0  ;;  %v5101_v28 = vor.u32 %v5943_v24, %v5098_v30 }
 0x161   : > { %v1241_v18 = vpack.c.bf16 %v1223_v16, %v1221_v11  ;;  %1986 = vmatpush.bf16.msrb.mxu3 %v5125_v25  ;;  %1858 = vmatpush.bf16.msra.mxu0 %v5049_v49  ;;  %v1234_v16 = vmax.f32 %v7203_v34, 0.0  ;;  %v5944_v25 = vld [vmem:[#allocation7 + $0xa4] sm:$0xf0]  ;;  %v5024_v34 = vld [vmem:[#allocation7 + $0x10] sm:$0xf] }
 0x162   : > { %v7215_v19 = vpop.f32.mrf.mxu2  ;;  %v1242_v59 = vpack.c.bf16 %v1224_v17, %v1222_v15  ;;  %v5037_v15 = vor.u32 %v5927_v13, %v5034_v14  ;;  %v5097_v60 = vor.u32 %v5944_v25, %v5096_v29  ;;  %v5025_v36 = vor.u32 %v5926_v31, %v5024_v34 }
 0x163   : > { %1469 = vmatmul.bf16.gmra.mxu0 %v1241_v18  ;;  %1944 = vmatpush.bf16.msrb.mxu2 %v5053_v43  ;;  %v5923_v43 = vld [vmem:[#allocation7 + $0x4] sm:$0xf] }
 0x164   : > { %1512 = vmatmul.bf16.gmra.mxu1 %v1242_v59 }
 0x165   : > { %v7217_v21 = vpop.f32.mrf.mxu3  ;;  %1987 = vmatpush.bf16.msrb.mxu3 %v5117_v45  ;;  %1859 = vmatpush.bf16.msra.mxu0 %v5041_v6  ;;  %v5018_v45 = vld [vmem:[#allocation7 + $0x8] sm:$0xf0] }
 0x167   : > { %1550 = vmatmul.bf16.gmra.mxu2 %v1239_v48  ;;  %v5112_v48 = vld [vmem:[#allocation7 + $0xc0] sm:$0xf] }
 0x168   : > { %1945 = vmatpush.bf16.msrb.mxu2 %v5045_v61 }
 0x169   : > { %1988 = vmatpush.bf16.msrb.mxu3 %v5109_v5  ;;  %v5939_v5 = vld [vmem:[#allocation7 + $0x84] sm:$0xf] }
 0x16a   : > { %1593 = vmatmul.bf16.gmra.mxu3 %v1240_v50  ;;  %v7219_v32 = vpop.f32.mrf.mxu2  ;;  %v5948_v50 = vld [vmem:[#allocation7 + $0xc4] sm:$0xf0]  ;;  %v5085_v8 = vor.u32 %v5939_v5, %v5082_v56 }
 0x16b   : > { %v5113_v52 = vor.u32 %v5948_v50, %v5112_v48  ;;  %v5093_v48 = vor.u32 %v5941_v46, %v5090_v47 }
 0x16c   : > { %1946 = vmatpush.bf16.msrb.mxu2 %v5037_v15  ;;  %v5080_v15 = vld [vmem:[#allocation7 + $0x80] sm:$0xf] }
 0x16d   : > { %v7221_v35 = vpop.f32.mrf.mxu3  ;;  %1901 = vmatpush.bf16.msra.mxu1 %v5113_v52  ;;  %1989 = vmatpush.bf16.msrb.mxu3 %v5101_v28  ;;  %v5088_v52 = vld [vmem:[#allocation7 + $0x90] sm:$0xf] }
 0x16e   : > { %v5089_v58 = vor.u32 %v5942_v57, %v5088_v52 }
 0x170   : > { %1947 = vmatpush.bf16.msrb.mxu2 %v5029_v41 }
 0x171   : > { %1902 = vmatpush.bf16.msra.mxu1 %v5105_v10  ;;  %1990 = vmatpush.bf16.msrb.mxu3 %v5093_v48 }
 0x172   : > { %v7223_v39 = vpop.f32.mrf.mxu2 }
 0x173   : > { %1474 = vmatmul.bf16.gmra.mxu0 %v7180_v54 }
 0x174   : > { %1517 = vmatmul.bf16.gmra.mxu1 %v7183_v55 }
 0x175   : > { %v7225_v40 = vpop.f32.mrf.mxu3  ;;  %1903 = vmatpush.bf16.msra.mxu1 %v5097_v60  ;;  %1991 = vmatpush.bf16.msrb.mxu3 %v5085_v8 }
 0x177   : > { %1555 = vmatmul.bf16.gmra.mxu2 %v1241_v18 }
 0x179   : > { %1904 = vmatpush.bf16.msra.mxu1 %v5089_v58 }
 0x17a   : > { %1598 = vmatmul.bf16.gmra.mxu3 %v1242_v59  ;;  %v7229_v51 = vpop.f32.mrf.mxu2  ;;  %v5032_v59 = vld [vmem:[#allocation7 + $0x20] sm:$0xf] }
 0x17b   : > { %v5033_v27 = vor.u32 %v5928_v23, %v5032_v59 }
 0x17d   : > { %v7231_v53 = vpop.f32.mrf.mxu3  ;;  %1860 = vmatpush.bf16.msra.mxu0 %v5033_v27 }
 0x181   : > { %1861 = vmatpush.bf16.msra.mxu0 %v5025_v36 }
 0x182   : > { %v7233_v62 = vpop.f32.mrf.mxu2 }
 0x183   : > { %1479 = vmatmul.bf16.gmra.mxu0 %v7193_v20 }
 0x184   : > { %1522 = vmatmul.bf16.gmra.mxu1 %v7195_v22 }
 0x185   : > { %v7235_v63 = vpop.f32.mrf.mxu3 }
 0x187   : > { %1560 = vmatmul.bf16.gmra.mxu2 %v7180_v54  ;;  %v1247_v54 = vpack.c.bf16 %v1233_v7, %v1233_v7  ;;  %v5940_v7 = vld [vmem:[#allocation7 + $0x84] sm:$0xf0] }
 0x18a   : > { %1603 = vmatmul.bf16.gmra.mxu3 %v7183_v55  ;;  %v7241_v11 = vpop.f32.mrf.mxu2  ;;  %v1248_v55 = vpack.c.bf16 %v1234_v16, %v1234_v16  ;;  %v5081_v16 = vor.u32 %v5940_v7, %v5080_v15 }
 0x18c   : > { %1905 = vmatpush.bf16.msra.mxu1 %v5081_v16 }
 0x18d   : > { %v7243_v12 = vpop.f32.mrf.mxu3 }
 0x192   : > { %v7247_v17 = vpop.f32.mrf.mxu2 }
 0x193   : > { %1484 = vmatmul.bf16.gmra.mxu0 %v1247_v54 }
 0x194   : > { %1527 = vmatmul.bf16.gmra.mxu1 %v1248_v55 }
 0x195   : > { %v7249_v18 = vpop.f32.mrf.mxu3 }
 0x197   : > { %1565 = vmatmul.bf16.gmra.mxu2 %v7193_v20  ;;  %v5924_v20 = vld [vmem:[#allocation7 + $0x4] sm:$0xf0] }
 0x198   : > { %v5017_v44 = vor.u32 %v5924_v20, %v5016_v42 }
 0x19a   : > { %1608 = vmatmul.bf16.gmra.mxu3 %v7195_v22  ;;  %v7253_v38 = vpop.f32.mrf.mxu2  ;;  %v5021_v22 = vor.u32 %v5923_v43, %v5018_v45  ;;  %1862 = vmatpush.bf16.msra.mxu0 %v5017_v44 }
 0x19c   : > { %1948 = vmatpush.bf16.msrb.mxu2 %v5021_v22  ;;  %v7282_v22 = vperm.slane %v786_v1, 1 }
 0x19d   : > { %v7255_v26 = vpop.f32.mrf.mxu3 }
 0x1a2   : > { %v7257_v49 = vpop.f32.mrf.mxu2 }
 0x1a5   : > { %v7259_v50 = vpop.f32.mrf.mxu3 }
 0x1a7   : > { %1570 = vmatmul.bf16.gmra.mxu2 %v1247_v54 }
 0x1aa   : > { %1613 = vmatmul.bf16.gmra.mxu3 %v1248_v55  ;;  %v7261_v61 = vpop.f32.mrf.mxu2 }
 0x1ad   : > { %v7263_v0 = vpop.f32.mrf.mxu3 }
 0x1b0   : > { %v1455_v6 = vpop.f32.mrf.mxu0 }
 0x1b1   : > { %v1498_v9 = vpop.f32.mrf.mxu1  ;;  %v1456_v13 = vadd.f32 %v1455_v6, %v7268_v3 }
 0x1b2   : > { %v7270_v10 = vpop.f32.mrf.mxu2 }
 0x1b3   : > { %v1499_v54 = vadd.f32 %v1498_v9, %v1456_v13 }
 0x1b5   : > { %v7273_v14 = vpop.f32.mrf.mxu3  ;;  %v1618_v30 = vmax.f32 %v1499_v54, 0.0 }
 0x1b8   : > { %v1457_v55 = vpop.f32.mrf.mxu0 }
 0x1b9   : > { %v1458_v59 = vadd.f32 %v1457_v55, %v7268_v3  ;;  %v1500_v23 = vpop.f32.mrf.mxu1 }
 0x1ba   : > { %v7276_v24 = vpop.f32.mrf.mxu2 }
 0x1bb   : > { %v1501_v27 = vadd.f32 %v1500_v23, %v1458_v59 }
 0x1bd   : > { %v7278_v29 = vpop.f32.mrf.mxu3  ;;  %v1620_v28 = vmax.f32 %v1501_v27, 0.0 }
 0x1bf   : > { %v1644_v25 = vpack.c.bf16 %v1620_v28, %v1618_v30 }
 0x1c0   : > { %v1460_v60 = vpop.f32.mrf.mxu0 }
 0x1c1   : > { %v1503_v34 = vpop.f32.mrf.mxu1  ;;  %1863 = vmatmul.bf16.vlgmr.msra.gmra.mxu0 %v1644_v25  ;;  %1949 = vmatmul.bf16.vlgmr.msrb.gmra.mxu2 %v1644_v25  ;;  %v1461_v33 = vadd.f32 %v1460_v60, %v7268_v3 }
 0x1c2   : > { %v1133_v31 = vpop.f32.mrf.mxu2 }
 0x1c3   : > { %v1504_v37 = vadd.f32 %v1503_v34, %v1461_v33  ;;  %v5969_v31 = vld [vmem:[#allocation9 + $0x74] sm:$0xf]  ;;  %v5202_v33 = vld [vmem:[#allocation9 + $0x78] sm:$0xf0] }
 0x1c5   : > { %v1176_v36 = vpop.f32.mrf.mxu3  ;;  %v1622_v44 = vmax.f32 %v1504_v37, 0.0  ;;  %v5205_v37 = vor.u32 %v5969_v31, %v5202_v33  ;;  %v5983_v33 = vld [vmem:[#allocation9 + $0xe4] sm:$0xf] }
 0x1c7   : > { %2350 = vmatpush.bf16.msra.mxu2 %v5205_v37 }
 0x1c8   : > { %v1462_v41 = vpop.f32.mrf.mxu0 }
 0x1c9   : > { %v1463_v42 = vadd.f32 %v1462_v41, %v7268_v3  ;;  %v1505_v20 = vpop.f32.mrf.mxu1  ;;  %v5985_v41 = vld [vmem:[#allocation9 + $0xf4] sm:$0xf] }
 0x1ca   : > { %v1541_v43 = vpop.f32.mrf.mxu2 }
 0x1cb   : > { %v1506_v45 = vadd.f32 %v1505_v20, %v1463_v42  ;;  %v1542_v48 = vadd.f32 %v1541_v43, %v7282_v22  ;;  %v5266_v42 = vld [vmem:[#allocation9 + $0xf8] sm:$0xf0]  ;;  %v5200_v20 = vld [vmem:[#allocation9 + $0x70] sm:$0xf] }
 0x1cd   : > { %v1584_v46 = vpop.f32.mrf.mxu3  ;;  %v1624_v47 = vmax.f32 %v1506_v45, 0.0  ;;  %v5970_v45 = vld [vmem:[#allocation9 + $0x74] sm:$0xf0] }
 0x1ce   : > { %v1585_v56 = vadd.f32 %v1584_v46, %v1542_v48 }
 0x1cf   : > { %v1646_v52 = vpack.c.bf16 %v1624_v47, %v1622_v44  ;;  %v5269_v44 = vor.u32 %v5985_v41, %v5266_v42  ;;  %v5201_v47 = vor.u32 %v5970_v45, %v5200_v20  ;;  %v5192_v42 = vld [vmem:[#allocation9 + $0x60] sm:$0xf]  ;;  %v5968_v20 = vld [vmem:[#allocation9 + $0x64] sm:$0xf0] }
 0x1d0   : > { %v1465_v57 = vpop.f32.mrf.mxu0  ;;  %v1619_v15 = vmax.f32 %v1585_v56, 0.0  ;;  %v5264_v56 = vld [vmem:[#allocation9 + $0xf0] sm:$0xf]  ;;  %v5193_v45 = vor.u32 %v5968_v20, %v5192_v42 }
 0x1d1   : > { %v1508_v58 = vpop.f32.mrf.mxu1  ;;  %1868 = vmatmul.bf16.gmra.mxu0 %v1646_v52  ;;  %1954 = vmatmul.bf16.gmra.mxu2 %v1646_v52  ;;  %v1466_v6 = vadd.f32 %v1465_v57, %v7268_v3  ;;  %v5248_v20 = vld [vmem:[#allocation9 + $0xd0] sm:$0xf] }
 0x1d2   : > { %v1543_v5 = vpop.f32.mrf.mxu2  ;;  %2393 = vmatpush.bf16.msra.mxu3 %v5269_v44  ;;  %2264 = vmatpush.bf16.msrb.mxu0 %v5201_v47 }
 0x1d3   : > { %v1544_v8 = vadd.f32 %v1543_v5, %v7282_v22  ;;  %v1509_v1 = vadd.f32 %v1508_v58, %v1466_v6  ;;  %v5986_v6 = vld [vmem:[#allocation9 + $0xf4] sm:$0xf0] }
 0x1d5   : > { %v1586_v9 = vpop.f32.mrf.mxu3  ;;  %v1626_v30 = vmax.f32 %v1509_v1, 0.0 }
 0x1d6   : > { %v1587_v13 = vadd.f32 %v1586_v9, %v1544_v8  ;;  %v5265_v8 = vor.u32 %v5986_v6, %v5264_v56  ;;  %2265 = vmatpush.bf16.msrb.mxu0 %v5193_v45 }
 0x1d8   : > { %v1621_v7 = vmax.f32 %v1587_v13, 0.0  ;;  %v1467_v16 = vpop.f32.mrf.mxu0  ;;  %2307 = vmatpush.bf16.msrb.mxu1 %v5265_v8 }
 0x1d9   : > { %v1468_v55 = vadd.f32 %v1467_v16, %v7268_v3  ;;  %v1510_v59 = vpop.f32.mrf.mxu1 }
 0x1da   : > { %v1645_v54 = vpack.c.bf16 %v1621_v7, %v1619_v15  ;;  %v1546_v23 = vpop.f32.mrf.mxu2 }
 0x1db   : > { %v1511_v27 = vadd.f32 %v1510_v59, %v1468_v55  ;;  %v1547_v60 = vadd.f32 %v1546_v23, %v7282_v22 }
 0x1dc   : > { %1906 = vmatmul.bf16.vlgmr.msra.gmra.mxu1 %v1645_v54  ;;  %1992 = vmatmul.bf16.vlgmr.msrb.gmra.mxu3 %v1645_v54 }
 0x1dd   : > { %v1589_v28 = vpop.f32.mrf.mxu3  ;;  %v1628_v25 = vmax.f32 %v1511_v27, 0.0 }
 0x1de   : > { %v1590_v48 = vadd.f32 %v1589_v28, %v1547_v60  ;;  %v5967_v28 = vld [vmem:[#allocation9 + $0x64] sm:$0xf] }
 0x1df   : > { %v1648_v34 = vpack.c.bf16 %v1628_v25, %v1626_v30  ;;  %v5194_v25 = vld [vmem:[#allocation9 + $0x68] sm:$0xf0] }
 0x1e0   : > { %v1470_v36 = vpop.f32.mrf.mxu0  ;;  %v1623_v9 = vmax.f32 %v1590_v48, 0.0  ;;  %v5197_v60 = vor.u32 %v5967_v28, %v5194_v25 }
 0x1e1   : > { %v1513_v43 = vpop.f32.mrf.mxu1  ;;  %1873 = vmatmul.bf16.gmra.mxu0 %v1648_v34  ;;  %1959 = vmatmul.bf16.gmra.mxu2 %v1648_v34  ;;  %v1471_v52 = vadd.f32 %v1470_v36, %v7268_v3  ;;  %v5258_v36 = vld [vmem:[#allocation9 + $0xe8] sm:$0xf0] }
 0x1e2   : > { %v1548_v46 = vpop.f32.mrf.mxu2  ;;  %2351 = vmatpush.bf16.msra.mxu2 %v5197_v60  ;;  %v5261_v41 = vor.u32 %v5983_v33, %v5258_v36  ;;  %v5184_v36 = vld [vmem:[#allocation9 + $0x50] sm:$0xf] }
 0x1e3   : > { %v1549_v57 = vadd.f32 %v1548_v46, %v7282_v22  ;;  %v1514_v13 = vadd.f32 %v1513_v43, %v1471_v52  ;;  %v5256_v43 = vld [vmem:[#allocation9 + $0xe0] sm:$0xf]  ;;  %v5984_v46 = vld [vmem:[#allocation9 + $0xe4] sm:$0xf0] }
 0x1e4   : > { %2394 = vmatpush.bf16.msra.mxu3 %v5261_v41  ;;  %v5257_v48 = vor.u32 %v5984_v46, %v5256_v43  ;;  %v5982_v43 = vld [vmem:[#allocation9 + $0xd4] sm:$0xf0] }
 0x1e5   : > { %v1591_v58 = vpop.f32.mrf.mxu3  ;;  %v1630_v59 = vmax.f32 %v1514_v13, 0.0  ;;  %v5186_v13 = vld [vmem:[#allocation9 + $0x58] sm:$0xf0]  ;;  %v5249_v45 = vor.u32 %v5982_v43, %v5248_v20  ;;  %v5980_v20 = vld [vmem:[#allocation9 + $0xc4] sm:$0xf0] }
 0x1e6   : > { %v1592_v5 = vadd.f32 %v1591_v58, %v1549_v57  ;;  %2308 = vmatpush.bf16.msrb.mxu1 %v5257_v48 }
 0x1e8   : > { %v1625_v15 = vmax.f32 %v1592_v5, 0.0  ;;  %v1472_v1 = vpop.f32.mrf.mxu0 }
 0x1e9   : > { %v1473_v7 = vadd.f32 %v1472_v1, %v7268_v3  ;;  %v1515_v16 = vpop.f32.mrf.mxu1 }
 0x1ea   : > { %v1647_v54 = vpack.c.bf16 %v1625_v15, %v1623_v9  ;;  %v1551_v55 = vpop.f32.mrf.mxu2  ;;  %v5965_v9 = vld [vmem:[#allocation9 + $0x54] sm:$0xf]  ;;  %2309 = vmatpush.bf16.msrb.mxu1 %v5249_v45 }
 0x1eb   : > { %v1516_v23 = vadd.f32 %v1515_v16, %v1473_v7  ;;  %v1552_v34 = vadd.f32 %v1551_v55, %v7282_v22  ;;  %v5189_v1 = vor.u32 %v5965_v9, %v5186_v13 }
 0x1ec   : > { %1911 = vmatmul.bf16.gmra.mxu1 %v1647_v54  ;;  %1997 = vmatmul.bf16.gmra.mxu3 %v1647_v54 }
 0x1ed   : > { %v1594_v30 = vpop.f32.mrf.mxu3  ;;  %v1632_v27 = vmax.f32 %v1516_v23, 0.0  ;;  %v5250_v23 = vld [vmem:[#allocation9 + $0xd8] sm:$0xf0]  ;;  %2352 = vmatpush.bf16.msra.mxu2 %v5189_v1  ;;  %v5242_v1 = vld [vmem:[#allocation9 + $0xc8] sm:$0xf0] }
 0x1ee   : > { %v1595_v52 = vadd.f32 %v1594_v30, %v1552_v34 }
 0x1ef   : > { %v1650_v31 = vpack.c.bf16 %v1632_v27, %v1630_v59  ;;  %v5981_v59 = vld [vmem:[#allocation9 + $0xd4] sm:$0xf] }
 0x1f0   : > { %v1475_v37 = vpop.f32.mrf.mxu0  ;;  %v1627_v6 = vmax.f32 %v1595_v52, 0.0  ;;  %v5253_v27 = vor.u32 %v5981_v59, %v5250_v23 }
 0x1f1   : > { %v1518_v44 = vpop.f32.mrf.mxu1  ;;  %1878 = vmatmul.bf16.gmra.mxu0 %v1650_v31  ;;  %1964 = vmatmul.bf16.gmra.mxu2 %v1650_v31  ;;  %v1476_v5 = vadd.f32 %v1475_v37, %v7268_v3  ;;  %v5966_v37 = vld [vmem:[#allocation9 + $0x54] sm:$0xf0] }
 0x1f2   : > { %v1553_v47 = vpop.f32.mrf.mxu2  ;;  %2395 = vmatpush.bf16.msra.mxu3 %v5253_v27  ;;  %v5185_v42 = vor.u32 %v5966_v37, %v5184_v36 }
 0x1f3   : > { %v1554_v57 = vadd.f32 %v1553_v47, %v7282_v22  ;;  %v1519_v7 = vadd.f32 %v1518_v44, %v1476_v5 }
 0x1f4   : > { %2266 = vmatpush.bf16.msrb.mxu0 %v5185_v42  ;;  %v5240_v42 = vld [vmem:[#allocation9 + $0xc0] sm:$0xf] }
 0x1f5   : > { %v1596_v58 = vpop.f32.mrf.mxu3  ;;  %v1634_v60 = vmax.f32 %v1519_v7, 0.0  ;;  %v5176_v7 = vld [vmem:[#allocation9 + $0x40] sm:$0xf] }
 0x1f6   : > { %v1597_v56 = vadd.f32 %v1596_v58, %v1554_v57 }
 0x1f8   : > { %v1629_v8 = vmax.f32 %v1597_v56, 0.0  ;;  %v1477_v15 = vpop.f32.mrf.mxu0 }
 0x1f9   : > { %v1478_v16 = vadd.f32 %v1477_v15, %v7268_v3  ;;  %v1520_v54 = vpop.f32.mrf.mxu1  ;;  %v5979_v15 = vld [vmem:[#allocation9 + $0xc4] sm:$0xf] }
 0x1fa   : > { %v1649_v55 = vpack.c.bf16 %v1629_v8, %v1627_v6  ;;  %v1556_v30 = vpop.f32.mrf.mxu2  ;;  %v5963_v6 = vld [vmem:[#allocation9 + $0x44] sm:$0xf]  ;;  %v5178_v8 = vld [vmem:[#allocation9 + $0x48] sm:$0xf0]  ;;  %v5245_v23 = vor.u32 %v5979_v15, %v5242_v1  ;;  %v5232_v1 = vld [vmem:[#allocation9 + $0xb0] sm:$0xf] }
 0x1fb   : > { %v1521_v28 = vadd.f32 %v1520_v54, %v1478_v16  ;;  %v1557_v31 = vadd.f32 %v1556_v30, %v7282_v22  ;;  %v5181_v13 = vor.u32 %v5963_v6, %v5178_v8  ;;  %v5964_v30 = vld [vmem:[#allocation9 + $0x44] sm:$0xf0]  ;;  %v5168_v6 = vld [vmem:[#allocation9 + $0x30] sm:$0xf]  ;;  %v5962_v8 = vld [vmem:[#allocation9 + $0x34] sm:$0xf0] }
 0x1fc   : > { %1916 = vmatmul.bf16.gmra.mxu1 %v1649_v55  ;;  %2002 = vmatmul.bf16.gmra.mxu3 %v1649_v55  ;;  %v5169_v15 = vor.u32 %v5962_v8, %v5168_v6 }
 0x1fd   : > { %v1599_v25 = vpop.f32.mrf.mxu3  ;;  %v1636_v34 = vmax.f32 %v1521_v28, 0.0  ;;  %2353 = vmatpush.bf16.msra.mxu2 %v5181_v13  ;;  %v5177_v28 = vor.u32 %v5964_v30, %v5176_v7  ;;  %2396 = vmatpush.bf16.msra.mxu3 %v5245_v23  ;;  %v5978_v7 = vld [vmem:[#allocation9 + $0xb4] sm:$0xf0] }
 0x1fe   : > { %v1600_v47 = vadd.f32 %v1599_v25, %v1557_v31 }
 0x1ff   : > { %v1652_v33 = vpack.c.bf16 %v1636_v34, %v1634_v60  ;;  %2267 = vmatpush.bf16.msrb.mxu0 %v5177_v28 }
 0x200   : > { %v1480_v41 = vpop.f32.mrf.mxu0  ;;  %v1631_v5 = vmax.f32 %v1600_v47, 0.0 }
 0x201   : > { %v1523_v44 = vpop.f32.mrf.mxu1  ;;  %1883 = vmatmul.bf16.gmra.mxu0 %v1652_v33  ;;  %1969 = vmatmul.bf16.gmra.mxu2 %v1652_v33  ;;  %v1481_v57 = vadd.f32 %v1480_v41, %v7268_v3 }
 0x202   : > { %v1558_v46 = vpop.f32.mrf.mxu2 }
 0x203   : > { %v1559_v48 = vadd.f32 %v1558_v46, %v7282_v22  ;;  %v1524_v16 = vadd.f32 %v1523_v44, %v1481_v57  ;;  %v5241_v44 = vor.u32 %v5980_v20, %v5240_v42  ;;  %v5170_v57 = vld [vmem:[#allocation9 + $0x38] sm:$0xf0]  ;;  %2268 = vmatpush.bf16.msrb.mxu0 %v5169_v15 }
 0x205   : > { %v1601_v52 = vpop.f32.mrf.mxu3  ;;  %v1638_v34 = vmax.f32 %v1524_v16, 0.0  ;;  %2310 = vmatpush.bf16.msrb.mxu1 %v5241_v44  ;;  %v5233_v16 = vor.u32 %v5978_v7, %v5232_v1  ;;  %v5957_v1 = vld [vmem:[#allocation9 + $0x14] sm:$0xf]  ;;  %v5154_v7 = vld [vmem:[#allocation9 + $0x18] sm:$0xf0] }
 0x206   : > { %v1602_v58 = vadd.f32 %v1601_v52, %v1559_v48  ;;  %v5961_v52 = vld [vmem:[#allocation9 + $0x34] sm:$0xf] }
 0x208   : > { %v1633_v56 = vmax.f32 %v1602_v58, 0.0  ;;  %v1482_v9 = vpop.f32.mrf.mxu0  ;;  %v5977_v58 = vld [vmem:[#allocation9 + $0xb4] sm:$0xf] }
 0x209   : > { %v1483_v54 = vadd.f32 %v1482_v9, %v7268_v3  ;;  %v1525_v55 = vpop.f32.mrf.mxu1  ;;  %2311 = vmatpush.bf16.msrb.mxu1 %v5233_v16  ;;  %v5157_v16 = vor.u32 %v5957_v1, %v5154_v7 }
 0x20a   : > { %v1651_v59 = vpack.c.bf16 %v1633_v56, %v1631_v5  ;;  %v1561_v27 = vpop.f32.mrf.mxu2  ;;  %v5173_v5 = vor.u32 %v5961_v52, %v5170_v57  ;;  %v5234_v56 = vld [vmem:[#allocation9 + $0xb8] sm:$0xf0] }
 0x20b   : > { %v1526_v25 = vadd.f32 %v1525_v55, %v1483_v54  ;;  %v1562_v33 = vadd.f32 %v1561_v27, %v7282_v22  ;;  %v5237_v13 = vor.u32 %v5977_v58, %v5234_v56  ;;  %v5976_v56 = vld [vmem:[#allocation9 + $0xa4] sm:$0xf0] }
 0x20c   : > { %1921 = vmatmul.bf16.gmra.mxu1 %v1651_v59  ;;  %2007 = vmatmul.bf16.gmra.mxu3 %v1651_v59 }
 0x20d   : > { %v1604_v60 = vpop.f32.mrf.mxu3  ;;  %v1640_v31 = vmax.f32 %v1526_v25, 0.0  ;;  %2354 = vmatpush.bf16.msra.mxu2 %v5173_v5  ;;  %2397 = vmatpush.bf16.msra.mxu3 %v5237_v13  ;;  %v5224_v5 = vld [vmem:[#allocation9 + $0xa0] sm:$0xf] }
 0x20e   : > { %v1605_v45 = vadd.f32 %v1604_v60, %v1562_v33  ;;  %v5162_v33 = vld [vmem:[#allocation9 + $0x28] sm:$0xf0]  ;;  %v5225_v6 = vor.u32 %v5976_v56, %v5224_v5 }
 0x20f   : > { %v1654_v36 = vpack.c.bf16 %v1640_v31, %v1638_v34  ;;  %v5959_v31 = vld [vmem:[#allocation9 + $0x24] sm:$0xf] }
 0x210   : > { %v1485_v37 = vpop.f32.mrf.mxu0  ;;  %v1635_v54 = vmax.f32 %v1605_v45, 0.0  ;;  %2312 = vmatpush.bf16.msrb.mxu1 %v5225_v6 }
 0x211   : > { %v1528_v41 = vpop.f32.mrf.mxu1  ;;  %1888 = vmatmul.bf16.gmra.mxu0 %v1654_v36  ;;  %1974 = vmatmul.bf16.gmra.mxu2 %v1654_v36  ;;  %v1486_v46 = vadd.f32 %v1485_v37, %v7268_v3  ;;  %v5165_v36 = vor.u32 %v5959_v31, %v5162_v33  ;;  %v5975_v37 = vld [vmem:[#allocation9 + $0xa4] sm:$0xf]  ;;  %v5974_v31 = vld [vmem:[#allocation9 + $0x94] sm:$0xf0] }
 0x212   : > { %v1563_v43 = vpop.f32.mrf.mxu2 }
 0x213   : > { %v1564_v47 = vadd.f32 %v1563_v43, %v7282_v22  ;;  %v1529_v3 = vadd.f32 %v1528_v41, %v1486_v46  ;;  %v5226_v41 = vld [vmem:[#allocation9 + $0xa8] sm:$0xf0]  ;;  %2355 = vmatpush.bf16.msra.mxu2 %v5165_v36  ;;  %v5955_v36 = vld [vmem:[#allocation9 + $0x4] sm:$0xf] }
 0x214   : > { %v5229_v42 = vor.u32 %v5975_v37, %v5226_v41  ;;  %v5146_v37 = vld [vmem:[#allocation9 + $0x8] sm:$0xf0] }
 0x215   : > { %v1606_v48 = vpop.f32.mrf.mxu3  ;;  %v1642_v28 = vmax.f32 %v1529_v3, 0.0  ;;  %v5218_v3 = vld [vmem:[#allocation9 + $0x98] sm:$0xf0] }
 0x216   : > { %v1607_v9 = vadd.f32 %v1606_v48, %v1564_v47  ;;  %2398 = vmatpush.bf16.msra.mxu3 %v5229_v42  ;;  %v5160_v47 = vld [vmem:[#allocation9 + $0x20] sm:$0xf]  ;;  %v5960_v48 = vld [vmem:[#allocation9 + $0x24] sm:$0xf0]  ;;  %v5149_v42 = vor.u32 %v5955_v36, %v5146_v37 }
 0x217   : > { %v1656_v60 = vpack.c.bf16 %v1642_v28, %v1642_v28  ;;  %v5161_v52 = vor.u32 %v5960_v48, %v5160_v47  ;;  %2356 = vmatpush.bf16.msra.mxu2 %v5157_v16 }
 0x218   : > { %v1637_v55 = vmax.f32 %v1607_v9, 0.0  ;;  %v1487_v59 = vpop.f32.mrf.mxu0 }
 0x219   : > { %v1530_v23 = vpop.f32.mrf.mxu1  ;;  %2269 = vmatpush.bf16.msrb.mxu0 %v5161_v52  ;;  %v5208_v52 = vld [vmem:[#allocation9 + $0x80] sm:$0xf] }
 0x21a   : > { %v1653_v30 = vpack.c.bf16 %v1637_v55, %v1635_v54  ;;  %v1566_v27 = vpop.f32.mrf.mxu2  ;;  %v5973_v54 = vld [vmem:[#allocation9 + $0x94] sm:$0xf]  ;;  %v5152_v55 = vld [vmem:[#allocation9 + $0x10] sm:$0xf] }
 0x21b   : > { %v1567_v34 = vadd.f32 %v1566_v27, %v7282_v22  ;;  %v5221_v23 = vor.u32 %v5973_v54, %v5218_v3  ;;  %2357 = vmatpush.bf16.msra.mxu2 %v5149_v42 }
 0x21c   : > { %1926 = vmatmul.bf16.gmra.mxu1 %v1653_v30  ;;  %2012 = vmatmul.bf16.gmra.mxu3 %v1653_v30  ;;  %v5958_v30 = vld [vmem:[#allocation9 + $0x14] sm:$0xf0] }
 0x21d   : > { %v1609_v25 = vpop.f32.mrf.mxu3  ;;  %v5153_v28 = vor.u32 %v5958_v30, %v5152_v55  ;;  %2399 = vmatpush.bf16.msra.mxu3 %v5221_v23 }
 0x21e   : > { %v1610_v43 = vadd.f32 %v1609_v25, %v1567_v34  ;;  %v5216_v34 = vld [vmem:[#allocation9 + $0x90] sm:$0xf] }
 0x21f   : > { %2270 = vmatpush.bf16.msrb.mxu0 %v5153_v28  ;;  %v5217_v33 = vor.u32 %v5974_v31, %v5216_v34 }
 0x220   : > { %v1639_v57 = vmax.f32 %v1610_v43, 0.0  ;;  %v5210_v43 = vld [vmem:[#allocation9 + $0x88] sm:$0xf0] }
 0x221   : > { %1893 = vmatmul.bf16.gmra.mxu0 %v1656_v60  ;;  %1979 = vmatmul.bf16.gmra.mxu2 %v1656_v60 }
 0x222   : > { %v1568_v20 = vpop.f32.mrf.mxu2  ;;  %2313 = vmatpush.bf16.msrb.mxu1 %v5217_v33 }
 0x223   : > { %v1569_v44 = vadd.f32 %v1568_v20, %v7282_v22  ;;  %v5971_v20 = vld [vmem:[#allocation9 + $0x84] sm:$0xf] }
 0x225   : > { %v1611_v45 = vpop.f32.mrf.mxu3 }
 0x226   : > { %v1612_v46 = vadd.f32 %v1611_v45, %v1569_v44  ;;  %v5213_v44 = vor.u32 %v5971_v20, %v5210_v43  ;;  %v5144_v45 = vld [vmem:[#allocation9] sm:$0xf] }
 0x228   : > { %v1641_v58 = vmax.f32 %v1612_v46, 0.0  ;;  %v5956_v46 = vld [vmem:[#allocation9 + $0x4] sm:$0xf0]  ;;  %2400 = vmatpush.bf16.msra.mxu3 %v5213_v44 }
 0x229   : > { %v5145_v47 = vor.u32 %v5956_v46, %v5144_v45 }
 0x22a   : > { %v1655_v8 = vpack.c.bf16 %v1641_v58, %v1639_v57  ;;  %v1571_v9 = vpop.f32.mrf.mxu2  ;;  %v5972_v57 = vld [vmem:[#allocation9 + $0x84] sm:$0xf0] }
 0x22b   : > { %v1572_v15 = vadd.f32 %v1571_v9, %v7282_v22  ;;  %2271 = vmatpush.bf16.msrb.mxu0 %v5145_v47  ;;  %v5209_v5 = vor.u32 %v5972_v57, %v5208_v52  ;;  %v787_v9 = vld [vmem:[%s7711_s12] sm:$0x3]  ;;  %v6001_v47 = vld [vmem:[#allocation10 + $0x74] sm:$0xf] }
 0x22c   : > { %1931 = vmatmul.bf16.gmra.mxu1 %v1655_v8  ;;  %2017 = vmatmul.bf16.gmra.mxu3 %v1655_v8  ;;  %v7309_v1 = vperm.slane %v787_v9, 0  ;;  %v7314_v55 = vperm.slane %v787_v9, 1 }
 0x22d   : > { %v1614_v13 = vpop.f32.mrf.mxu3  ;;  %2314 = vmatpush.bf16.msrb.mxu1 %v5209_v5 }
 0x22e   : > { %v1615_v59 = vadd.f32 %v1614_v13, %v1572_v15 }
 0x230   : > { %v1643_v60 = vmax.f32 %v1615_v59, 0.0 }
 0x232   : > { %v1573_v27 = vpop.f32.mrf.mxu2  ;;  %v1657_v22 = vpack.c.bf16 %v1643_v60, %v1643_v60 }
 0x235   : > { %v1616_v25 = vpop.f32.mrf.mxu3 }
 0x23c   : > { %1936 = vmatmul.bf16.gmra.mxu1 %v1657_v22  ;;  %2022 = vmatmul.bf16.gmra.mxu3 %v1657_v22 }
 0x23e   : > { %v1864_v41 = vpop.f32.mrf.mxu0 }
 0x23f   : > { %v1865_v16 = vadd.f32 %v1864_v41, %v7309_v1 }
 0x244   : > { %v1950_v48 = vpop.f32.mrf.mxu2 }
 0x245   : > { %v1951_v28 = vadd.f32 %v1950_v48, %v7314_v55  ;;  %v5330_v48 = vld [vmem:[#allocation10 + $0x78] sm:$0xf0] }
 0x246   : > { %v1866_v58 = vpop.f32.mrf.mxu0 }
 0x247   : > { %v1867_v59 = vadd.f32 %v1866_v58, %v7309_v1  ;;  %v5333_v58 = vor.u32 %v6001_v47, %v5330_v48  ;;  %v5999_v48 = vld [vmem:[#allocation10 + $0x64] sm:$0xf] }
 0x249   : > { %2759 = vmatpush.bf16.msrb.mxu2 %v5333_v58  ;;  %v5322_v58 = vld [vmem:[#allocation10 + $0x68] sm:$0xf0] }
 0x24c   : > { %v1952_v56 = vpop.f32.mrf.mxu2 }
 0x24d   : > { %v1953_v31 = vadd.f32 %v1952_v56, %v7314_v55 }
 0x24e   : > { %v1869_v6 = vpop.f32.mrf.mxu0 }
 0x24f   : > { %v1870_v46 = vadd.f32 %v1869_v6, %v7309_v1 }
 0x254   : > { %v1955_v8 = vpop.f32.mrf.mxu2 }
 0x256   : > { %v1871_v13 = vpop.f32.mrf.mxu0 }
 0x257   : > { %v1872_v5 = vadd.f32 %v1871_v13, %v7309_v1 }
 0x259   : > { %v1907_v15 = vpop.f32.mrf.mxu1 }
 0x25a   : > { %v1908_v23 = vadd.f32 %v1907_v15, %v1865_v16  ;;  %v6017_v16 = vld [vmem:[#allocation10 + $0xf4] sm:$0xf] }
 0x25c   : > { %v1957_v7 = vpop.f32.mrf.mxu2  ;;  %v2027_v25 = vmax.f32 %v1908_v23, 0.0  ;;  %v1956_v23 = vadd.f32 %v1955_v8, %v7314_v55 }
 0x25d   : > { %v1958_v13 = vadd.f32 %v1957_v7, %v7314_v55  ;;  %v5325_v7 = vor.u32 %v5999_v48, %v5322_v58 }
 0x25e   : > { %v7312_v54 = vpop.f32.mrf.mxu0 }
 0x25f   : > { %v1993_v3 = vpop.f32.mrf.mxu3  ;;  %2760 = vmatpush.bf16.msrb.mxu2 %v5325_v7  ;;  %v5997_v7 = vld [vmem:[#allocation10 + $0x54] sm:$0xf] }
 0x260   : > { %v1994_v33 = vadd.f32 %v1993_v3, %v1951_v28  ;;  %v5394_v3 = vld [vmem:[#allocation10 + $0xf8] sm:$0xf0]  ;;  %v6002_v28 = vld [vmem:[#allocation10 + $0x74] sm:$0xf0] }
 0x261   : > { %v1909_v30 = vpop.f32.mrf.mxu1 }
 0x262   : > { %v1910_v27 = vadd.f32 %v1909_v30, %v1867_v59  ;;  %v2028_v20 = vmax.f32 %v1994_v33, 0.0  ;;  %v5397_v59 = vor.u32 %v6017_v16, %v5394_v3  ;;  %v6018_v33 = vld [vmem:[#allocation10 + $0xf4] sm:$0xf0] }
 0x264   : > { %v2029_v60 = vmax.f32 %v1910_v27, 0.0  ;;  %v7318_v34 = vpop.f32.mrf.mxu2  ;;  %v5328_v27 = vld [vmem:[#allocation10 + $0x70] sm:$0xf]  ;;  %2802 = vmatpush.bf16.msrb.mxu3 %v5397_v59 }
 0x266   : > { %v2053_v22 = vpack.c.bf16 %v2029_v60, %v2027_v25  ;;  %v7321_v36 = vpop.f32.mrf.mxu0  ;;  %v5329_v60 = vor.u32 %v6002_v28, %v5328_v27  ;;  %v5320_v27 = vld [vmem:[#allocation10 + $0x60] sm:$0xf]  ;;  %v6000_v28 = vld [vmem:[#allocation10 + $0x64] sm:$0xf0] }
 0x267   : > { %v1995_v37 = vpop.f32.mrf.mxu3  ;;  %v1877_v59 = vadd.f32 %v7321_v36, %v7309_v1 }
 0x268   : > { %v1996_v41 = vadd.f32 %v1995_v37, %v1953_v31  ;;  %2272 = vmatmul.bf16.vlgmr.msrb.gmra.mxu0 %v2053_v22  ;;  %2358 = vmatmul.bf16.vlgmr.msra.gmra.mxu2 %v2053_v22  ;;  %v5392_v31 = vld [vmem:[#allocation10 + $0xf0] sm:$0xf] }
 0x269   : > { %v1912_v42 = vpop.f32.mrf.mxu1  ;;  %2673 = vmatpush.bf16.msra.mxu0 %v5329_v60  ;;  %v5321_v60 = vor.u32 %v6000_v28, %v5320_v27 }
 0x26a   : > { %v2030_v43 = vmax.f32 %v1996_v41, 0.0  ;;  %v1913_v56 = vadd.f32 %v1912_v42, %v1870_v46  ;;  %v5393_v41 = vor.u32 %v6018_v33, %v5392_v31 }
 0x26c   : > { %v2054_v44 = vpack.c.bf16 %v2030_v43, %v2028_v20  ;;  %v7323_v45 = vpop.f32.mrf.mxu2  ;;  %v2031_v6 = vmax.f32 %v1913_v56, 0.0  ;;  %2716 = vmatpush.bf16.msra.mxu1 %v5393_v41  ;;  %v6015_v56 = vld [vmem:[#allocation10 + $0xe4] sm:$0xf] }
 0x26d   : > { %2674 = vmatpush.bf16.msra.mxu0 %v5321_v60  ;;  %v1963_v36 = vadd.f32 %v7323_v45, %v7314_v55  ;;  %v5378_v45 = vld [vmem:[#allocation10 + $0xd8] sm:$0xf0] }
 0x26e   : > { %2315 = vmatmul.bf16.vlgmr.msrb.gmra.mxu1 %v2054_v44  ;;  %2401 = vmatmul.bf16.vlgmr.msra.gmra.mxu3 %v2054_v44  ;;  %v7326_v52 = vpop.f32.mrf.mxu0 }
 0x26f   : > { %v1998_v57 = vpop.f32.mrf.mxu3 }
 0x270   : > { %v1999_v22 = vadd.f32 %v1998_v57, %v1956_v23  ;;  %v1875_v57 = vadd.f32 %v7312_v54, %v7309_v1  ;;  %v1961_v54 = vadd.f32 %v7318_v34, %v7314_v55 }
 0x271   : > { %v1914_v9 = vpop.f32.mrf.mxu1 }
 0x272   : > { %v1915_v15 = vadd.f32 %v1914_v9, %v1872_v5  ;;  %v2032_v44 = vmax.f32 %v1999_v22, 0.0  ;;  %v5386_v9 = vld [vmem:[#allocation10 + $0xe8] sm:$0xf0]  ;;  %v6016_v22 = vld [vmem:[#allocation10 + $0xe4] sm:$0xf0] }
 0x273   : > { %v5389_v3 = vor.u32 %v6015_v56, %v5386_v9 }
 0x274   : > { %v2033_v30 = vmax.f32 %v1915_v15, 0.0  ;;  %v7330_v25 = vpop.f32.mrf.mxu2 }
 0x275   : > { %2803 = vmatpush.bf16.msrb.mxu3 %v5389_v3  ;;  %v6013_v3 = vld [vmem:[#allocation10 + $0xd4] sm:$0xf] }
 0x276   : > { %v2055_v37 = vpack.c.bf16 %v2033_v30, %v2031_v6  ;;  %v7333_v42 = vpop.f32.mrf.mxu0 }
 0x277   : > { %v2000_v20 = vpop.f32.mrf.mxu3  ;;  %v1882_v60 = vadd.f32 %v7333_v42, %v7309_v1 }
 0x278   : > { %v2001_v8 = vadd.f32 %v2000_v20, %v1958_v13  ;;  %2277 = vmatmul.bf16.gmra.mxu0 %v2055_v37  ;;  %2363 = vmatmul.bf16.gmra.mxu2 %v2055_v37  ;;  %v5384_v13 = vld [vmem:[#allocation10 + $0xe0] sm:$0xf] }
 0x279   : > { %v1917_v43 = vpop.f32.mrf.mxu1  ;;  %v5385_v41 = vor.u32 %v6016_v22, %v5384_v13  ;;  %v5376_v13 = vld [vmem:[#allocation10 + $0xd0] sm:$0xf] }
 0x27a   : > { %v2034_v46 = vmax.f32 %v2001_v8, 0.0  ;;  %v1918_v23 = vadd.f32 %v1917_v43, %v1875_v57  ;;  %v5314_v57 = vld [vmem:[#allocation10 + $0x58] sm:$0xf0] }
 0x27b   : > { %2717 = vmatpush.bf16.msra.mxu1 %v5385_v41  ;;  %v5317_v9 = vor.u32 %v5997_v7, %v5314_v57  ;;  %v1966_v41 = vadd.f32 %v7330_v25, %v7314_v55  ;;  %v5995_v25 = vld [vmem:[#allocation10 + $0x44] sm:$0xf] }
 0x27c   : > { %v2056_v47 = vpack.c.bf16 %v2034_v46, %v2032_v44  ;;  %v7335_v5 = vpop.f32.mrf.mxu2  ;;  %v2035_v31 = vmax.f32 %v1918_v23, 0.0  ;;  %v5312_v23 = vld [vmem:[#allocation10 + $0x50] sm:$0xf] }
 0x27d   : > { %2761 = vmatpush.bf16.msrb.mxu2 %v5317_v9  ;;  %v5306_v9 = vld [vmem:[#allocation10 + $0x48] sm:$0xf0] }
 0x27e   : > { %2320 = vmatmul.bf16.gmra.mxu1 %v2056_v47  ;;  %2406 = vmatmul.bf16.gmra.mxu3 %v2056_v47  ;;  %v7339_v15 = vpop.f32.mrf.mxu0 }
 0x27f   : > { %v2003_v16 = vpop.f32.mrf.mxu3 }
 0x280   : > { %v2004_v20 = vadd.f32 %v2003_v16, %v1961_v54  ;;  %v1880_v16 = vadd.f32 %v7326_v52, %v7309_v1  ;;  %v6014_v52 = vld [vmem:[#allocation10 + $0xd4] sm:$0xf0] }
 0x281   : > { %v1919_v6 = vpop.f32.mrf.mxu1  ;;  %v5377_v22 = vor.u32 %v6014_v52, %v5376_v13 }
 0x282   : > { %v1920_v30 = vadd.f32 %v1919_v6, %v1877_v59  ;;  %v2036_v47 = vmax.f32 %v2004_v20, 0.0  ;;  %v5381_v59 = vor.u32 %v6013_v3, %v5378_v45  ;;  %v5998_v6 = vld [vmem:[#allocation10 + $0x54] sm:$0xf0]  ;;  %v5309_v3 = vor.u32 %v5995_v25, %v5306_v9 }
 0x283   : > { %v5313_v28 = vor.u32 %v5998_v6, %v5312_v23  ;;  %2718 = vmatpush.bf16.msra.mxu1 %v5377_v22  ;;  %v5370_v23 = vld [vmem:[#allocation10 + $0xc8] sm:$0xf0]  ;;  %v5304_v6 = vld [vmem:[#allocation10 + $0x40] sm:$0xf] }
 0x284   : > { %v2037_v33 = vmax.f32 %v1920_v30, 0.0  ;;  %v7345_v37 = vpop.f32.mrf.mxu2  ;;  %2804 = vmatpush.bf16.msrb.mxu3 %v5381_v59  ;;  %2762 = vmatpush.bf16.msrb.mxu2 %v5309_v3  ;;  %v6011_v59 = vld [vmem:[#allocation10 + $0xc4] sm:$0xf] }
 0x285   : > { %2675 = vmatpush.bf16.msra.mxu0 %v5313_v28 }
 0x286   : > { %v2057_v8 = vpack.c.bf16 %v2037_v33, %v2035_v31  ;;  %v7349_v43 = vpop.f32.mrf.mxu0 }
 0x287   : > { %v2005_v44 = vpop.f32.mrf.mxu3  ;;  %v1887_v13 = vadd.f32 %v7349_v43, %v7309_v1 }
 0x288   : > { %v2006_v46 = vadd.f32 %v2005_v44, %v1963_v36  ;;  %2282 = vmatmul.bf16.gmra.mxu0 %v2057_v8  ;;  %2368 = vmatmul.bf16.gmra.mxu2 %v2057_v8  ;;  %v1968_v44 = vadd.f32 %v7335_v5, %v7314_v55  ;;  %v1885_v5 = vadd.f32 %v7339_v15, %v7309_v1 }
 0x289   : > { %v1922_v34 = vpop.f32.mrf.mxu1 }
 0x28a   : > { %v2038_v48 = vmax.f32 %v2006_v46, 0.0  ;;  %v1923_v54 = vadd.f32 %v1922_v34, %v1880_v16 }
 0x28c   : > { %v2058_v58 = vpack.c.bf16 %v2038_v48, %v2036_v47  ;;  %v7351_v56 = vpop.f32.mrf.mxu2  ;;  %v2039_v36 = vmax.f32 %v1923_v54, 0.0  ;;  %v5996_v54 = vld [vmem:[#allocation10 + $0x44] sm:$0xf0] }
 0x28d   : > { %v5305_v22 = vor.u32 %v5996_v54, %v5304_v6  ;;  %v1973_v43 = vadd.f32 %v7351_v56, %v7314_v55  ;;  %v5994_v6 = vld [vmem:[#allocation10 + $0x34] sm:$0xf0] }
 0x28e   : > { %2325 = vmatmul.bf16.gmra.mxu1 %v2058_v58  ;;  %2411 = vmatmul.bf16.gmra.mxu3 %v2058_v58  ;;  %v7355_v30 = vpop.f32.mrf.mxu0  ;;  %v6010_v54 = vld [vmem:[#allocation10 + $0xb4] sm:$0xf0] }
 0x28f   : > { %v2008_v27 = vpop.f32.mrf.mxu3  ;;  %2676 = vmatpush.bf16.msra.mxu0 %v5305_v22  ;;  %v1890_v22 = vadd.f32 %v7355_v30, %v7309_v1 }
 0x290   : > { %v2009_v42 = vadd.f32 %v2008_v27, %v1966_v41 }
 0x291   : > { %v1924_v31 = vpop.f32.mrf.mxu1 }
 0x292   : > { %v1925_v33 = vadd.f32 %v1924_v31, %v1882_v60  ;;  %v2040_v7 = vmax.f32 %v2009_v42, 0.0  ;;  %v5373_v60 = vor.u32 %v6011_v59, %v5370_v23  ;;  %v5368_v31 = vld [vmem:[#allocation10 + $0xc0] sm:$0xf] }
 0x294   : > { %v2041_v20 = vmax.f32 %v1925_v33, 0.0  ;;  %v7361_v8 = vpop.f32.mrf.mxu2  ;;  %v6012_v33 = vld [vmem:[#allocation10 + $0xc4] sm:$0xf0]  ;;  %2805 = vmatpush.bf16.msrb.mxu3 %v5373_v60  ;;  %v5360_v60 = vld [vmem:[#allocation10 + $0xb0] sm:$0xf] }
 0x295   : > { %v5369_v41 = vor.u32 %v6012_v33, %v5368_v31  ;;  %v5361_v56 = vor.u32 %v6010_v54, %v5360_v60 }
 0x296   : > { %v2059_v46 = vpack.c.bf16 %v2041_v20, %v2039_v36  ;;  %v7365_v34 = vpop.f32.mrf.mxu0  ;;  %v1971_v20 = vadd.f32 %v7345_v37, %v7314_v55  ;;  %v5362_v37 = vld [vmem:[#allocation10 + $0xb8] sm:$0xf0] }
 0x297   : > { %v2010_v47 = vpop.f32.mrf.mxu3  ;;  %2719 = vmatpush.bf16.msra.mxu1 %v5369_v41  ;;  %v5991_v41 = vld [vmem:[#allocation10 + $0x24] sm:$0xf] }
 0x298   : > { %v2011_v48 = vadd.f32 %v2010_v47, %v1968_v44  ;;  %2287 = vmatmul.bf16.gmra.mxu0 %v2059_v46  ;;  %2373 = vmatmul.bf16.gmra.mxu2 %v2059_v46  ;;  %v5993_v46 = vld [vmem:[#allocation10 + $0x34] sm:$0xf]  ;;  %v5298_v47 = vld [vmem:[#allocation10 + $0x38] sm:$0xf0] }
 0x299   : > { %v1927_v58 = vpop.f32.mrf.mxu1 }
 0x29a   : > { %v2042_v57 = vmax.f32 %v2011_v48, 0.0  ;;  %v1928_v52 = vadd.f32 %v1927_v58, %v1885_v5  ;;  %v5296_v5 = vld [vmem:[#allocation10 + $0x30] sm:$0xf] }
 0x29b   : > { %2720 = vmatpush.bf16.msra.mxu1 %v5361_v56 }
 0x29c   : > { %v2060_v45 = vpack.c.bf16 %v2042_v57, %v2040_v7  ;;  %v7367_v16 = vpop.f32.mrf.mxu2  ;;  %v2043_v44 = vmax.f32 %v1928_v52, 0.0  ;;  %v5301_v7 = vor.u32 %v5993_v46, %v5298_v47  ;;  %v5288_v46 = vld [vmem:[#allocation10 + $0x20] sm:$0xf]  ;;  %v5992_v47 = vld [vmem:[#allocation10 + $0x24] sm:$0xf0] }
 0x29e   : > { %2330 = vmatmul.bf16.gmra.mxu1 %v2060_v45  ;;  %2416 = vmatmul.bf16.gmra.mxu3 %v2060_v45  ;;  %v7371_v27 = vpop.f32.mrf.mxu0  ;;  %v6009_v45 = vld [vmem:[#allocation10 + $0xb4] sm:$0xf] }
 0x29f   : > { %v2013_v28 = vpop.f32.mrf.mxu3  ;;  %2763 = vmatpush.bf16.msrb.mxu2 %v5301_v7  ;;  %v5365_v23 = vor.u32 %v6009_v45, %v5362_v37  ;;  %v1892_v7 = vadd.f32 %v7365_v34, %v7309_v1  ;;  %v5282_v37 = vld [vmem:[#allocation10 + $0x18] sm:$0xf0]  ;;  %v1976_v34 = vadd.f32 %v7361_v8, %v7314_v55 }
 0x2a0   : > { %v2014_v58 = vadd.f32 %v2013_v28, %v1971_v20 }
 0x2a1   : > { %v1929_v36 = vpop.f32.mrf.mxu1  ;;  %2806 = vmatpush.bf16.msrb.mxu3 %v5365_v23  ;;  %v5346_v23 = vld [vmem:[#allocation10 + $0x98] sm:$0xf0] }
 0x2a2   : > { %v1930_v15 = vadd.f32 %v1929_v36, %v1887_v13  ;;  %v2044_v31 = vmax.f32 %v2014_v58, 0.0  ;;  %v5297_v13 = vor.u32 %v5994_v6, %v5296_v5  ;;  %v5290_v36 = vld [vmem:[#allocation10 + $0x28] sm:$0xf0]  ;;  %v6005_v5 = vld [vmem:[#allocation10 + $0x94] sm:$0xf] }
 0x2a3   : > { %v5349_v54 = vor.u32 %v6005_v5, %v5346_v23  ;;  %v5338_v5 = vld [vmem:[#allocation10 + $0x88] sm:$0xf0] }
 0x2a4   : > { %v2045_v42 = vmax.f32 %v1930_v15, 0.0  ;;  %v7377_v48 = vpop.f32.mrf.mxu2  ;;  %2677 = vmatpush.bf16.msra.mxu0 %v5297_v13  ;;  %v6007_v15 = vld [vmem:[#allocation10 + $0xa4] sm:$0xf] }
 0x2a6   : > { %v2061_v57 = vpack.c.bf16 %v2045_v42, %v2043_v44  ;;  %v1896_v25 = vpop.f32.mrf.mxu0  ;;  %v5293_v44 = vor.u32 %v5991_v41, %v5290_v36  ;;  %v5354_v42 = vld [vmem:[#allocation10 + $0xa8] sm:$0xf0] }
 0x2a7   : > { %v2015_v9 = vpop.f32.mrf.mxu3  ;;  %v5357_v58 = vor.u32 %v6007_v15, %v5354_v42  ;;  %v5352_v25 = vld [vmem:[#allocation10 + $0xa0] sm:$0xf]  ;;  %v1895_v15 = vadd.f32 %v7371_v27, %v7309_v1 }
 0x2a8   : > { %v2016_v3 = vadd.f32 %v2015_v9, %v1973_v43  ;;  %2292 = vmatmul.bf16.gmra.mxu0 %v2061_v57  ;;  %2378 = vmatmul.bf16.gmra.mxu2 %v2061_v57  ;;  %v5289_v57 = vor.u32 %v5992_v47, %v5288_v46  ;;  %v6008_v9 = vld [vmem:[#allocation10 + $0xa4] sm:$0xf0] }
 0x2a9   : > { %v1932_v59 = vpop.f32.mrf.mxu1  ;;  %2764 = vmatpush.bf16.msrb.mxu2 %v5293_v44  ;;  %v5353_v45 = vor.u32 %v6008_v9, %v5352_v25  ;;  %2807 = vmatpush.bf16.msrb.mxu3 %v5357_v58  ;;  %v5990_v58 = vld [vmem:[#allocation10 + $0x14] sm:$0xf0] }
 0x2aa   : > { %v2046_v33 = vmax.f32 %v2016_v3, 0.0  ;;  %v1933_v43 = vadd.f32 %v1932_v59, %v1890_v22  ;;  %v5989_v3 = vld [vmem:[#allocation10 + $0x14] sm:$0xf]  ;;  %2678 = vmatpush.bf16.msra.mxu0 %v5289_v57  ;;  %v5344_v57 = vld [vmem:[#allocation10 + $0x90] sm:$0xf] }
 0x2ab   : > { %v5285_v60 = vor.u32 %v5989_v3, %v5282_v37  ;;  %2721 = vmatpush.bf16.msra.mxu1 %v5353_v45  ;;  %v6006_v3 = vld [vmem:[#allocation10 + $0x94] sm:$0xf0]  ;;  %v5987_v45 = vld [vmem:[#allocation10 + $0x4] sm:$0xf] }
 0x2ac   : > { %v2062_v28 = vpack.c.bf16 %v2046_v33, %v2044_v31  ;;  %v1982_v52 = vpop.f32.mrf.mxu2  ;;  %v2047_v59 = vmax.f32 %v1933_v43, 0.0  ;;  %v1978_v33 = vadd.f32 %v7367_v16, %v7314_v55  ;;  %v1981_v16 = vadd.f32 %v7377_v48, %v7314_v55  ;;  %v5280_v43 = vld [vmem:[#allocation10 + $0x10] sm:$0xf]  ;;  %v5274_v55 = vld [vmem:[#allocation10 + $0x8] sm:$0xf0] }
 0x2ad   : > { %2765 = vmatpush.bf16.msrb.mxu2 %v5285_v60  ;;  %2808 = vmatpush.bf16.msrb.mxu3 %v5349_v54  ;;  %v5281_v9 = vor.u32 %v5990_v58, %v5280_v43  ;;  %v5345_v1 = vor.u32 %v6006_v3, %v5344_v57  ;;  %v5277_v48 = vor.u32 %v5987_v45, %v5274_v55  ;;  %v6003_v37 = vld [vmem:[#allocation10 + $0x84] sm:$0xf]  ;;  %v5988_v60 = vld [vmem:[#allocation10 + $0x4] sm:$0xf0] }
 0x2ae   : > { %2335 = vmatmul.bf16.gmra.mxu1 %v2062_v28  ;;  %2421 = vmatmul.bf16.gmra.mxu3 %v2062_v28  ;;  %v5341_v23 = vor.u32 %v6003_v37, %v5338_v5  ;;  %v6033_v5 = vld [vmem:[#allocation12 + $0x74] sm:$0xf] }
 0x2af   : > { %v2018_v20 = vpop.f32.mrf.mxu3  ;;  %2679 = vmatpush.bf16.msra.mxu0 %v5281_v9  ;;  %2722 = vmatpush.bf16.msra.mxu1 %v5345_v1 }
 0x2b0   : > { %v2019_v13 = vadd.f32 %v2018_v20, %v1976_v34  ;;  %v5336_v34 = vld [vmem:[#allocation10 + $0x80] sm:$0xf] }
 0x2b1   : > { %v1934_v30 = vpop.f32.mrf.mxu1  ;;  %2766 = vmatpush.bf16.msrb.mxu2 %v5277_v48  ;;  %2809 = vmatpush.bf16.msrb.mxu3 %v5341_v23  ;;  %v5458_v23 = vld [vmem:[#allocation12 + $0x78] sm:$0xf0] }
 0x2b2   : > { %v1935_v6 = vadd.f32 %v1934_v30, %v1892_v7  ;;  %v2048_v41 = vmax.f32 %v2019_v13, 0.0  ;;  %v788_v13 = vld [vmem:[%s7760_s5] sm:$0x3]  ;;  %s6131_s5 = smul.u32 (%p6949_p10), 104, %s6920_s1 }
 0x2b4   : > { %v2049_v31 = vmax.f32 %v1935_v6, 0.0  ;;  %v5272_v6 = vld [vmem:[#allocation10] sm:$0xf]  ;;  %s7610_s18 = scalar_lea.vmem (%p6949_p10), %s7767_s21, %s6131_s5  }
 0x2b5   : > { %v5273_v54 = vor.u32 %v5988_v60, %v5272_v6  ;;  %v5461_v60 = vor.u32 %v6033_v5, %v5458_v23  ;;  %v6047_v23 = vld [vmem:[#allocation12 + $0xe4] sm:$0xf] }
 0x2b6   : > { %v2063_v56 = vpack.c.bf16 %v2049_v31, %v2047_v59  ;;  %v6004_v59 = vld [vmem:[#allocation10 + $0x84] sm:$0xf0] }
 0x2b7   : > { %v2020_v28 = vpop.f32.mrf.mxu3  ;;  %2680 = vmatpush.bf16.msra.mxu0 %v5273_v54  ;;  %v5337_v31 = vor.u32 %v6004_v59, %v5336_v34  ;;  %3168 = vmatpush.bf16.msra.mxu2 %v5461_v60 }
 0x2b8   : > { %v2021_v52 = vadd.f32 %v2020_v28, %v1978_v33  ;;  %2297 = vmatmul.bf16.gmra.mxu0 %v2063_v56  ;;  %2383 = vmatmul.bf16.gmra.mxu2 %v2063_v56 }
 0x2b9   : > { %v1937_v22 = vpop.f32.mrf.mxu1  ;;  %2723 = vmatpush.bf16.msra.mxu1 %v5337_v31 }
 0x2ba   : > { %v2050_v36 = vmax.f32 %v2021_v52, 0.0  ;;  %v1938_v44 = vadd.f32 %v1937_v22, %v1895_v15  ;;  %v7396_v52 = vperm.slane %v788_v13, 0 }
 0x2bc   : > { %v2064_v8 = vpack.c.bf16 %v2050_v36, %v2048_v41  ;;  %v2051_v20 = vmax.f32 %v1938_v44, 0.0 }
 0x2be   : > { %2340 = vmatmul.bf16.gmra.mxu1 %v2064_v8  ;;  %2426 = vmatmul.bf16.gmra.mxu3 %v2064_v8  ;;  %v2065_v7 = vpack.c.bf16 %v2051_v20, %v2051_v20  ;;  %v7399_v8 = vperm.slane %v788_v13, 1  ;;  %v6049_v13 = vld [vmem:[#allocation12 + $0xf4] sm:$0xf] }
 0x2bf   : > { %v2023_v42 = vpop.f32.mrf.mxu3 }
 0x2c0   : > { %v2024_v47 = vadd.f32 %v2023_v42, %v1981_v16 }
 0x2c1   : > { %v1939_v46 = vpop.f32.mrf.mxu1 }
 0x2c2   : > { %v2052_v30 = vmax.f32 %v2024_v47, 0.0 }
 0x2c4   : > { %v2066_v27 = vpack.c.bf16 %v2052_v30, %v2052_v30 }
 0x2c7   : > { %v2025_v25 = vpop.f32.mrf.mxu3 }
 0x2c8   : > { %2302 = vmatmul.bf16.gmra.mxu0 %v2065_v7  ;;  %2388 = vmatmul.bf16.gmra.mxu2 %v2065_v7 }
 0x2ce   : > { %2345 = vmatmul.bf16.gmra.mxu1 %v2066_v27  ;;  %2431 = vmatmul.bf16.gmra.mxu3 %v2066_v27 }
 0x2e5   : > { %v2273_v33 = vpop.f32.mrf.mxu0 }
 0x2e6   : > { %v2274_v41 = vadd.f32 %v2273_v33, %v7396_v52 }
 0x2eb   : > { %v2316_v56 = vpop.f32.mrf.mxu1  ;;  %v2359_v28 = vpop.f32.mrf.mxu2 }
 0x2ec   : > { %v2317_v15 = vadd.f32 %v2316_v56, %v2274_v41  ;;  %v2360_v7 = vadd.f32 %v2359_v28, %v7399_v8  ;;  %v5522_v56 = vld [vmem:[#allocation12 + $0xf8] sm:$0xf0] }
 0x2ed   : > { %v2275_v22 = vpop.f32.mrf.mxu0 }
 0x2ee   : > { %v2276_v44 = vadd.f32 %v2275_v22, %v7396_v52  ;;  %v2436_v47 = vmax.f32 %v2317_v15, 0.0  ;;  %v5525_v22 = vor.u32 %v6049_v13, %v5522_v56  ;;  %v5448_v56 = vld [vmem:[#allocation12 + $0x60] sm:$0xf] }
 0x2f0   : > { %3211 = vmatpush.bf16.msra.mxu3 %v5525_v22  ;;  %v6032_v22 = vld [vmem:[#allocation12 + $0x64] sm:$0xf0] }
 0x2f1   : > { %v2402_v36 = vpop.f32.mrf.mxu3 }
 0x2f2   : > { %v2403_v58 = vadd.f32 %v2402_v36, %v2360_v7 }
 0x2f3   : > { %v2318_v42 = vpop.f32.mrf.mxu1  ;;  %v2361_v46 = vpop.f32.mrf.mxu2 }
 0x2f4   : > { %v2319_v16 = vadd.f32 %v2318_v42, %v2276_v44  ;;  %v2362_v25 = vadd.f32 %v2361_v46, %v7399_v8  ;;  %v2437_v27 = vmax.f32 %v2403_v58, 0.0  ;;  %v5456_v44 = vld [vmem:[#allocation12 + $0x70] sm:$0xf]  ;;  %v6034_v42 = vld [vmem:[#allocation12 + $0x74] sm:$0xf0] }
 0x2f5   : > { %v2278_v20 = vpop.f32.mrf.mxu0  ;;  %v5457_v46 = vor.u32 %v6034_v42, %v5456_v44  ;;  %v5512_v42 = vld [vmem:[#allocation12 + $0xe0] sm:$0xf] }
 0x2f6   : > { %v2438_v43 = vmax.f32 %v2319_v16, 0.0  ;;  %v2279_v37 = vadd.f32 %v2278_v20, %v7396_v52  ;;  %v5520_v16 = vld [vmem:[#allocation12 + $0xf0] sm:$0xf]  ;;  %v6050_v20 = vld [vmem:[#allocation12 + $0xf4] sm:$0xf0] }
 0x2f7   : > { %v5521_v58 = vor.u32 %v6050_v20, %v5520_v16  ;;  %3082 = vmatpush.bf16.msrb.mxu0 %v5457_v46  ;;  %v6048_v46 = vld [vmem:[#allocation12 + $0xe4] sm:$0xf0] }
 0x2f8   : > { %v2462_v57 = vpack.c.bf16 %v2438_v43, %v2436_v47  ;;  %v5513_v16 = vor.u32 %v6048_v46, %v5512_v42 }
 0x2f9   : > { %v2404_v9 = vpop.f32.mrf.mxu3  ;;  %3125 = vmatpush.bf16.msrb.mxu1 %v5521_v58 }
 0x2fa   : > { %v2405_v3 = vadd.f32 %v2404_v9, %v2362_v25  ;;  %2681 = vmatmul.bf16.vlgmr.msra.gmra.mxu0 %v2462_v57  ;;  %2767 = vmatmul.bf16.vlgmr.msrb.gmra.mxu2 %v2462_v57 }
 0x2fb   : > { %v2321_v30 = vpop.f32.mrf.mxu1  ;;  %v2364_v1 = vpop.f32.mrf.mxu2 }
 0x2fc   : > { %v2439_v45 = vmax.f32 %v2405_v3, 0.0  ;;  %v2322_v54 = vadd.f32 %v2321_v30, %v2279_v37  ;;  %v2365_v36 = vadd.f32 %v2364_v1, %v7399_v8 }
 0x2fd   : > { %v2280_v55 = vpop.f32.mrf.mxu0  ;;  %3126 = vmatpush.bf16.msrb.mxu1 %v5513_v16 }
 0x2fe   : > { %v2463_v48 = vpack.c.bf16 %v2439_v45, %v2437_v27  ;;  %v2281_v34 = vadd.f32 %v2280_v55, %v7396_v52  ;;  %v2440_v41 = vmax.f32 %v2322_v54, 0.0  ;;  %v6031_v55 = vld [vmem:[#allocation12 + $0x64] sm:$0xf] }
 0x300   : > { %2724 = vmatmul.bf16.vlgmr.msra.gmra.mxu1 %v2463_v48  ;;  %2810 = vmatmul.bf16.vlgmr.msrb.gmra.mxu3 %v2463_v48  ;;  %v5450_v48 = vld [vmem:[#allocation12 + $0x68] sm:$0xf0] }
 0x301   : > { %v2407_v6 = vpop.f32.mrf.mxu3  ;;  %v5453_v37 = vor.u32 %v6031_v55, %v5450_v48  ;;  %v6045_v48 = vld [vmem:[#allocation12 + $0xd4] sm:$0xf] }
 0x302   : > { %v2408_v47 = vadd.f32 %v2407_v6, %v2365_v36  ;;  %v5514_v6 = vld [vmem:[#allocation12 + $0xe8] sm:$0xf0]  ;;  %v5449_v36 = vor.u32 %v6032_v22, %v5448_v56  ;;  %v5504_v22 = vld [vmem:[#allocation12 + $0xd0] sm:$0xf] }
 0x303   : > { %v2323_v59 = vpop.f32.mrf.mxu1  ;;  %v2366_v31 = vpop.f32.mrf.mxu2  ;;  %3169 = vmatpush.bf16.msra.mxu2 %v5453_v37  ;;  %v5517_v54 = vor.u32 %v6047_v23, %v5514_v6  ;;  %v5506_v37 = vld [vmem:[#allocation12 + $0xd8] sm:$0xf0]  ;;  %v5440_v6 = vld [vmem:[#allocation12 + $0x50] sm:$0xf] }
 0x304   : > { %v2324_v33 = vadd.f32 %v2323_v59, %v2281_v34  ;;  %v2367_v7 = vadd.f32 %v2366_v31, %v7399_v8  ;;  %v2441_v30 = vmax.f32 %v2408_v47, 0.0  ;;  %3083 = vmatpush.bf16.msrb.mxu0 %v5449_v36  ;;  %v5509_v23 = vor.u32 %v6045_v48, %v5506_v37  ;;  %v6046_v36 = vld [vmem:[#allocation12 + $0xd4] sm:$0xf0]  ;;  %v5498_v48 = vld [vmem:[#allocation12 + $0xc8] sm:$0xf0] }
 0x305   : > { %v2283_v28 = vpop.f32.mrf.mxu0  ;;  %3212 = vmatpush.bf16.msra.mxu3 %v5517_v54  ;;  %v5432_v37 = vld [vmem:[#allocation12 + $0x40] sm:$0xf] }
 0x306   : > { %v2442_v15 = vmax.f32 %v2324_v33, 0.0  ;;  %v2284_v5 = vadd.f32 %v2283_v28, %v7396_v52 }
 0x308   : > { %v2464_v43 = vpack.c.bf16 %v2442_v15, %v2440_v41 }
 0x309   : > { %v2409_v57 = vpop.f32.mrf.mxu3  ;;  %3213 = vmatpush.bf16.msra.mxu3 %v5509_v23 }
 0x30a   : > { %v2410_v25 = vadd.f32 %v2409_v57, %v2367_v7  ;;  %2686 = vmatmul.bf16.gmra.mxu0 %v2464_v43  ;;  %2772 = vmatmul.bf16.gmra.mxu2 %v2464_v43 }
 0x30b   : > { %v2326_v9 = vpop.f32.mrf.mxu1  ;;  %v2369_v3 = vpop.f32.mrf.mxu2 }
 0x30c   : > { %v2443_v1 = vmax.f32 %v2410_v25, 0.0  ;;  %v2327_v34 = vadd.f32 %v2326_v9, %v2284_v5  ;;  %v2370_v28 = vadd.f32 %v2369_v3, %v7399_v8 }
 0x30d   : > { %v2285_v27 = vpop.f32.mrf.mxu0 }
 0x30e   : > { %v2465_v45 = vpack.c.bf16 %v2443_v1, %v2441_v30  ;;  %v2286_v59 = vadd.f32 %v2285_v27, %v7396_v52  ;;  %v2444_v15 = vmax.f32 %v2327_v34, 0.0  ;;  %v6029_v27 = vld [vmem:[#allocation12 + $0x54] sm:$0xf] }
 0x310   : > { %2729 = vmatmul.bf16.gmra.mxu1 %v2465_v45  ;;  %2815 = vmatmul.bf16.gmra.mxu3 %v2465_v45  ;;  %v5442_v45 = vld [vmem:[#allocation12 + $0x58] sm:$0xf0] }
 0x311   : > { %v2412_v60 = vpop.f32.mrf.mxu3  ;;  %v5445_v55 = vor.u32 %v6029_v27, %v5442_v45 }
 0x312   : > { %v2413_v20 = vadd.f32 %v2412_v60, %v2370_v28  ;;  %v6030_v60 = vld [vmem:[#allocation12 + $0x54] sm:$0xf0] }
 0x313   : > { %v2328_v31 = vpop.f32.mrf.mxu1  ;;  %v2371_v33 = vpop.f32.mrf.mxu2  ;;  %3170 = vmatpush.bf16.msra.mxu2 %v5445_v55  ;;  %v5441_v34 = vor.u32 %v6030_v60, %v5440_v6  ;;  %v6043_v55 = vld [vmem:[#allocation12 + $0xc4] sm:$0xf]  ;;  %v6028_v6 = vld [vmem:[#allocation12 + $0x44] sm:$0xf0]  ;;  %v5496_v60 = vld [vmem:[#allocation12 + $0xc0] sm:$0xf] }
 0x314   : > { %v2329_v13 = vadd.f32 %v2328_v31, %v2286_v59  ;;  %v2372_v47 = vadd.f32 %v2371_v33, %v7399_v8  ;;  %v2445_v9 = vmax.f32 %v2413_v20, 0.0  ;;  %v5501_v23 = vor.u32 %v6043_v55, %v5498_v48 }
 0x315   : > { %v2288_v41 = vpop.f32.mrf.mxu0  ;;  %3084 = vmatpush.bf16.msrb.mxu0 %v5441_v34 }
 0x316   : > { %v2446_v44 = vmax.f32 %v2329_v13, 0.0  ;;  %v2289_v5 = vadd.f32 %v2288_v41, %v7396_v52  ;;  %v5505_v41 = vor.u32 %v6046_v36, %v5504_v22  ;;  %3214 = vmatpush.bf16.msra.mxu3 %v5501_v23 }
 0x318   : > { %v2466_v7 = vpack.c.bf16 %v2446_v44, %v2444_v15  ;;  %3127 = vmatpush.bf16.msrb.mxu1 %v5505_v41 }
 0x319   : > { %v2414_v43 = vpop.f32.mrf.mxu3 }
 0x31a   : > { %v2415_v58 = vadd.f32 %v2414_v43, %v2372_v47  ;;  %2691 = vmatmul.bf16.gmra.mxu0 %v2466_v7  ;;  %2777 = vmatmul.bf16.gmra.mxu2 %v2466_v7 }
 0x31b   : > { %v2331_v57 = vpop.f32.mrf.mxu1  ;;  %v2374_v25 = vpop.f32.mrf.mxu2 }
 0x31c   : > { %v2447_v30 = vmax.f32 %v2415_v58, 0.0  ;;  %v2332_v59 = vadd.f32 %v2331_v57, %v2289_v5  ;;  %v2375_v44 = vadd.f32 %v2374_v25, %v7399_v8 }
 0x31d   : > { %v2290_v1 = vpop.f32.mrf.mxu0 }
 0x31e   : > { %v2467_v3 = vpack.c.bf16 %v2447_v30, %v2445_v9  ;;  %v2291_v31 = vadd.f32 %v2290_v1, %v7396_v52  ;;  %v2448_v28 = vmax.f32 %v2332_v59, 0.0  ;;  %v6027_v30 = vld [vmem:[#allocation12 + $0x44] sm:$0xf]  ;;  %v5434_v1 = vld [vmem:[#allocation12 + $0x48] sm:$0xf0] }
 0x31f   : > { %v5437_v27 = vor.u32 %v6027_v30, %v5434_v1  ;;  %v5424_v30 = vld [vmem:[#allocation12 + $0x30] sm:$0xf] }
 0x320   : > { %2734 = vmatmul.bf16.gmra.mxu1 %v2467_v3  ;;  %2820 = vmatmul.bf16.gmra.mxu3 %v2467_v3 }
 0x321   : > { %v2417_v54 = vpop.f32.mrf.mxu3  ;;  %3171 = vmatpush.bf16.msra.mxu2 %v5437_v27 }
 0x322   : > { %v2418_v46 = vadd.f32 %v2417_v54, %v2375_v44  ;;  %v6044_v54 = vld [vmem:[#allocation12 + $0xc4] sm:$0xf0]  ;;  %v6025_v44 = vld [vmem:[#allocation12 + $0x34] sm:$0xf] }
 0x323   : > { %v2333_v33 = vpop.f32.mrf.mxu1  ;;  %v2376_v13 = vpop.f32.mrf.mxu2 }
 0x324   : > { %v2334_v56 = vadd.f32 %v2333_v33, %v2291_v31  ;;  %v2377_v16 = vadd.f32 %v2376_v13, %v7399_v8  ;;  %v2449_v57 = vmax.f32 %v2418_v46, 0.0  ;;  %v5433_v31 = vor.u32 %v6028_v6, %v5432_v37 }
 0x325   : > { %v2293_v15 = vpop.f32.mrf.mxu0  ;;  %v5497_v33 = vor.u32 %v6044_v54, %v5496_v60  ;;  %v6023_v54 = vld [vmem:[#allocation12 + $0x24] sm:$0xf] }
 0x326   : > { %v2450_v42 = vmax.f32 %v2334_v56, 0.0  ;;  %v2294_v25 = vadd.f32 %v2293_v15, %v7396_v52  ;;  %3085 = vmatpush.bf16.msrb.mxu0 %v5433_v31 }
 0x327   : > { %3128 = vmatpush.bf16.msrb.mxu1 %v5497_v33 }
 0x328   : > { %v2468_v20 = vpack.c.bf16 %v2450_v42, %v2448_v28  ;;  %v5426_v42 = vld [vmem:[#allocation12 + $0x38] sm:$0xf0] }
 0x329   : > { %v2419_v47 = vpop.f32.mrf.mxu3  ;;  %v5429_v46 = vor.u32 %v6025_v44, %v5426_v42  ;;  %v5480_v42 = vld [vmem:[#allocation12 + $0xa0] sm:$0xf] }
 0x32a   : > { %v2420_v7 = vadd.f32 %v2419_v47, %v2377_v16  ;;  %2696 = vmatmul.bf16.gmra.mxu0 %v2468_v20  ;;  %2782 = vmatmul.bf16.gmra.mxu2 %v2468_v20 }
 0x32b   : > { %v2336_v43 = vpop.f32.mrf.mxu1  ;;  %v2379_v58 = vpop.f32.mrf.mxu2  ;;  %3172 = vmatpush.bf16.msra.mxu2 %v5429_v46  ;;  %v6040_v46 = vld [vmem:[#allocation12 + $0xa4] sm:$0xf0] }
 0x32c   : > { %v2451_v9 = vmax.f32 %v2420_v7, 0.0  ;;  %v2337_v34 = vadd.f32 %v2336_v43, %v2294_v25  ;;  %v2380_v41 = vadd.f32 %v2379_v58, %v7399_v8  ;;  %v6026_v58 = vld [vmem:[#allocation12 + $0x34] sm:$0xf0] }
 0x32d   : > { %v2295_v3 = vpop.f32.mrf.mxu0  ;;  %v6042_v25 = vld [vmem:[#allocation12 + $0xb4] sm:$0xf0]  ;;  %v5425_v37 = vor.u32 %v6026_v58, %v5424_v30 }
 0x32e   : > { %v2469_v45 = vpack.c.bf16 %v2451_v9, %v2449_v57  ;;  %v2296_v59 = vadd.f32 %v2295_v3, %v7396_v52  ;;  %v2452_v15 = vmax.f32 %v2337_v34, 0.0  ;;  %v6041_v57 = vld [vmem:[#allocation12 + $0xb4] sm:$0xf]  ;;  %v5490_v9 = vld [vmem:[#allocation12 + $0xb8] sm:$0xf0] }
 0x32f   : > { %v5493_v27 = vor.u32 %v6041_v57, %v5490_v9  ;;  %3086 = vmatpush.bf16.msrb.mxu0 %v5425_v37  ;;  %v5418_v34 = vld [vmem:[#allocation12 + $0x28] sm:$0xf0]  ;;  %v5474_v57 = vld [vmem:[#allocation12 + $0x98] sm:$0xf0] }
 0x330   : > { %2739 = vmatmul.bf16.gmra.mxu1 %v2469_v45  ;;  %2825 = vmatmul.bf16.gmra.mxu3 %v2469_v45  ;;  %v5488_v45 = vld [vmem:[#allocation12 + $0xb0] sm:$0xf]  ;;  %v5421_v33 = vor.u32 %v6023_v54, %v5418_v34 }
 0x331   : > { %v2422_v5 = vpop.f32.mrf.mxu3  ;;  %3215 = vmatpush.bf16.msra.mxu3 %v5493_v27  ;;  %v5489_v23 = vor.u32 %v6042_v25, %v5488_v45 }
 0x332   : > { %v2423_v16 = vadd.f32 %v2422_v5, %v2380_v41  ;;  %3173 = vmatpush.bf16.msra.mxu2 %v5421_v33 }
 0x333   : > { %v2338_v13 = vpop.f32.mrf.mxu1  ;;  %v2381_v56 = vpop.f32.mrf.mxu2  ;;  %3129 = vmatpush.bf16.msrb.mxu1 %v5489_v23 }
 0x334   : > { %v2339_v22 = vadd.f32 %v2338_v13, %v2296_v59  ;;  %v2382_v20 = vadd.f32 %v2381_v56, %v7399_v8  ;;  %v2453_v55 = vmax.f32 %v2423_v16, 0.0  ;;  %v6039_v59 = vld [vmem:[#allocation12 + $0xa4] sm:$0xf]  ;;  %v5482_v13 = vld [vmem:[#allocation12 + $0xa8] sm:$0xf0] }
 0x335   : > { %v2298_v36 = vpop.f32.mrf.mxu0  ;;  %v5416_v56 = vld [vmem:[#allocation12 + $0x20] sm:$0xf]  ;;  %v6021_v16 = vld [vmem:[#allocation12 + $0x14] sm:$0xf] }
 0x336   : > { %v2454_v28 = vmax.f32 %v2339_v22, 0.0  ;;  %v2299_v60 = vadd.f32 %v2298_v36, %v7396_v52  ;;  %v6024_v22 = vld [vmem:[#allocation12 + $0x24] sm:$0xf0] }
 0x337   : > { %v5417_v44 = vor.u32 %v6024_v22, %v5416_v56 }
 0x338   : > { %v2470_v47 = vpack.c.bf16 %v2454_v28, %v2452_v15  ;;  %v5485_v28 = vor.u32 %v6039_v59, %v5482_v13 }
 0x339   : > { %v2424_v7 = vpop.f32.mrf.mxu3  ;;  %3087 = vmatpush.bf16.msrb.mxu0 %v5417_v44 }
 0x33a   : > { %v2425_v43 = vadd.f32 %v2424_v7, %v2382_v20  ;;  %2701 = vmatmul.bf16.gmra.mxu0 %v2470_v47  ;;  %2787 = vmatmul.bf16.gmra.mxu2 %v2470_v47  ;;  %v5481_v47 = vor.u32 %v6040_v46, %v5480_v42  ;;  %v5410_v7 = vld [vmem:[#allocation12 + $0x18] sm:$0xf0]  ;;  %v5408_v42 = vld [vmem:[#allocation12 + $0x10] sm:$0xf]  ;;  %v6022_v46 = vld [vmem:[#allocation12 + $0x14] sm:$0xf0] }
 0x33b   : > { %v2341_v1 = vpop.f32.mrf.mxu1  ;;  %v2384_v3 = vpop.f32.mrf.mxu2  ;;  %3216 = vmatpush.bf16.msra.mxu3 %v5485_v28  ;;  %v5413_v30 = vor.u32 %v6021_v16, %v5410_v7  ;;  %v5472_v16 = vld [vmem:[#allocation12 + $0x90] sm:$0xf] }
 0x33c   : > { %v2455_v48 = vmax.f32 %v2425_v43, 0.0  ;;  %v2342_v15 = vadd.f32 %v2341_v1, %v2299_v60  ;;  %v6037_v43 = vld [vmem:[#allocation12 + $0x94] sm:$0xf]  ;;  %3130 = vmatpush.bf16.msrb.mxu1 %v5481_v47  ;;  %v2385_v45 = vadd.f32 %v2384_v3, %v7399_v8  ;;  %v6038_v47 = vld [vmem:[#allocation12 + $0x94] sm:$0xf0] }
 0x33d   : > { %v2300_v5 = vpop.f32.mrf.mxu0  ;;  %v5477_v1 = vor.u32 %v6037_v43, %v5474_v57  ;;  %3174 = vmatpush.bf16.msra.mxu2 %v5413_v30  ;;  %v6019_v57 = vld [vmem:[#allocation12 + $0x4] sm:$0xf] }
 0x33e   : > { %v2471_v6 = vpack.c.bf16 %v2455_v48, %v2453_v55  ;;  %v2301_v41 = vadd.f32 %v2300_v5, %v7396_v52  ;;  %v2456_v58 = vmax.f32 %v2342_v15, 0.0  ;;  %v6035_v30 = vld [vmem:[#allocation12 + $0x84] sm:$0xf] }
 0x33f   : > { %3217 = vmatpush.bf16.msra.mxu3 %v5477_v1 }
 0x340   : > { %2744 = vmatmul.bf16.gmra.mxu1 %v2471_v6  ;;  %2830 = vmatmul.bf16.gmra.mxu3 %v2471_v6 }
 0x341   : > { %v2427_v31 = vpop.f32.mrf.mxu3 }
 0x342   : > { %v2428_v55 = vadd.f32 %v2427_v31, %v2385_v45  ;;  %v6020_v45 = vld [vmem:[#allocation12 + $0x4] sm:$0xf0] }
 0x343   : > { %v2343_v20 = vpop.f32.mrf.mxu1  ;;  %v2386_v36 = vpop.f32.mrf.mxu2 }
 0x344   : > { %v2344_v9 = vadd.f32 %v2343_v20, %v2301_v41  ;;  %v2387_v48 = vadd.f32 %v2386_v36, %v7399_v8  ;;  %v2457_v54 = vmax.f32 %v2428_v55, 0.0  ;;  %v5409_v36 = vor.u32 %v6022_v46, %v5408_v42  ;;  %v5464_v55 = vld [vmem:[#allocation12 + $0x80] sm:$0xf] }
 0x345   : > { %v2303_v27 = vpop.f32.mrf.mxu0 }
 0x346   : > { %v2458_v25 = vmax.f32 %v2344_v9, 0.0  ;;  %v2304_v33 = vadd.f32 %v2303_v27, %v7396_v52  ;;  %v5473_v52 = vor.u32 %v6038_v47, %v5472_v16  ;;  %3088 = vmatpush.bf16.msrb.mxu0 %v5409_v36  ;;  %v5402_v9 = vld [vmem:[#allocation12 + $0x8] sm:$0xf0] }
 0x347   : > { %v5466_v27 = vld [vmem:[#allocation12 + $0x88] sm:$0xf0] }
 0x348   : > { %v2472_v37 = vpack.c.bf16 %v2458_v25, %v2456_v58  ;;  %3131 = vmatpush.bf16.msrb.mxu1 %v5473_v52  ;;  %v5469_v1 = vor.u32 %v6035_v30, %v5466_v27  ;;  %v5400_v58 = vld [vmem:[#allocation12] sm:$0xf] }
 0x349   : > { %v2429_v5 = vpop.f32.mrf.mxu3  ;;  %v5401_v25 = vor.u32 %v6020_v45, %v5400_v58 }
 0x34a   : > { %v2430_v23 = vadd.f32 %v2429_v5, %v2387_v48  ;;  %2706 = vmatmul.bf16.gmra.mxu0 %v2472_v37  ;;  %2792 = vmatmul.bf16.gmra.mxu2 %v2472_v37  ;;  %v6036_v48 = vld [vmem:[#allocation12 + $0x84] sm:$0xf0] }
 0x34b   : > { %v2346_v6 = vpop.f32.mrf.mxu1  ;;  %v2389_v60 = vpop.f32.mrf.mxu2  ;;  %3218 = vmatpush.bf16.msra.mxu3 %v5469_v1  ;;  %3089 = vmatpush.bf16.msrb.mxu0 %v5401_v25  ;;  %v5465_v37 = vor.u32 %v6036_v48, %v5464_v55  ;;  %v6065_v48 = vld [vmem:[#allocation13 + $0x74] sm:$0xf] }
 0x34c   : > { %v2459_v34 = vmax.f32 %v2430_v23, 0.0  ;;  %v2347_v3 = vadd.f32 %v2346_v6, %v2304_v33  ;;  %v2390_v41 = vadd.f32 %v2389_v60, %v7399_v8  ;;  %v5405_v8 = vor.u32 %v6019_v57, %v5402_v9  ;;  %v789_v23 = vld [vmem:[%s7761_s0] sm:$0x3] }
 0x34d   : > { %v2305_v59 = vpop.f32.mrf.mxu0  ;;  %3132 = vmatpush.bf16.msrb.mxu1 %v5465_v37  ;;  %v5586_v37 = vld [vmem:[#allocation13 + $0x78] sm:$0xf0] }
 0x34e   : > { %v2473_v13 = vpack.c.bf16 %v2459_v34, %v2457_v54  ;;  %v2460_v15 = vmax.f32 %v2347_v3, 0.0  ;;  %3175 = vmatpush.bf16.msra.mxu2 %v5405_v8  ;;  %v7429_v54 = vperm.slane %v789_v23, 0  ;;  %v7432_v3 = vperm.slane %v789_v23, 1 }
 0x34f   : > { %v5589_v23 = vor.u32 %v6065_v48, %v5586_v37  ;;  %v6079_v37 = vld [vmem:[#allocation13 + $0xe4] sm:$0xf] }
 0x350   : > { %2749 = vmatmul.bf16.gmra.mxu1 %v2473_v13  ;;  %2835 = vmatmul.bf16.gmra.mxu3 %v2473_v13  ;;  %v2474_v44 = vpack.c.bf16 %v2460_v15, %v2460_v15 }
 0x351   : > { %v2432_v31 = vpop.f32.mrf.mxu3 }
 0x352   : > { %v2433_v28 = vadd.f32 %v2432_v31, %v2390_v41  ;;  %3603 = vmatpush.bf16.msrb.mxu2 %v5589_v23  ;;  %v5642_v23 = vld [vmem:[#allocation13 + $0xe8] sm:$0xf0] }
 0x353   : > { %v2348_v56 = vpop.f32.mrf.mxu1  ;;  %v2391_v22 = vpop.f32.mrf.mxu2 }
 0x354   : > { %v2461_v7 = vmax.f32 %v2433_v28, 0.0 }
 0x356   : > { %v2475_v43 = vpack.c.bf16 %v2461_v7, %v2461_v7 }
 0x359   : > { %v2434_v20 = vpop.f32.mrf.mxu3 }
 0x35a   : > { %2711 = vmatmul.bf16.gmra.mxu0 %v2474_v44  ;;  %2797 = vmatmul.bf16.gmra.mxu2 %v2474_v44 }
 0x360   : > { %2754 = vmatmul.bf16.gmra.mxu1 %v2475_v43  ;;  %2840 = vmatmul.bf16.gmra.mxu3 %v2475_v43 }
 0x377   : > { %v2682_v5 = vpop.f32.mrf.mxu0 }
 0x378   : > { %v2683_v59 = vadd.f32 %v2682_v5, %v7429_v54 }
 0x37d   : > { %v2725_v6 = vpop.f32.mrf.mxu1  ;;  %v2768_v60 = vpop.f32.mrf.mxu2 }
 0x37e   : > { %v2726_v13 = vadd.f32 %v2725_v6, %v2683_v59  ;;  %v2769_v44 = vadd.f32 %v2768_v60, %v7432_v3  ;;  %v6081_v59 = vld [vmem:[#allocation13 + $0xf4] sm:$0xf] }
 0x37f   : > { %v2684_v34 = vpop.f32.mrf.mxu0 }
 0x380   : > { %v2685_v31 = vadd.f32 %v2684_v34, %v7429_v54  ;;  %v2845_v28 = vmax.f32 %v2726_v13, 0.0 }
 0x383   : > { %v2811_v33 = vpop.f32.mrf.mxu3 }
 0x384   : > { %v2812_v46 = vadd.f32 %v2811_v33, %v2769_v44  ;;  %v5650_v33 = vld [vmem:[#allocation13 + $0xf8] sm:$0xf0] }
 0x385   : > { %v2727_v56 = vpop.f32.mrf.mxu1  ;;  %v2770_v22 = vpop.f32.mrf.mxu2  ;;  %v5653_v13 = vor.u32 %v6081_v59, %v5650_v33  ;;  %v5576_v33 = vld [vmem:[#allocation13 + $0x60] sm:$0xf] }
 0x386   : > { %v2728_v15 = vadd.f32 %v2727_v56, %v2685_v31  ;;  %v2771_v20 = vadd.f32 %v2770_v22, %v7432_v3  ;;  %v2846_v43 = vmax.f32 %v2812_v46, 0.0  ;;  %v5584_v31 = vld [vmem:[#allocation13 + $0x70] sm:$0xf]  ;;  %v6066_v56 = vld [vmem:[#allocation13 + $0x74] sm:$0xf0] }
 0x387   : > { %v2687_v41 = vpop.f32.mrf.mxu0  ;;  %v5648_v22 = vld [vmem:[#allocation13 + $0xf0] sm:$0xf]  ;;  %v5585_v44 = vor.u32 %v6066_v56, %v5584_v31  ;;  %3646 = vmatpush.bf16.msrb.mxu3 %v5653_v13  ;;  %v6064_v13 = vld [vmem:[#allocation13 + $0x64] sm:$0xf0]  ;;  %v5640_v56 = vld [vmem:[#allocation13 + $0xe0] sm:$0xf] }
 0x388   : > { %v2847_v42 = vmax.f32 %v2728_v15, 0.0  ;;  %v2688_v30 = vadd.f32 %v2687_v41, %v7429_v54  ;;  %v5577_v31 = vor.u32 %v6064_v13, %v5576_v33  ;;  %v5632_v13 = vld [vmem:[#allocation13 + $0xd0] sm:$0xf] }
 0x389   : > { %3517 = vmatpush.bf16.msra.mxu0 %v5585_v44 }
 0x38a   : > { %v2871_v16 = vpack.c.bf16 %v2847_v42, %v2845_v28  ;;  %v6082_v42 = vld [vmem:[#allocation13 + $0xf4] sm:$0xf0] }
 0x38b   : > { %v2813_v36 = vpop.f32.mrf.mxu3 }
 0x38c   : > { %v2814_v47 = vadd.f32 %v2813_v36, %v2771_v20  ;;  %3090 = vmatmul.bf16.vlgmr.msrb.gmra.mxu0 %v2871_v16  ;;  %3176 = vmatmul.bf16.vlgmr.msra.gmra.mxu2 %v2871_v16  ;;  %v5649_v16 = vor.u32 %v6082_v42, %v5648_v22  ;;  %v6080_v22 = vld [vmem:[#allocation13 + $0xe4] sm:$0xf0] }
 0x38d   : > { %v2730_v7 = vpop.f32.mrf.mxu1  ;;  %v2773_v52 = vpop.f32.mrf.mxu2  ;;  %v5641_v44 = vor.u32 %v6080_v22, %v5640_v56  ;;  %3518 = vmatpush.bf16.msra.mxu0 %v5577_v31  ;;  %v6078_v31 = vld [vmem:[#allocation13 + $0xd4] sm:$0xf0] }
 0x38e   : > { %v2848_v57 = vmax.f32 %v2814_v47, 0.0  ;;  %v2731_v1 = vadd.f32 %v2730_v7, %v2688_v30  ;;  %v2774_v60 = vadd.f32 %v2773_v52, %v7432_v3  ;;  %3560 = vmatpush.bf16.msra.mxu1 %v5649_v16  ;;  %v5578_v30 = vld [vmem:[#allocation13 + $0x68] sm:$0xf0]  ;;  %v5633_v56 = vor.u32 %v6078_v31, %v5632_v13 }
 0x38f   : > { %v2689_v9 = vpop.f32.mrf.mxu0 }
 0x390   : > { %v2872_v8 = vpack.c.bf16 %v2848_v57, %v2846_v43  ;;  %v2690_v58 = vadd.f32 %v2689_v9, %v7429_v54  ;;  %v2849_v6 = vmax.f32 %v2731_v1, 0.0 }
 0x392   : > { %3133 = vmatmul.bf16.vlgmr.msrb.gmra.mxu1 %v2872_v8  ;;  %3219 = vmatmul.bf16.vlgmr.msra.gmra.mxu3 %v2872_v8  ;;  %v6063_v8 = vld [vmem:[#allocation13 + $0x64] sm:$0xf] }
 0x393   : > { %v2816_v27 = vpop.f32.mrf.mxu3  ;;  %v5581_v1 = vor.u32 %v6063_v8, %v5578_v30  ;;  %3561 = vmatpush.bf16.msra.mxu1 %v5641_v44  ;;  %v6077_v30 = vld [vmem:[#allocation13 + $0xd4] sm:$0xf] }
 0x394   : > { %v2817_v15 = vadd.f32 %v2816_v27, %v2774_v60  ;;  %v5645_v60 = vor.u32 %v6079_v37, %v5642_v23  ;;  %v5568_v23 = vld [vmem:[#allocation13 + $0x50] sm:$0xf] }
 0x395   : > { %v2732_v45 = vpop.f32.mrf.mxu1  ;;  %v2775_v25 = vpop.f32.mrf.mxu2  ;;  %3604 = vmatpush.bf16.msrb.mxu2 %v5581_v1 }
 0x396   : > { %v2733_v55 = vadd.f32 %v2732_v45, %v2690_v58  ;;  %v2776_v41 = vadd.f32 %v2775_v25, %v7432_v3  ;;  %v2850_v7 = vmax.f32 %v2817_v15, 0.0  ;;  %3647 = vmatpush.bf16.msrb.mxu3 %v5645_v60  ;;  %v6062_v60 = vld [vmem:[#allocation13 + $0x54] sm:$0xf0] }
 0x397   : > { %v2692_v5 = vpop.f32.mrf.mxu0  ;;  %3562 = vmatpush.bf16.msra.mxu1 %v5633_v56 }
 0x398   : > { %v2851_v34 = vmax.f32 %v2733_v55, 0.0  ;;  %v2693_v9 = vadd.f32 %v2692_v5, %v7429_v54 }
 0x39a   : > { %v2873_v28 = vpack.c.bf16 %v2851_v34, %v2849_v6 }
 0x39b   : > { %v2818_v46 = vpop.f32.mrf.mxu3 }
 0x39c   : > { %v2819_v20 = vadd.f32 %v2818_v46, %v2776_v41  ;;  %3095 = vmatmul.bf16.gmra.mxu0 %v2873_v28  ;;  %3181 = vmatmul.bf16.gmra.mxu2 %v2873_v28 }
 0x39d   : > { %v2735_v36 = vpop.f32.mrf.mxu1  ;;  %v2778_v47 = vpop.f32.mrf.mxu2 }
 0x39e   : > { %v2852_v52 = vmax.f32 %v2819_v20, 0.0  ;;  %v2736_v58 = vadd.f32 %v2735_v36, %v2693_v9  ;;  %v2779_v5 = vadd.f32 %v2778_v47, %v7432_v3 }
 0x39f   : > { %v2694_v43 = vpop.f32.mrf.mxu0 }
 0x3a0   : > { %v2874_v57 = vpack.c.bf16 %v2852_v52, %v2850_v7  ;;  %v2695_v45 = vadd.f32 %v2694_v43, %v7429_v54  ;;  %v2853_v34 = vmax.f32 %v2736_v58, 0.0  ;;  %v6061_v43 = vld [vmem:[#allocation13 + $0x54] sm:$0xf] }
 0x3a2   : > { %3138 = vmatmul.bf16.gmra.mxu1 %v2874_v57  ;;  %3224 = vmatmul.bf16.gmra.mxu3 %v2874_v57  ;;  %v5570_v57 = vld [vmem:[#allocation13 + $0x58] sm:$0xf0] }
 0x3a3   : > { %v2821_v27 = vpop.f32.mrf.mxu3  ;;  %v5573_v9 = vor.u32 %v6061_v43, %v5570_v57  ;;  %v5562_v43 = vld [vmem:[#allocation13 + $0x48] sm:$0xf0]  ;;  %v6075_v57 = vld [vmem:[#allocation13 + $0xc4] sm:$0xf] }
 0x3a4   : > { %v2822_v15 = vadd.f32 %v2821_v27, %v2779_v5  ;;  %v5634_v27 = vld [vmem:[#allocation13 + $0xd8] sm:$0xf0]  ;;  %v5569_v5 = vor.u32 %v6062_v60, %v5568_v23 }
 0x3a5   : > { %v2737_v25 = vpop.f32.mrf.mxu1  ;;  %v2780_v55 = vpop.f32.mrf.mxu2  ;;  %3605 = vmatpush.bf16.msrb.mxu2 %v5573_v9  ;;  %v5637_v58 = vor.u32 %v6077_v30, %v5634_v27  ;;  %v5626_v30 = vld [vmem:[#allocation13 + $0xc8] sm:$0xf0]  ;;  %v5560_v27 = vld [vmem:[#allocation13 + $0x40] sm:$0xf] }
 0x3a6   : > { %v2738_v48 = vadd.f32 %v2737_v25, %v2695_v45  ;;  %v2781_v41 = vadd.f32 %v2780_v55, %v7432_v3  ;;  %v2854_v36 = vmax.f32 %v2822_v15, 0.0  ;;  %3519 = vmatpush.bf16.msra.mxu0 %v5569_v5 }
 0x3a7   : > { %v2697_v6 = vpop.f32.mrf.mxu0  ;;  %3648 = vmatpush.bf16.msrb.mxu3 %v5637_v58 }
 0x3a8   : > { %v2855_v59 = vmax.f32 %v2738_v48, 0.0  ;;  %v2698_v8 = vadd.f32 %v2697_v6, %v7429_v54 }
 0x3aa   : > { %v2875_v28 = vpack.c.bf16 %v2855_v59, %v2853_v34 }
 0x3ab   : > { %v2823_v42 = vpop.f32.mrf.mxu3 }
 0x3ac   : > { %v2824_v46 = vadd.f32 %v2823_v42, %v2781_v41  ;;  %3100 = vmatmul.bf16.gmra.mxu0 %v2875_v28  ;;  %3186 = vmatmul.bf16.gmra.mxu2 %v2875_v28 }
 0x3ad   : > { %v2740_v16 = vpop.f32.mrf.mxu1  ;;  %v2783_v20 = vpop.f32.mrf.mxu2 }
 0x3ae   : > { %v2856_v47 = vmax.f32 %v2824_v46, 0.0  ;;  %v2741_v45 = vadd.f32 %v2740_v16, %v2698_v8  ;;  %v2784_v6 = vadd.f32 %v2783_v20, %v7432_v3 }
 0x3af   : > { %v2699_v7 = vpop.f32.mrf.mxu0 }
 0x3b0   : > { %v2876_v52 = vpack.c.bf16 %v2856_v47, %v2854_v36  ;;  %v2700_v25 = vadd.f32 %v2699_v7, %v7429_v54  ;;  %v2857_v59 = vmax.f32 %v2741_v45, 0.0 }
 0x3b2   : > { %3143 = vmatmul.bf16.gmra.mxu1 %v2876_v52  ;;  %3229 = vmatmul.bf16.gmra.mxu3 %v2876_v52  ;;  %v6059_v52 = vld [vmem:[#allocation13 + $0x44] sm:$0xf] }
 0x3b3   : > { %v2826_v1 = vpop.f32.mrf.mxu3  ;;  %v5565_v8 = vor.u32 %v6059_v52, %v5562_v43 }
 0x3b4   : > { %v2827_v22 = vadd.f32 %v2826_v1, %v2784_v6  ;;  %v6060_v1 = vld [vmem:[#allocation13 + $0x44] sm:$0xf0]  ;;  %v5624_v6 = vld [vmem:[#allocation13 + $0xc0] sm:$0xf] }
 0x3b5   : > { %v2742_v55 = vpop.f32.mrf.mxu1  ;;  %v2785_v48 = vpop.f32.mrf.mxu2  ;;  %3606 = vmatpush.bf16.msrb.mxu2 %v5565_v8 }
 0x3b6   : > { %v2743_v37 = vadd.f32 %v2742_v55, %v2700_v25  ;;  %v2786_v15 = vadd.f32 %v2785_v48, %v7432_v3  ;;  %v2858_v16 = vmax.f32 %v2827_v22, 0.0  ;;  %v5629_v25 = vor.u32 %v6075_v57, %v5626_v30 }
 0x3b7   : > { %v2702_v34 = vpop.f32.mrf.mxu0  ;;  %v5561_v55 = vor.u32 %v6060_v1, %v5560_v27  ;;  %v5616_v1 = vld [vmem:[#allocation13 + $0xb0] sm:$0xf] }
 0x3b8   : > { %v2859_v33 = vmax.f32 %v2743_v37, 0.0  ;;  %v2703_v7 = vadd.f32 %v2702_v34, %v7429_v54  ;;  %3649 = vmatpush.bf16.msrb.mxu3 %v5629_v25 }
 0x3b9   : > { %3520 = vmatpush.bf16.msra.mxu0 %v5561_v55 }
 0x3ba   : > { %v2877_v41 = vpack.c.bf16 %v2859_v33, %v2857_v59  ;;  %v6076_v33 = vld [vmem:[#allocation13 + $0xc4] sm:$0xf0] }
 0x3bb   : > { %v2828_v28 = vpop.f32.mrf.mxu3  ;;  %v5625_v13 = vor.u32 %v6076_v33, %v5624_v6  ;;  %v5544_v33 = vld [vmem:[#allocation13 + $0x20] sm:$0xf] }
 0x3bc   : > { %v2829_v44 = vadd.f32 %v2828_v28, %v2786_v15  ;;  %3105 = vmatmul.bf16.gmra.mxu0 %v2877_v41  ;;  %3191 = vmatmul.bf16.gmra.mxu2 %v2877_v41  ;;  %v6057_v28 = vld [vmem:[#allocation13 + $0x34] sm:$0xf] }
 0x3bd   : > { %v2745_v42 = vpop.f32.mrf.mxu1  ;;  %v2788_v46 = vpop.f32.mrf.mxu2  ;;  %3563 = vmatpush.bf16.msra.mxu1 %v5625_v13  ;;  %v6056_v13 = vld [vmem:[#allocation13 + $0x24] sm:$0xf0] }
 0x3be   : > { %v2860_v36 = vmax.f32 %v2829_v44, 0.0  ;;  %v2746_v58 = vadd.f32 %v2745_v42, %v2703_v7  ;;  %v2789_v5 = vadd.f32 %v2788_v46, %v7432_v3  ;;  %v5554_v44 = vld [vmem:[#allocation13 + $0x38] sm:$0xf0]  ;;  %v6073_v42 = vld [vmem:[#allocation13 + $0xb4] sm:$0xf] }
 0x3bf   : > { %v2704_v47 = vpop.f32.mrf.mxu0  ;;  %v5618_v46 = vld [vmem:[#allocation13 + $0xb8] sm:$0xf0]  ;;  %v6058_v7 = vld [vmem:[#allocation13 + $0x34] sm:$0xf0] }
 0x3c0   : > { %v2878_v20 = vpack.c.bf16 %v2860_v36, %v2858_v16  ;;  %v2705_v45 = vadd.f32 %v2704_v47, %v7429_v54  ;;  %v2861_v34 = vmax.f32 %v2746_v58, 0.0  ;;  %v5557_v47 = vor.u32 %v6057_v28, %v5554_v44  ;;  %v6074_v58 = vld [vmem:[#allocation13 + $0xb4] sm:$0xf0]  ;;  %v5538_v28 = vld [vmem:[#allocation13 + $0x18] sm:$0xf0] }
 0x3c1   : > { %v5621_v57 = vor.u32 %v6073_v42, %v5618_v46  ;;  %v5617_v55 = vor.u32 %v6074_v58, %v5616_v1 }
 0x3c2   : > { %3148 = vmatmul.bf16.gmra.mxu1 %v2878_v20  ;;  %3234 = vmatmul.bf16.gmra.mxu3 %v2878_v20  ;;  %v5552_v20 = vld [vmem:[#allocation13 + $0x30] sm:$0xf] }
 0x3c3   : > { %v2831_v9 = vpop.f32.mrf.mxu3  ;;  %3607 = vmatpush.bf16.msrb.mxu2 %v5557_v47  ;;  %v5553_v8 = vor.u32 %v6058_v7, %v5552_v20  ;;  %3650 = vmatpush.bf16.msrb.mxu3 %v5621_v57 }
 0x3c4   : > { %v2832_v31 = vadd.f32 %v2831_v9, %v2789_v5  ;;  %3564 = vmatpush.bf16.msra.mxu1 %v5617_v55 }
 0x3c5   : > { %v2747_v48 = vpop.f32.mrf.mxu1  ;;  %v2790_v37 = vpop.f32.mrf.mxu2  ;;  %3521 = vmatpush.bf16.msra.mxu0 %v5553_v8 }
 0x3c6   : > { %v2748_v23 = vadd.f32 %v2747_v48, %v2705_v45  ;;  %v2791_v56 = vadd.f32 %v2790_v37, %v7432_v3  ;;  %v2862_v52 = vmax.f32 %v2832_v31, 0.0  ;;  %v6055_v45 = vld [vmem:[#allocation13 + $0x24] sm:$0xf]  ;;  %v5546_v48 = vld [vmem:[#allocation13 + $0x28] sm:$0xf0] }
 0x3c7   : > { %v2707_v60 = vpop.f32.mrf.mxu0  ;;  %v6071_v37 = vld [vmem:[#allocation13 + $0xa4] sm:$0xf]  ;;  %v5608_v31 = vld [vmem:[#allocation13 + $0xa0] sm:$0xf] }
 0x3c8   : > { %v2863_v59 = vmax.f32 %v2748_v23, 0.0  ;;  %v2708_v27 = vadd.f32 %v2707_v60, %v7429_v54  ;;  %v5610_v23 = vld [vmem:[#allocation13 + $0xa8] sm:$0xf0] }
 0x3c9   : > { %v5613_v6 = vor.u32 %v6071_v37, %v5610_v23 }
 0x3ca   : > { %v2879_v22 = vpack.c.bf16 %v2863_v59, %v2861_v34  ;;  %v5549_v59 = vor.u32 %v6055_v45, %v5546_v48 }
 0x3cb   : > { %v2833_v15 = vpop.f32.mrf.mxu3  ;;  %3651 = vmatpush.bf16.msrb.mxu3 %v5613_v6 }
 0x3cc   : > { %v2834_v41 = vadd.f32 %v2833_v15, %v2791_v56  ;;  %3110 = vmatmul.bf16.gmra.mxu0 %v2879_v22  ;;  %3196 = vmatmul.bf16.gmra.mxu2 %v2879_v22  ;;  %v5545_v22 = vor.u32 %v6056_v13, %v5544_v33  ;;  %v6072_v15 = vld [vmem:[#allocation13 + $0xa4] sm:$0xf0]  ;;  %v6069_v33 = vld [vmem:[#allocation13 + $0x94] sm:$0xf]  ;;  %v5602_v13 = vld [vmem:[#allocation13 + $0x98] sm:$0xf0] }
 0x3cd   : > { %v2750_v16 = vpop.f32.mrf.mxu1  ;;  %v2793_v36 = vpop.f32.mrf.mxu2  ;;  %3608 = vmatpush.bf16.msrb.mxu2 %v5549_v59  ;;  %v5609_v42 = vor.u32 %v6072_v15, %v5608_v31  ;;  %v5536_v31 = vld [vmem:[#allocation13 + $0x10] sm:$0xf] }
 0x3ce   : > { %v2864_v43 = vmax.f32 %v2834_v41, 0.0  ;;  %v2751_v34 = vadd.f32 %v2750_v16, %v2708_v27  ;;  %v6053_v41 = vld [vmem:[#allocation13 + $0x14] sm:$0xf]  ;;  %3522 = vmatpush.bf16.msra.mxu0 %v5545_v22  ;;  %v2794_v20 = vadd.f32 %v2793_v36, %v7432_v3  ;;  %v6054_v22 = vld [vmem:[#allocation13 + $0x14] sm:$0xf0] }
 0x3cf   : > { %v2709_v9 = vpop.f32.mrf.mxu0  ;;  %v5541_v16 = vor.u32 %v6053_v41, %v5538_v28  ;;  %3565 = vmatpush.bf16.msra.mxu1 %v5609_v42  ;;  %v5600_v15 = vld [vmem:[#allocation13 + $0x90] sm:$0xf]  ;;  %v5537_v28 = vor.u32 %v6054_v22, %v5536_v31 }
 0x3d0   : > { %v2880_v30 = vpack.c.bf16 %v2864_v43, %v2862_v52  ;;  %v2710_v5 = vadd.f32 %v2709_v9, %v7429_v54  ;;  %v2865_v46 = vmax.f32 %v2751_v34, 0.0 }
 0x3d1   : > { %3609 = vmatpush.bf16.msrb.mxu2 %v5541_v16 }
 0x3d2   : > { %3153 = vmatmul.bf16.gmra.mxu1 %v2880_v30  ;;  %3239 = vmatmul.bf16.gmra.mxu3 %v2880_v30 }
 0x3d3   : > { %v2836_v25 = vpop.f32.mrf.mxu3  ;;  %3523 = vmatpush.bf16.msra.mxu0 %v5537_v28 }
 0x3d4   : > { %v2837_v52 = vadd.f32 %v2836_v25, %v2794_v20  ;;  %v6052_v20 = vld [vmem:[#allocation13 + $0x4] sm:$0xf0] }
 0x3d5   : > { %v2752_v56 = vpop.f32.mrf.mxu1  ;;  %v2795_v60 = vpop.f32.mrf.mxu2 }
 0x3d6   : > { %v2753_v44 = vadd.f32 %v2752_v56, %v2710_v5  ;;  %v2796_v43 = vadd.f32 %v2795_v60, %v7432_v3  ;;  %v2866_v1 = vmax.f32 %v2837_v52, 0.0  ;;  %v5605_v60 = vor.u32 %v6069_v33, %v5602_v13  ;;  %v6067_v52 = vld [vmem:[#allocation13 + $0x84] sm:$0xf] }
 0x3d7   : > { %v2712_v47 = vpop.f32.mrf.mxu0 }
 0x3d8   : > { %v2867_v7 = vmax.f32 %v2753_v44, 0.0  ;;  %v2713_v55 = vadd.f32 %v2712_v47, %v7429_v54  ;;  %v6070_v54 = vld [vmem:[#allocation13 + $0x94] sm:$0xf0]  ;;  %3652 = vmatpush.bf16.msrb.mxu3 %v5605_v60  ;;  %v5530_v47 = vld [vmem:[#allocation13 + $0x8] sm:$0xf0] }
 0x3d9   : > { %v5601_v44 = vor.u32 %v6070_v54, %v5600_v15 }
 0x3da   : > { %v2881_v57 = vpack.c.bf16 %v2867_v7, %v2865_v46  ;;  %v5528_v46 = vld [vmem:[#allocation13] sm:$0xf] }
 0x3db   : > { %v2838_v9 = vpop.f32.mrf.mxu3  ;;  %3566 = vmatpush.bf16.msra.mxu1 %v5601_v44  ;;  %v5529_v7 = vor.u32 %v6052_v20, %v5528_v46 }
 0x3dc   : > { %v2839_v8 = vadd.f32 %v2838_v9, %v2796_v43  ;;  %3115 = vmatmul.bf16.gmra.mxu0 %v2881_v57  ;;  %3201 = vmatmul.bf16.gmra.mxu2 %v2881_v57  ;;  %v5594_v43 = vld [vmem:[#allocation13 + $0x88] sm:$0xf0]  ;;  %v5592_v57 = vld [vmem:[#allocation13 + $0x80] sm:$0xf] }
 0x3dd   : > { %v2755_v30 = vpop.f32.mrf.mxu1  ;;  %v2798_v27 = vpop.f32.mrf.mxu2  ;;  %3524 = vmatpush.bf16.msra.mxu0 %v5529_v7  ;;  %v5597_v9 = vor.u32 %v6067_v52, %v5594_v43 }
 0x3de   : > { %v2868_v58 = vmax.f32 %v2839_v8, 0.0  ;;  %v2756_v36 = vadd.f32 %v2755_v30, %v2713_v55  ;;  %v2799_v5 = vadd.f32 %v2798_v27, %v7432_v3  ;;  %v6051_v3 = vld [vmem:[#allocation13 + $0x4] sm:$0xf]  ;;  %v6068_v8 = vld [vmem:[#allocation13 + $0x84] sm:$0xf0] }
 0x3df   : > { %v2714_v45 = vpop.f32.mrf.mxu0  ;;  %v5533_v16 = vor.u32 %v6051_v3, %v5530_v47  ;;  %v5593_v30 = vor.u32 %v6068_v8, %v5592_v57  ;;  %3653 = vmatpush.bf16.msrb.mxu3 %v5597_v9 }
 0x3e0   : > { %v2882_v48 = vpack.c.bf16 %v2868_v58, %v2866_v1  ;;  %v2869_v34 = vmax.f32 %v2756_v36, 0.0  ;;  %v790_v1 = vld [vmem:[%s7762_s13] sm:$0x3] }
 0x3e1   : > { %3610 = vmatpush.bf16.msrb.mxu2 %v5533_v16  ;;  %3567 = vmatpush.bf16.msra.mxu1 %v5593_v30  ;;  %v7462_v58 = vperm.slane %v790_v1, 0 }
 0x3e2   : > { %3158 = vmatmul.bf16.gmra.mxu1 %v2882_v48  ;;  %3244 = vmatmul.bf16.gmra.mxu3 %v2882_v48  ;;  %v2883_v6 = vpack.c.bf16 %v2869_v34, %v2869_v34 }
 0x3e3   : > { %v2841_v25 = vpop.f32.mrf.mxu3 }
 0x3e4   : > { %v2842_v59 = vadd.f32 %v2841_v25, %v2799_v5 }
 0x3e5   : > { %v2757_v37 = vpop.f32.mrf.mxu1  ;;  %v2800_v23 = vpop.f32.mrf.mxu2 }
 0x3e6   : > { %v2870_v41 = vmax.f32 %v2842_v59, 0.0  ;;  %v7465_v37 = vperm.slane %v790_v1, 1 }
 0x3e8   : > { %v2884_v42 = vpack.c.bf16 %v2870_v41, %v2870_v41 }
 0x3eb   : > { %v2843_v56 = vpop.f32.mrf.mxu3 }
 0x3ec   : > { %3120 = vmatmul.bf16.gmra.mxu0 %v2883_v6  ;;  %3206 = vmatmul.bf16.gmra.mxu2 %v2883_v6 }
 0x3f2   : > { %3163 = vmatmul.bf16.gmra.mxu1 %v2884_v42  ;;  %3249 = vmatmul.bf16.gmra.mxu3 %v2884_v42 }
 0x409   : > { %v3091_v27 = vpop.f32.mrf.mxu0 }
 0x40a   : > { %v3092_v36 = vadd.f32 %v3091_v27, %v7462_v58 }
 0x40f   : > { %v3134_v45 = vpop.f32.mrf.mxu1  ;;  %v3177_v55 = vpop.f32.mrf.mxu2 }
 0x410   : > { %v3135_v25 = vadd.f32 %v3134_v45, %v3092_v36  ;;  %v3178_v33 = vadd.f32 %v3177_v55, %v7465_v37  ;;  %v6097_v55 = vld [vmem:[#allocation15 + $0x74] sm:$0xf] }
 0x411   : > { %v3093_v48 = vpop.f32.mrf.mxu0 }
 0x412   : > { %v3094_v34 = vadd.f32 %v3093_v48, %v7462_v58  ;;  %v3254_v6 = vadd.f32 %v3135_v25, %v7209_v2  ;;  %v5714_v48 = vld [vmem:[#allocation15 + $0x78] sm:$0xf0] }
 0x413   : > { %v5717_v36 = vor.u32 %v6097_v55, %v5714_v48 }
 0x414   : > { %v3280_v22 = vmax.f32 %v3254_v6, 0.0 }
 0x415   : > { %v3220_v23 = vpop.f32.mrf.mxu3  ;;  %4012 = vmatpush.bf16.msra.mxu2 %v5717_v36 }
 0x416   : > { %v3221_v56 = vadd.f32 %v3220_v23, %v3178_v33 }
 0x417   : > { %v3136_v5 = vpop.f32.mrf.mxu1  ;;  %v3179_v59 = vpop.f32.mrf.mxu2 }
 0x418   : > { %v3137_v13 = vadd.f32 %v3136_v5, %v3094_v34  ;;  %v3180_v54 = vadd.f32 %v3179_v59, %v7465_v37  ;;  %v3255_v28 = vadd.f32 %v3221_v56, %v7211_v4  ;;  %v6113_v5 = vld [vmem:[#allocation15 + $0xf4] sm:$0xf]  ;;  %v5778_v59 = vld [vmem:[#allocation15 + $0xf8] sm:$0xf0] }
 0x419   : > { %v3096_v31 = vpop.f32.mrf.mxu0  ;;  %v5781_v33 = vor.u32 %v6113_v5, %v5778_v59  ;;  %v6112_v59 = vld [vmem:[#allocation15 + $0xe4] sm:$0xf0] }
 0x41a   : > { %v3256_v60 = vadd.f32 %v3137_v13, %v7215_v19  ;;  %v3281_v46 = vmax.f32 %v3255_v28, 0.0  ;;  %v3097_v20 = vadd.f32 %v3096_v31, %v7462_v58  ;;  %v6098_v13 = vld [vmem:[#allocation15 + $0x74] sm:$0xf0] }
 0x41b   : > { %4055 = vmatpush.bf16.msra.mxu3 %v5781_v33 }
 0x41c   : > { %v3282_v15 = vmax.f32 %v3256_v60, 0.0 }
 0x41d   : > { %v3222_v41 = vpop.f32.mrf.mxu3 }
 0x41e   : > { %v3306_v44 = vpack.c.bf16 %v3282_v15, %v3280_v22  ;;  %v3223_v42 = vadd.f32 %v3222_v41, %v3180_v54 }
 0x41f   : > { %v3139_v3 = vpop.f32.mrf.mxu1  ;;  %v3182_v47 = vpop.f32.mrf.mxu2 }
 0x420   : > { %v3257_v2 = vadd.f32 %v3223_v42, %v7217_v21  ;;  %3525 = vmatmul.bf16.vlgmr.msra.gmra.mxu0 %v3306_v44  ;;  %3611 = vmatmul.bf16.vlgmr.msrb.gmra.mxu2 %v3306_v44  ;;  %v3140_v52 = vadd.f32 %v3139_v3, %v3097_v20  ;;  %v3183_v21 = vadd.f32 %v3182_v47, %v7465_v37  ;;  %v5776_v3 = vld [vmem:[#allocation15 + $0xf0] sm:$0xf]  ;;  %v6114_v47 = vld [vmem:[#allocation15 + $0xf4] sm:$0xf0]  ;;  %v5706_v20 = vld [vmem:[#allocation15 + $0x68] sm:$0xf0] }
 0x421   : > { %v3098_v16 = vpop.f32.mrf.mxu0 }
 0x422   : > { %v3283_v19 = vmax.f32 %v3257_v2, 0.0  ;;  %v3099_v57 = vadd.f32 %v3098_v16, %v7462_v58  ;;  %v3258_v8 = vadd.f32 %v3140_v52, %v7219_v32  ;;  %v5712_v32 = vld [vmem:[#allocation15 + $0x70] sm:$0xf]  ;;  %v5777_v2 = vor.u32 %v6114_v47, %v5776_v3  ;;  %v6109_v3 = vld [vmem:[#allocation15 + $0xd4] sm:$0xf] }
 0x423   : > { %v5713_v22 = vor.u32 %v6098_v13, %v5712_v32  ;;  %v5762_v47 = vld [vmem:[#allocation15 + $0xd8] sm:$0xf0] }
 0x424   : > { %v3307_v7 = vpack.c.bf16 %v3283_v19, %v3281_v46  ;;  %v3284_v25 = vmax.f32 %v3258_v8, 0.0  ;;  %v6095_v46 = vld [vmem:[#allocation15 + $0x64] sm:$0xf]  ;;  %3969 = vmatpush.bf16.msrb.mxu1 %v5777_v2 }
 0x425   : > { %v3225_v43 = vpop.f32.mrf.mxu3  ;;  %3926 = vmatpush.bf16.msrb.mxu0 %v5713_v22 }
 0x426   : > { %3568 = vmatmul.bf16.vlgmr.msra.gmra.mxu1 %v3307_v7  ;;  %3654 = vmatmul.bf16.vlgmr.msrb.gmra.mxu3 %v3307_v7  ;;  %v3226_v1 = vadd.f32 %v3225_v43, %v3183_v21  ;;  %v5709_v7 = vor.u32 %v6095_v46, %v5706_v20 }
 0x427   : > { %v3141_v4 = vpop.f32.mrf.mxu1  ;;  %v3184_v9 = vpop.f32.mrf.mxu2 }
 0x428   : > { %v3142_v30 = vadd.f32 %v3141_v4, %v3099_v57  ;;  %v3185_v34 = vadd.f32 %v3184_v9, %v7465_v37  ;;  %v3259_v31 = vadd.f32 %v3226_v1, %v7221_v35  ;;  %4013 = vmatpush.bf16.msra.mxu2 %v5709_v7  ;;  %v5770_v1 = vld [vmem:[#allocation15 + $0xe8] sm:$0xf0] }
 0x429   : > { %v3101_v27 = vpop.f32.mrf.mxu0 }
 0x42a   : > { %v3260_v45 = vadd.f32 %v3142_v30, %v7223_v39  ;;  %v3285_v28 = vmax.f32 %v3259_v31, 0.0  ;;  %v3102_v44 = vadd.f32 %v3101_v27, %v7462_v58  ;;  %v6111_v27 = vld [vmem:[#allocation15 + $0xe4] sm:$0xf] }
 0x42c   : > { %v3286_v23 = vmax.f32 %v3260_v45, 0.0  ;;  %v5773_v45 = vor.u32 %v6111_v27, %v5770_v1  ;;  %v5760_v27 = vld [vmem:[#allocation15 + $0xd0] sm:$0xf]  ;;  %v6110_v1 = vld [vmem:[#allocation15 + $0xd4] sm:$0xf0] }
 0x42d   : > { %v3227_v6 = vpop.f32.mrf.mxu3 }
 0x42e   : > { %v3228_v56 = vadd.f32 %v3227_v6, %v3185_v34  ;;  %v3308_v60 = vpack.c.bf16 %v3286_v23, %v3284_v25  ;;  %v5704_v25 = vld [vmem:[#allocation15 + $0x60] sm:$0xf]  ;;  %v6096_v23 = vld [vmem:[#allocation15 + $0x64] sm:$0xf0]  ;;  %4056 = vmatpush.bf16.msra.mxu3 %v5773_v45 }
 0x42f   : > { %v3144_v39 = vpop.f32.mrf.mxu1  ;;  %v3187_v15 = vpop.f32.mrf.mxu2  ;;  %v5705_v5 = vor.u32 %v6096_v23, %v5704_v25 }
 0x430   : > { %v3261_v54 = vadd.f32 %v3228_v56, %v7225_v40  ;;  %3530 = vmatmul.bf16.gmra.mxu0 %v3308_v60  ;;  %3616 = vmatmul.bf16.gmra.mxu2 %v3308_v60  ;;  %v3145_v35 = vadd.f32 %v3144_v39, %v3102_v44  ;;  %v3188_v4 = vadd.f32 %v3187_v15, %v7465_v37 }
 0x431   : > { %v3103_v41 = vpop.f32.mrf.mxu0  ;;  %3927 = vmatpush.bf16.msrb.mxu0 %v5705_v5 }
 0x432   : > { %v3287_v42 = vmax.f32 %v3261_v54, 0.0  ;;  %v3104_v40 = vadd.f32 %v3103_v41, %v7462_v58  ;;  %v3262_v57 = vadd.f32 %v3145_v35, %v7229_v51  ;;  %v5768_v51 = vld [vmem:[#allocation15 + $0xe0] sm:$0xf] }
 0x433   : > { %v5769_v13 = vor.u32 %v6112_v59, %v5768_v51 }
 0x434   : > { %v3309_v16 = vpack.c.bf16 %v3287_v42, %v3285_v28  ;;  %v3288_v55 = vmax.f32 %v3262_v57, 0.0  ;;  %v6093_v28 = vld [vmem:[#allocation15 + $0x54] sm:$0xf] }
 0x435   : > { %v3230_v19 = vpop.f32.mrf.mxu3  ;;  %3970 = vmatpush.bf16.msrb.mxu1 %v5769_v13  ;;  %v5690_v13 = vld [vmem:[#allocation15 + $0x48] sm:$0xf0] }
 0x436   : > { %3573 = vmatmul.bf16.gmra.mxu1 %v3309_v16  ;;  %3659 = vmatmul.bf16.gmra.mxu3 %v3309_v16  ;;  %v3231_v21 = vadd.f32 %v3230_v19, %v3188_v4 }
 0x437   : > { %v3146_v52 = vpop.f32.mrf.mxu1  ;;  %v3189_v43 = vpop.f32.mrf.mxu2 }
 0x438   : > { %v3147_v9 = vadd.f32 %v3146_v52, %v3104_v40  ;;  %v3190_v36 = vadd.f32 %v3189_v43, %v7465_v37  ;;  %v3263_v6 = vadd.f32 %v3231_v21, %v7231_v53  ;;  %v5698_v53 = vld [vmem:[#allocation15 + $0x58] sm:$0xf0] }
 0x439   : > { %v3106_v8 = vpop.f32.mrf.mxu0  ;;  %v5701_v42 = vor.u32 %v6093_v28, %v5698_v53 }
 0x43a   : > { %v3264_v30 = vadd.f32 %v3147_v9, %v7233_v62  ;;  %v3289_v22 = vmax.f32 %v3263_v6, 0.0  ;;  %v3107_v39 = vadd.f32 %v3106_v8, %v7462_v58  ;;  %v5696_v9 = vld [vmem:[#allocation15 + $0x50] sm:$0xf]  ;;  %v6094_v8 = vld [vmem:[#allocation15 + $0x54] sm:$0xf0] }
 0x43b   : > { %4014 = vmatpush.bf16.msra.mxu2 %v5701_v42 }
 0x43c   : > { %v3290_v48 = vmax.f32 %v3264_v30, 0.0  ;;  %v5697_v30 = vor.u32 %v6094_v8, %v5696_v9  ;;  %v6105_v9 = vld [vmem:[#allocation15 + $0xb4] sm:$0xf]  ;;  %v5746_v8 = vld [vmem:[#allocation15 + $0xb8] sm:$0xf0] }
 0x43d   : > { %v3232_v34 = vpop.f32.mrf.mxu3 }
 0x43e   : > { %v3233_v33 = vadd.f32 %v3232_v34, %v3190_v36  ;;  %v3310_v32 = vpack.c.bf16 %v3290_v48, %v3288_v55  ;;  %v5761_v48 = vor.u32 %v6110_v1, %v5760_v27  ;;  %3928 = vmatpush.bf16.msrb.mxu0 %v5697_v30  ;;  %v5749_v27 = vor.u32 %v6105_v9, %v5746_v8 }
 0x43f   : > { %v3149_v62 = vpop.f32.mrf.mxu1  ;;  %v3192_v31 = vpop.f32.mrf.mxu2 }
 0x440   : > { %v3265_v56 = vadd.f32 %v3233_v33, %v7235_v63  ;;  %3535 = vmatmul.bf16.gmra.mxu0 %v3310_v32  ;;  %3621 = vmatmul.bf16.gmra.mxu2 %v3310_v32  ;;  %v3150_v54 = vadd.f32 %v3149_v62, %v3107_v39  ;;  %v5765_v63 = vor.u32 %v6109_v3, %v5762_v47  ;;  %v6091_v32 = vld [vmem:[#allocation15 + $0x44] sm:$0xf]  ;;  %v5688_v47 = vld [vmem:[#allocation15 + $0x40] sm:$0xf] }
 0x441   : > { %v3108_v60 = vpop.f32.mrf.mxu0  ;;  %v3193_v20 = vadd.f32 %v3192_v31, %v7465_v37  ;;  %3971 = vmatpush.bf16.msrb.mxu1 %v5761_v48  ;;  %v6107_v62 = vld [vmem:[#allocation15 + $0xc4] sm:$0xf] }
 0x442   : > { %v3291_v15 = vmax.f32 %v3265_v56, 0.0  ;;  %v3109_v2 = vadd.f32 %v3108_v60, %v7462_v58  ;;  %v3266_v46 = vadd.f32 %v3150_v54, %v7241_v11  ;;  %4057 = vmatpush.bf16.msra.mxu3 %v5765_v63  ;;  %v5693_v56 = vor.u32 %v6091_v32, %v5690_v13  ;;  %v5754_v60 = vld [vmem:[#allocation15 + $0xc8] sm:$0xf0] }
 0x443   : > { %v5757_v54 = vor.u32 %v6107_v62, %v5754_v60  ;;  %v5736_v60 = vld [vmem:[#allocation15 + $0xa0] sm:$0xf] }
 0x444   : > { %v3311_v41 = vpack.c.bf16 %v3291_v15, %v3289_v22  ;;  %v3292_v43 = vmax.f32 %v3266_v46, 0.0  ;;  %4015 = vmatpush.bf16.msra.mxu2 %v5693_v56  ;;  %v6089_v46 = vld [vmem:[#allocation15 + $0x34] sm:$0xf]  ;;  %v6088_v56 = vld [vmem:[#allocation15 + $0x24] sm:$0xf0] }
 0x445   : > { %v3235_v44 = vpop.f32.mrf.mxu3 }
 0x446   : > { %3578 = vmatmul.bf16.gmra.mxu1 %v3311_v41  ;;  %3664 = vmatmul.bf16.gmra.mxu3 %v3311_v41  ;;  %v3236_v40 = vadd.f32 %v3235_v44, %v3193_v20 }
 0x447   : > { %v3151_v35 = vpop.f32.mrf.mxu1  ;;  %v3194_v16 = vpop.f32.mrf.mxu2  ;;  %4058 = vmatpush.bf16.msra.mxu3 %v5757_v54  ;;  %v6104_v54 = vld [vmem:[#allocation15 + $0xa4] sm:$0xf0] }
 0x448   : > { %v3152_v19 = vadd.f32 %v3151_v35, %v3109_v2  ;;  %v3195_v4 = vadd.f32 %v3194_v16, %v7465_v37  ;;  %v3267_v11 = vadd.f32 %v3236_v40, %v7243_v12  ;;  %v6092_v2 = vld [vmem:[#allocation15 + $0x44] sm:$0xf0]  ;;  %v5752_v16 = vld [vmem:[#allocation15 + $0xc0] sm:$0xf] }
 0x449   : > { %v3111_v7 = vpop.f32.mrf.mxu0  ;;  %v5689_v35 = vor.u32 %v6092_v2, %v5688_v47 }
 0x44a   : > { %v3268_v52 = vadd.f32 %v3152_v19, %v7247_v17  ;;  %v3293_v34 = vmax.f32 %v3267_v11, 0.0  ;;  %v3112_v5 = vadd.f32 %v3111_v7, %v7462_v58 }
 0x44b   : > { %3929 = vmatpush.bf16.msrb.mxu0 %v5689_v35  ;;  %4059 = vmatpush.bf16.msra.mxu3 %v5749_v27 }
 0x44c   : > { %v3294_v57 = vmax.f32 %v3268_v52, 0.0  ;;  %v5682_v52 = vld [vmem:[#allocation15 + $0x38] sm:$0xf0] }
 0x44d   : > { %v3237_v21 = vpop.f32.mrf.mxu3 }
 0x44e   : > { %v3238_v45 = vadd.f32 %v3237_v21, %v3195_v4  ;;  %v3312_v55 = vpack.c.bf16 %v3294_v57, %v3292_v43  ;;  %v5685_v57 = vor.u32 %v6089_v46, %v5682_v52  ;;  %v5680_v21 = vld [vmem:[#allocation15 + $0x30] sm:$0xf] }
 0x44f   : > { %v3154_v36 = vpop.f32.mrf.mxu1  ;;  %v3197_v25 = vpop.f32.mrf.mxu2 }
 0x450   : > { %v3269_v17 = vadd.f32 %v3238_v45, %v7249_v18  ;;  %3540 = vmatmul.bf16.gmra.mxu0 %v3312_v55  ;;  %3626 = vmatmul.bf16.gmra.mxu2 %v3312_v55  ;;  %v3155_v59 = vadd.f32 %v3154_v36, %v3112_v5  ;;  %v3198_v39 = vadd.f32 %v3197_v25, %v7465_v37 }
 0x451   : > { %v3113_v23 = vpop.f32.mrf.mxu0  ;;  %4016 = vmatpush.bf16.msra.mxu2 %v5685_v57 }
 0x452   : > { %v3295_v51 = vmax.f32 %v3269_v17, 0.0  ;;  %v3114_v12 = vadd.f32 %v3113_v23, %v7462_v58  ;;  %v3270_v22 = vadd.f32 %v3155_v59, %v7253_v38  ;;  %v6108_v38 = vld [vmem:[#allocation15 + $0xc4] sm:$0xf0]  ;;  %v5744_v17 = vld [vmem:[#allocation15 + $0xb0] sm:$0xf] }
 0x453   : > { %v5753_v40 = vor.u32 %v6108_v38, %v5752_v16  ;;  %v6106_v23 = vld [vmem:[#allocation15 + $0xb4] sm:$0xf0] }
 0x454   : > { %v3313_v6 = vpack.c.bf16 %v3295_v51, %v3293_v34  ;;  %v3296_v44 = vmax.f32 %v3270_v22, 0.0  ;;  %v6087_v34 = vld [vmem:[#allocation15 + $0x24] sm:$0xf]  ;;  %v5745_v59 = vor.u32 %v6106_v23, %v5744_v17  ;;  %v5658_v23 = vld [vmem:[#allocation15 + $0x8] sm:$0xf0] }
 0x455   : > { %v3240_v33 = vpop.f32.mrf.mxu3  ;;  %3972 = vmatpush.bf16.msrb.mxu1 %v5753_v40  ;;  %v6083_v17 = vld [vmem:[#allocation15 + $0x4] sm:$0xf] }
 0x456   : > { %3583 = vmatmul.bf16.gmra.mxu1 %v3313_v6  ;;  %3669 = vmatmul.bf16.gmra.mxu3 %v3313_v6  ;;  %v3241_v28 = vadd.f32 %v3240_v33, %v3198_v39  ;;  %v5674_v6 = vld [vmem:[#allocation15 + $0x28] sm:$0xf0]  ;;  %v6103_v33 = vld [vmem:[#allocation15 + $0xa4] sm:$0xf] }
 0x457   : > { %v3156_v31 = vpop.f32.mrf.mxu1  ;;  %v3199_v18 = vpop.f32.mrf.mxu2 }
 0x458   : > { %v3157_v15 = vadd.f32 %v3156_v31, %v3114_v12  ;;  %v3200_v3 = vadd.f32 %v3199_v18, %v7465_v37  ;;  %v3271_v20 = vadd.f32 %v3241_v28, %v7255_v26  ;;  %v6090_v26 = vld [vmem:[#allocation15 + $0x34] sm:$0xf0]  ;;  %v5738_v12 = vld [vmem:[#allocation15 + $0xa8] sm:$0xf0]  ;;  %v5677_v31 = vor.u32 %v6087_v34, %v5674_v6  ;;  %v5672_v18 = vld [vmem:[#allocation15 + $0x20] sm:$0xf] }
 0x459   : > { %v3116_v41 = vpop.f32.mrf.mxu0  ;;  %v5681_v55 = vor.u32 %v6090_v26, %v5680_v21  ;;  %3973 = vmatpush.bf16.msrb.mxu1 %v5745_v59  ;;  %v5741_v39 = vor.u32 %v6103_v33, %v5738_v12  ;;  %v5666_v28 = vld [vmem:[#allocation15 + $0x18] sm:$0xf0]  ;;  %v5661_v34 = vor.u32 %v6083_v17, %v5658_v23  ;;  %v5656_v59 = vld [vmem:[#allocation15] sm:$0xf]  ;;  %v6084_v6 = vld [vmem:[#allocation15 + $0x4] sm:$0xf0] }
 0x45a   : > { %v3272_v53 = vadd.f32 %v3157_v15, %v7257_v49  ;;  %v3297_v1 = vmax.f32 %v3271_v20, 0.0  ;;  %v3117_v11 = vadd.f32 %v3116_v41, %v7462_v58  ;;  %v5673_v15 = vor.u32 %v6088_v56, %v5672_v18  ;;  %v6085_v41 = vld [vmem:[#allocation15 + $0x14] sm:$0xf]  ;;  %4017 = vmatpush.bf16.msra.mxu2 %v5677_v31  ;;  %v5720_v12 = vld [vmem:[#allocation15 + $0x80] sm:$0xf] }
 0x45b   : > { %3930 = vmatpush.bf16.msrb.mxu0 %v5681_v55  ;;  %4060 = vmatpush.bf16.msra.mxu3 %v5741_v39  ;;  %v5669_v47 = vor.u32 %v6085_v41, %v5666_v28  ;;  %v6086_v55 = vld [vmem:[#allocation15 + $0x14] sm:$0xf0]  ;;  %v5657_v33 = vor.u32 %v6084_v6, %v5656_v59  ;;  %v791_v31 = vld [vmem:[%s7763_s14] sm:$0x3] }
 0x45c   : > { %v3298_v42 = vmax.f32 %v3272_v53, 0.0  ;;  %v7524_v41 = vperm.slane %v791_v31, 1 }
 0x45d   : > { %v3242_v63 = vpop.f32.mrf.mxu3 }
 0x45e   : > { %v3243_v19 = vadd.f32 %v3242_v63, %v3200_v3  ;;  %v3314_v7 = vpack.c.bf16 %v3298_v42, %v3296_v44  ;;  %v5737_v42 = vor.u32 %v6104_v54, %v5736_v60  ;;  %v5730_v3 = vld [vmem:[#allocation15 + $0x98] sm:$0xf0]  ;;  %4018 = vmatpush.bf16.msra.mxu2 %v5669_v47  ;;  %v7521_v60 = vperm.slane %v791_v31, 0 }
 0x45f   : > { %v3159_v43 = vpop.f32.mrf.mxu1  ;;  %v3202_v49 = vpop.f32.mrf.mxu2  ;;  %3931 = vmatpush.bf16.msrb.mxu0 %v5673_v15 }
 0x460   : > { %v3273_v4 = vadd.f32 %v3243_v19, %v7259_v50  ;;  %3545 = vmatmul.bf16.gmra.mxu0 %v3314_v7  ;;  %3631 = vmatmul.bf16.gmra.mxu2 %v3314_v7  ;;  %v3160_v48 = vadd.f32 %v3159_v43, %v3117_v11  ;;  %v3203_v13 = vadd.f32 %v3202_v49, %v7465_v37 }
 0x461   : > { %v3118_v30 = vpop.f32.mrf.mxu0  ;;  %3974 = vmatpush.bf16.msrb.mxu1 %v5737_v42 }
 0x462   : > { %v3299_v45 = vmax.f32 %v3273_v4, 0.0  ;;  %v3119_v25 = vadd.f32 %v3118_v30, %v7462_v58  ;;  %v3274_v32 = vadd.f32 %v3160_v48, %v7261_v61  ;;  %v6101_v61 = vld [vmem:[#allocation15 + $0x94] sm:$0xf]  ;;  %v5728_v48 = vld [vmem:[#allocation15 + $0x90] sm:$0xf]  ;;  %4019 = vmatpush.bf16.msra.mxu2 %v5661_v34 }
 0x463   : > { %v5733_v2 = vor.u32 %v6101_v61, %v5730_v3  ;;  %v6121_v34 = vld [vmem:[#allocation16 + $0x30] sm:$0xff] }
 0x464   : > { %v3315_v36 = vpack.c.bf16 %v3299_v45, %v3297_v1  ;;  %v3300_v63 = vmax.f32 %v3274_v32, 0.0  ;;  %v5664_v45 = vld [vmem:[#allocation15 + $0x10] sm:$0xf]  ;;  %v6100_v32 = vld [vmem:[#allocation15 + $0x84] sm:$0xf0] }
 0x465   : > { %v3245_v50 = vpop.f32.mrf.mxu3  ;;  %4061 = vmatpush.bf16.msra.mxu3 %v5733_v2 }
 0x466   : > { %3588 = vmatmul.bf16.gmra.mxu1 %v3315_v36  ;;  %3674 = vmatmul.bf16.gmra.mxu3 %v3315_v36  ;;  %v3246_v53 = vadd.f32 %v3245_v50, %v3203_v13  ;;  %v5665_v36 = vor.u32 %v6086_v55, %v5664_v45  ;;  %v6102_v50 = vld [vmem:[#allocation15 + $0x94] sm:$0xf0]  ;;  %v5721_v13 = vor.u32 %v6100_v32, %v5720_v12 }
 0x467   : > { %v3161_v5 = vpop.f32.mrf.mxu1  ;;  %v3204_v51 = vpop.f32.mrf.mxu2 }
 0x468   : > { %v3162_v62 = vadd.f32 %v3161_v5, %v3119_v25  ;;  %v3205_v16 = vadd.f32 %v3204_v51, %v7465_v37  ;;  %v3275_v46 = vadd.f32 %v3246_v53, %v7263_v0  ;;  %3932 = vmatpush.bf16.msrb.mxu0 %v5665_v36  ;;  %v5722_v5 = vld [vmem:[#allocation15 + $0x88] sm:$0xf0] }
 0x469   : > { %v3121_v22 = vpop.f32.mrf.mxu0 }
 0x46a   : > { %v3276_v44 = vadd.f32 %v3162_v62, %v7270_v10  ;;  %v3122_v40 = vadd.f32 %v3121_v22, %v7462_v58  ;;  %v3301_v49 = vmax.f32 %v3275_v46, 0.0 }
 0x46c   : > { %v3302_v35 = vmax.f32 %v3276_v44, 0.0  ;;  %3933 = vmatpush.bf16.msrb.mxu0 %v5657_v33 }
 0x46d   : > { %v3247_v38 = vpop.f32.mrf.mxu3 }
 0x46e   : > { %v3248_v20 = vadd.f32 %v3247_v38, %v3205_v16  ;;  %v3316_v19 = vpack.c.bf16 %v3302_v35, %v3300_v63 }
 0x46f   : > { %v3164_v10 = vpop.f32.mrf.mxu1  ;;  %v3207_v7 = vpop.f32.mrf.mxu2 }
 0x470   : > { %v3277_v52 = vadd.f32 %v3248_v20, %v7273_v14  ;;  %3550 = vmatmul.bf16.gmra.mxu0 %v3316_v19  ;;  %3636 = vmatmul.bf16.gmra.mxu2 %v3316_v19  ;;  %v3165_v4 = vadd.f32 %v3164_v10, %v3122_v40  ;;  %v3208_v21 = vadd.f32 %v3207_v7, %v7465_v37 }
 0x471   : > { %v3123_v43 = vpop.f32.mrf.mxu0 }
 0x472   : > { %v3303_v57 = vmax.f32 %v3277_v52, 0.0  ;;  %v3278_v0 = vadd.f32 %v3165_v4, %v7276_v24  ;;  %v5729_v24 = vor.u32 %v6102_v50, %v5728_v48 }
 0x474   : > { %v3317_v9 = vpack.c.bf16 %v3303_v57, %v3301_v49  ;;  %v3304_v58 = vmax.f32 %v3278_v0, 0.0  ;;  %3975 = vmatpush.bf16.msrb.mxu1 %v5729_v24 }
 0x475   : > { %v3250_v8 = vpop.f32.mrf.mxu3 }
 0x476   : > { %3593 = vmatmul.bf16.gmra.mxu1 %v3317_v9  ;;  %3679 = vmatmul.bf16.gmra.mxu3 %v3317_v9  ;;  %v3251_v26 = vadd.f32 %v3250_v8, %v3208_v21  ;;  %v3318_v11 = vpack.c.bf16 %v3304_v58, %v3304_v58  ;;  %v6122_v21 = vld [vmem:[#allocation16 + $0x38] sm:$0xff] }
 0x477   : > { %v3166_v30 = vpop.f32.mrf.mxu1  ;;  %v3209_v27 = vpop.f32.mrf.mxu2  ;;  %4269 = vmatpush.bf16.msra.mxu0 %v6122_v21 }
 0x478   : > { %v3279_v14 = vadd.f32 %v3251_v26, %v7278_v29  ;;  %v6099_v29 = vld [vmem:[#allocation15 + $0x84] sm:$0xf]  ;;  %3976 = vmatpush.bf16.msrb.mxu1 %v5721_v13  ;;  %v6130_v30 = vld [vmem:[#allocation16 + $0x78] sm:$0xff] }
 0x479   : > { %v5725_v51 = vor.u32 %v6099_v29, %v5722_v5  ;;  %v6129_v29 = vld [vmem:[#allocation16 + $0x70] sm:$0xff] }
 0x47a   : > { %v3305_v25 = vmax.f32 %v3279_v14, 0.0 }
 0x47b   : > { %4062 = vmatpush.bf16.msra.mxu3 %v5725_v51  ;;  %4270 = vmatpush.bf16.msra.mxu0 %v6121_v34 }
 0x47c   : > { %v3319_v37 = vpack.c.bf16 %v3305_v25, %v3305_v25  ;;  %4312 = vmatpush.bf16.msra.mxu1 %v6130_v30 }
 0x47d   : > { %v3252_v1 = vpop.f32.mrf.mxu3 }
 0x480   : > { %3555 = vmatmul.bf16.gmra.mxu0 %v3318_v11  ;;  %3641 = vmatmul.bf16.gmra.mxu2 %v3318_v11 }
 0x481   : > { %4313 = vmatpush.bf16.msra.mxu1 %v6129_v29 }
 0x486   : > { %3598 = vmatmul.bf16.gmra.mxu1 %v3319_v37  ;;  %3684 = vmatmul.bf16.gmra.mxu3 %v3319_v37 }
 0x49d   : > { %v3526_v62 = vpop.f32.mrf.mxu0 }
 0x49e   : > { %v3527_v39 = vadd.f32 %v3526_v62, %v7521_v60 }
 0x4a3   : > { %v3569_v18 = vpop.f32.mrf.mxu1  ;;  %v3612_v56 = vpop.f32.mrf.mxu2 }
 0x4a4   : > { %v3570_v54 = vadd.f32 %v3569_v18, %v3527_v39  ;;  %v3613_v47 = vadd.f32 %v3612_v56, %v7524_v41 }
 0x4a5   : > { %v3528_v22 = vpop.f32.mrf.mxu0 }
 0x4a6   : > { %v3529_v28 = vadd.f32 %v3528_v22, %v7521_v60  ;;  %v3689_v3 = vmax.f32 %v3570_v54, 0.0 }
 0x4a9   : > { %v3655_v15 = vpop.f32.mrf.mxu3 }
 0x4aa   : > { %v3656_v63 = vadd.f32 %v3655_v15, %v3613_v47  ;;  %v6128_v47 = vld [vmem:[#allocation16 + $0x68] sm:$0xff] }
 0x4ab   : > { %v3571_v53 = vpop.f32.mrf.mxu1  ;;  %v3614_v44 = vpop.f32.mrf.mxu2  ;;  %4314 = vmatpush.bf16.msra.mxu1 %v6128_v47 }
 0x4ac   : > { %v3572_v42 = vadd.f32 %v3571_v53, %v3529_v28  ;;  %v3615_v16 = vadd.f32 %v3614_v44, %v7524_v41  ;;  %v3690_v10 = vmax.f32 %v3656_v63, 0.0 }
 0x4ad   : > { %v3531_v61 = vpop.f32.mrf.mxu0 }
 0x4ae   : > { %v3691_v2 = vmax.f32 %v3572_v42, 0.0  ;;  %v3532_v43 = vadd.f32 %v3531_v61, %v7521_v60 }
 0x4b0   : > { %v3715_v35 = vpack.c.bf16 %v3691_v2, %v3689_v3  ;;  %v6120_v3 = vld [vmem:[#allocation16 + $0x28] sm:$0xff] }
 0x4b1   : > { %v3657_v38 = vpop.f32.mrf.mxu3  ;;  %4271 = vmatpush.bf16.msra.mxu0 %v6120_v3 }
 0x4b2   : > { %v3658_v46 = vadd.f32 %v3657_v38, %v3615_v16  ;;  %3934 = vmatmul.bf16.vlgmr.msrb.gmra.mxu0 %v3715_v35  ;;  %4020 = vmatmul.bf16.vlgmr.msra.gmra.mxu2 %v3715_v35 }
 0x4b3   : > { %v3574_v20 = vpop.f32.mrf.mxu1  ;;  %v3617_v19 = vpop.f32.mrf.mxu2 }
 0x4b4   : > { %v3692_v7 = vmax.f32 %v3658_v46, 0.0  ;;  %v3575_v57 = vadd.f32 %v3574_v20, %v3532_v43  ;;  %v3618_v58 = vadd.f32 %v3617_v19, %v7524_v41 }
 0x4b5   : > { %v3533_v40 = vpop.f32.mrf.mxu0 }
 0x4b6   : > { %v3716_v52 = vpack.c.bf16 %v3692_v7, %v3690_v10  ;;  %v3534_v4 = vadd.f32 %v3533_v40, %v7521_v60  ;;  %v3693_v26 = vmax.f32 %v3575_v57, 0.0 }
 0x4b8   : > { %3977 = vmatmul.bf16.vlgmr.msrb.gmra.mxu1 %v3716_v52  ;;  %4063 = vmatmul.bf16.vlgmr.msra.gmra.mxu3 %v3716_v52 }
 0x4b9   : > { %v3660_v49 = vpop.f32.mrf.mxu3 }
 0x4ba   : > { %v3661_v1 = vadd.f32 %v3660_v49, %v3618_v58  ;;  %v6119_v58 = vld [vmem:[#allocation16 + $0x20] sm:$0xff] }
 0x4bb   : > { %v3576_v9 = vpop.f32.mrf.mxu1  ;;  %v3619_v8 = vpop.f32.mrf.mxu2  ;;  %4272 = vmatpush.bf16.msra.mxu0 %v6119_v58 }
 0x4bc   : > { %v3577_v0 = vadd.f32 %v3576_v9, %v3534_v4  ;;  %v3620_v11 = vadd.f32 %v3619_v8, %v7524_v41  ;;  %v3694_v25 = vmax.f32 %v3661_v1, 0.0 }
 0x4bd   : > { %v3536_v27 = vpop.f32.mrf.mxu0 }
 0x4be   : > { %v3695_v14 = vmax.f32 %v3577_v0, 0.0  ;;  %v3537_v23 = vadd.f32 %v3536_v27, %v7521_v60 }
 0x4c0   : > { %v3717_v45 = vpack.c.bf16 %v3695_v14, %v3693_v26  ;;  %v6127_v14 = vld [vmem:[#allocation16 + $0x60] sm:$0xff] }
 0x4c1   : > { %v3662_v55 = vpop.f32.mrf.mxu3  ;;  %4315 = vmatpush.bf16.msra.mxu1 %v6127_v14  ;;  %v6123_v14 = vld [vmem:[#allocation16 + $0x40] sm:$0xff] }
 0x4c2   : > { %v3663_v48 = vadd.f32 %v3662_v55, %v3620_v11  ;;  %3939 = vmatmul.bf16.gmra.mxu0 %v3717_v45  ;;  %4025 = vmatmul.bf16.gmra.mxu2 %v3717_v45 }
 0x4c3   : > { %v3579_v36 = vpop.f32.mrf.mxu1  ;;  %v3622_v50 = vpop.f32.mrf.mxu2 }
 0x4c4   : > { %v3696_v24 = vmax.f32 %v3663_v48, 0.0  ;;  %v3580_v51 = vadd.f32 %v3579_v36, %v3537_v23  ;;  %v3623_v62 = vadd.f32 %v3622_v50, %v7524_v41 }
 0x4c5   : > { %v3538_v37 = vpop.f32.mrf.mxu0 }
 0x4c6   : > { %v3718_v17 = vpack.c.bf16 %v3696_v24, %v3694_v25  ;;  %v3539_v59 = vadd.f32 %v3538_v37, %v7521_v60  ;;  %v3697_v13 = vmax.f32 %v3580_v51, 0.0  ;;  %v6118_v51 = vld [vmem:[#allocation16 + $0x18] sm:$0xff] }
 0x4c7   : > { %4273 = vmatpush.bf16.msra.mxu0 %v6118_v51 }
 0x4c8   : > { %3982 = vmatmul.bf16.gmra.mxu1 %v3718_v17  ;;  %4068 = vmatmul.bf16.gmra.mxu3 %v3718_v17 }
 0x4c9   : > { %v3665_v5 = vpop.f32.mrf.mxu3 }
 0x4ca   : > { %v3666_v18 = vadd.f32 %v3665_v5, %v3623_v62 }
 0x4cb   : > { %v3581_v6 = vpop.f32.mrf.mxu1  ;;  %v3624_v33 = vpop.f32.mrf.mxu2 }
 0x4cc   : > { %v3582_v12 = vadd.f32 %v3581_v6, %v3539_v59  ;;  %v3625_v56 = vadd.f32 %v3624_v33, %v7524_v41  ;;  %v3698_v53 = vmax.f32 %v3666_v18, 0.0  ;;  %v6126_v59 = vld [vmem:[#allocation16 + $0x58] sm:$0xff]  ;;  %v6117_v18 = vld [vmem:[#allocation16 + $0x10] sm:$0xff] }
 0x4cd   : > { %v3541_v32 = vpop.f32.mrf.mxu0  ;;  %4316 = vmatpush.bf16.msra.mxu1 %v6126_v59  ;;  %4274 = vmatpush.bf16.msra.mxu0 %v6117_v18 }
 0x4ce   : > { %v3699_v31 = vmax.f32 %v3582_v12, 0.0  ;;  %v3542_v2 = vadd.f32 %v3541_v32, %v7521_v60 }
 0x4d0   : > { %v3719_v22 = vpack.c.bf16 %v3699_v31, %v3697_v13 }
 0x4d1   : > { %v3667_v39 = vpop.f32.mrf.mxu3 }
 0x4d2   : > { %v3668_v15 = vadd.f32 %v3667_v39, %v3625_v56  ;;  %3944 = vmatmul.bf16.gmra.mxu0 %v3719_v22  ;;  %4030 = vmatmul.bf16.gmra.mxu2 %v3719_v22  ;;  %v6125_v56 = vld [vmem:[#allocation16 + $0x50] sm:$0xff] }
 0x4d3   : > { %v3584_v54 = vpop.f32.mrf.mxu1  ;;  %v3627_v28 = vpop.f32.mrf.mxu2  ;;  %4317 = vmatpush.bf16.msra.mxu1 %v6125_v56 }
 0x4d4   : > { %v3700_v44 = vmax.f32 %v3668_v15, 0.0  ;;  %v3585_v35 = vadd.f32 %v3584_v54, %v3542_v2  ;;  %v3628_v7 = vadd.f32 %v3627_v28, %v7524_v41  ;;  %v6116_v54 = vld [vmem:[#allocation16 + $0x8] sm:$0xff] }
 0x4d5   : > { %v3543_v42 = vpop.f32.mrf.mxu0  ;;  %v6124_v28 = vld [vmem:[#allocation16 + $0x48] sm:$0xff]  ;;  %4275 = vmatpush.bf16.msra.mxu0 %v6116_v54 }
 0x4d6   : > { %v3720_v61 = vpack.c.bf16 %v3700_v44, %v3698_v53  ;;  %v3544_v16 = vadd.f32 %v3543_v42, %v7521_v60  ;;  %v3701_v10 = vmax.f32 %v3585_v35, 0.0 }
 0x4d7   : > { %4318 = vmatpush.bf16.msra.mxu1 %v6124_v28 }
 0x4d8   : > { %3987 = vmatmul.bf16.gmra.mxu1 %v3720_v61  ;;  %4073 = vmatmul.bf16.gmra.mxu3 %v3720_v61 }
 0x4d9   : > { %v3670_v63 = vpop.f32.mrf.mxu3 }
 0x4da   : > { %v3671_v52 = vadd.f32 %v3670_v63, %v3628_v7 }
 0x4db   : > { %v3586_v38 = vpop.f32.mrf.mxu1  ;;  %v3629_v46 = vpop.f32.mrf.mxu2  ;;  %4319 = vmatpush.bf16.msra.mxu1 %v6123_v14 }
 0x4dc   : > { %v3587_v20 = vadd.f32 %v3586_v38, %v3544_v16  ;;  %v3630_v43 = vadd.f32 %v3629_v46, %v7524_v41  ;;  %v3702_v0 = vmax.f32 %v3671_v52, 0.0 }
 0x4dd   : > { %v3546_v19 = vpop.f32.mrf.mxu0 }
 0x4de   : > { %v3703_v40 = vmax.f32 %v3587_v20, 0.0  ;;  %v3547_v26 = vadd.f32 %v3546_v19, %v7521_v60 }
 0x4e0   : > { %v3721_v49 = vpack.c.bf16 %v3703_v40, %v3701_v10 }
 0x4e1   : > { %v3672_v57 = vpop.f32.mrf.mxu3 }
 0x4e2   : > { %v3673_v4 = vadd.f32 %v3672_v57, %v3630_v43  ;;  %3949 = vmatmul.bf16.gmra.mxu0 %v3721_v49  ;;  %4035 = vmatmul.bf16.gmra.mxu2 %v3721_v49 }
 0x4e3   : > { %v3589_v9 = vpop.f32.mrf.mxu1  ;;  %v3632_v8 = vpop.f32.mrf.mxu2 }
 0x4e4   : > { %v3704_v21 = vmax.f32 %v3673_v4, 0.0  ;;  %v3590_v11 = vadd.f32 %v3589_v9, %v3547_v26  ;;  %v3633_v24 = vadd.f32 %v3632_v8, %v7524_v41 }
 0x4e5   : > { %v3548_v30 = vpop.f32.mrf.mxu0 }
 0x4e6   : > { %v3722_v27 = vpack.c.bf16 %v3704_v21, %v3702_v0  ;;  %v3549_v45 = vadd.f32 %v3548_v30, %v7521_v60  ;;  %v3705_v25 = vmax.f32 %v3590_v11, 0.0  ;;  %v792_v11 = vld [vmem:[%s7764_s2] sm:$0x3] }
 0x4e8   : > { %3992 = vmatmul.bf16.gmra.mxu1 %v3722_v27  ;;  %4078 = vmatmul.bf16.gmra.mxu3 %v3722_v27 }
 0x4e9   : > { %v3675_v1 = vpop.f32.mrf.mxu3 }
 0x4ea   : > { %v3676_v17 = vadd.f32 %v3675_v1, %v3633_v24  ;;  %v7557_v24 = vperm.slane %v792_v11, 1 }
 0x4eb   : > { %v3591_v55 = vpop.f32.mrf.mxu1  ;;  %v3634_v48 = vpop.f32.mrf.mxu2 }
 0x4ec   : > { %v3592_v36 = vadd.f32 %v3591_v55, %v3549_v45  ;;  %v3635_v23 = vadd.f32 %v3634_v48, %v7524_v41  ;;  %v3706_v12 = vmax.f32 %v3676_v17, 0.0  ;;  %v7554_v55 = vperm.slane %v792_v11, 0 }
 0x4ed   : > { %v3551_v50 = vpop.f32.mrf.mxu0 }
 0x4ee   : > { %v3707_v37 = vmax.f32 %v3592_v36, 0.0  ;;  %v3552_v31 = vadd.f32 %v3551_v50, %v7521_v60 }
 0x4f0   : > { %v3723_v34 = vpack.c.bf16 %v3707_v37, %v3705_v25 }
 0x4f1   : > { %v3677_v29 = vpop.f32.mrf.mxu3 }
 0x4f2   : > { %v3678_v5 = vadd.f32 %v3677_v29, %v3635_v23  ;;  %3954 = vmatmul.bf16.gmra.mxu0 %v3723_v34  ;;  %4040 = vmatmul.bf16.gmra.mxu2 %v3723_v34 }
 0x4f3   : > { %v3594_v6 = vpop.f32.mrf.mxu1  ;;  %v3637_v33 = vpop.f32.mrf.mxu2 }
 0x4f4   : > { %v3708_v32 = vmax.f32 %v3678_v5, 0.0  ;;  %v3595_v39 = vadd.f32 %v3594_v6, %v3552_v31  ;;  %v3638_v47 = vadd.f32 %v3637_v33, %v7524_v41 }
 0x4f5   : > { %v3553_v13 = vpop.f32.mrf.mxu0 }
 0x4f6   : > { %v3724_v62 = vpack.c.bf16 %v3708_v32, %v3706_v12  ;;  %v3554_v15 = vadd.f32 %v3553_v13, %v7521_v60  ;;  %v3709_v3 = vmax.f32 %v3595_v39, 0.0 }
 0x4f8   : > { %3997 = vmatmul.bf16.gmra.mxu1 %v3724_v62  ;;  %4083 = vmatmul.bf16.gmra.mxu3 %v3724_v62 }
 0x4f9   : > { %v3680_v22 = vpop.f32.mrf.mxu3 }
 0x4fa   : > { %v3681_v63 = vadd.f32 %v3680_v22, %v3638_v47 }
 0x4fb   : > { %v3596_v53 = vpop.f32.mrf.mxu1  ;;  %v3639_v44 = vpop.f32.mrf.mxu2 }
 0x4fc   : > { %v3597_v42 = vadd.f32 %v3596_v53, %v3554_v15  ;;  %v3640_v35 = vadd.f32 %v3639_v44, %v7524_v41  ;;  %v3710_v10 = vmax.f32 %v3681_v63, 0.0 }
 0x4fd   : > { %v3556_v61 = vpop.f32.mrf.mxu0 }
 0x4fe   : > { %v3711_v2 = vmax.f32 %v3597_v42, 0.0  ;;  %v3557_v52 = vadd.f32 %v3556_v61, %v7521_v60  ;;  %v6115_v60 = vld [vmem:[#allocation16] sm:$0xff] }
 0x4ff   : > { %4276 = vmatpush.bf16.msra.mxu0 %v6115_v60 }
 0x500   : > { %v3725_v16 = vpack.c.bf16 %v3711_v2, %v3709_v3 }
 0x501   : > { %v3682_v38 = vpop.f32.mrf.mxu3 }
 0x502   : > { %v3683_v46 = vadd.f32 %v3682_v38, %v3640_v35  ;;  %3959 = vmatmul.bf16.gmra.mxu0 %v3725_v16  ;;  %4045 = vmatmul.bf16.gmra.mxu2 %v3725_v16 }
 0x503   : > { %v3599_v20 = vpop.f32.mrf.mxu1  ;;  %v3642_v19 = vpop.f32.mrf.mxu2 }
 0x504   : > { %v3712_v7 = vmax.f32 %v3683_v46, 0.0  ;;  %v3600_v49 = vadd.f32 %v3599_v20, %v3557_v52  ;;  %v3643_v0 = vadd.f32 %v3642_v19, %v7524_v41 }
 0x505   : > { %v3558_v40 = vpop.f32.mrf.mxu0 }
 0x506   : > { %v3726_v43 = vpack.c.bf16 %v3712_v7, %v3710_v10  ;;  %v3713_v8 = vmax.f32 %v3600_v49, 0.0 }
 0x508   : > { %4002 = vmatmul.bf16.gmra.mxu1 %v3726_v43  ;;  %4088 = vmatmul.bf16.gmra.mxu3 %v3726_v43  ;;  %v3727_v30 = vpack.c.bf16 %v3713_v8, %v3713_v8 }
 0x509   : > { %v3685_v57 = vpop.f32.mrf.mxu3 }
 0x50a   : > { %v3686_v21 = vadd.f32 %v3685_v57, %v3643_v0 }
 0x50b   : > { %v3601_v4 = vpop.f32.mrf.mxu1  ;;  %v3644_v9 = vpop.f32.mrf.mxu2 }
 0x50c   : > { %v3714_v26 = vmax.f32 %v3686_v21, 0.0 }
 0x50e   : > { %v3728_v58 = vpack.c.bf16 %v3714_v26, %v3714_v26 }
 0x511   : > { %v3687_v27 = vpop.f32.mrf.mxu3 }
 0x512   : > { %3964 = vmatmul.bf16.gmra.mxu0 %v3727_v30  ;;  %4050 = vmatmul.bf16.gmra.mxu2 %v3727_v30 }
 0x518   : > { %4007 = vmatmul.bf16.gmra.mxu1 %v3728_v58  ;;  %4093 = vmatmul.bf16.gmra.mxu3 %v3728_v58 }
 0x52f   : > { %v3935_v1 = vpop.f32.mrf.mxu0 }
 0x530   : > { %v3936_v36 = vadd.f32 %v3935_v1, %v7554_v55 }
 0x535   : > { %v3978_v45 = vpop.f32.mrf.mxu1  ;;  %v4021_v41 = vpop.f32.mrf.mxu2 }
 0x536   : > { %v3979_v25 = vadd.f32 %v3978_v45, %v3936_v36  ;;  %v4022_v51 = vadd.f32 %v4021_v41, %v7557_v24 }
 0x537   : > { %v3937_v48 = vpop.f32.mrf.mxu0 }
 0x538   : > { %v3938_v37 = vadd.f32 %v3937_v48, %v7554_v55  ;;  %v4098_v5 = vmax.f32 %v3979_v25, 0.0 }
 0x53b   : > { %v4064_v50 = vpop.f32.mrf.mxu3 }
 0x53c   : > { %v4065_v6 = vadd.f32 %v4064_v50, %v4022_v51 }
 0x53d   : > { %v3980_v17 = vpop.f32.mrf.mxu1  ;;  %v4023_v23 = vpop.f32.mrf.mxu2 }
 0x53e   : > { %v3981_v34 = vadd.f32 %v3980_v17, %v3938_v37  ;;  %v4024_v12 = vadd.f32 %v4023_v23, %v7557_v24  ;;  %v4099_v18 = vmax.f32 %v4065_v6, 0.0 }
 0x53f   : > { %v3940_v29 = vpop.f32.mrf.mxu0 }
 0x540   : > { %v4100_v59 = vmax.f32 %v3981_v34, 0.0  ;;  %v3941_v15 = vadd.f32 %v3940_v29, %v7554_v55 }
 0x542   : > { %v4124_v33 = vpack.c.bf16 %v4100_v59, %v4098_v5 }
 0x543   : > { %v4066_v32 = vpop.f32.mrf.mxu3 }
 0x544   : > { %v4067_v13 = vadd.f32 %v4066_v32, %v4024_v12  ;;  %4277 = vmatmul.bf16.vlgmr.msra.gmra.mxu0 %v4124_v33 }
 0x545   : > { %v3983_v62 = vpop.f32.mrf.mxu1  ;;  %v4026_v31 = vpop.f32.mrf.mxu2 }
 0x546   : > { %v4101_v56 = vmax.f32 %v4067_v13, 0.0  ;;  %v3984_v28 = vadd.f32 %v3983_v62, %v3941_v15  ;;  %v4027_v2 = vadd.f32 %v4026_v31, %v7557_v24 }
 0x547   : > { %v3942_v22 = vpop.f32.mrf.mxu0 }
 0x548   : > { %v4125_v39 = vpack.c.bf16 %v4101_v56, %v4099_v18  ;;  %v3943_v53 = vadd.f32 %v3942_v22, %v7554_v55  ;;  %v4102_v47 = vmax.f32 %v3984_v28, 0.0 }
 0x54a   : > { %4320 = vmatmul.bf16.vlgmr.msra.gmra.mxu1 %v4125_v39 }
 0x54b   : > { %v4069_v54 = vpop.f32.mrf.mxu3 }
 0x54c   : > { %v4070_v35 = vadd.f32 %v4069_v54, %v4027_v2 }
 0x54d   : > { %v3985_v44 = vpop.f32.mrf.mxu1  ;;  %v4028_v42 = vpop.f32.mrf.mxu2 }
 0x54e   : > { %v3986_v61 = vadd.f32 %v3985_v44, %v3943_v53  ;;  %v4029_v16 = vadd.f32 %v4028_v42, %v7557_v24  ;;  %v4103_v7 = vmax.f32 %v4070_v35, 0.0 }
 0x54f   : > { %v3945_v3 = vpop.f32.mrf.mxu0 }
 0x550   : > { %v4104_v63 = vmax.f32 %v3986_v61, 0.0  ;;  %v3946_v49 = vadd.f32 %v3945_v3, %v7554_v55 }
 0x552   : > { %v4126_v38 = vpack.c.bf16 %v4104_v63, %v4102_v47 }
 0x553   : > { %v4071_v46 = vpop.f32.mrf.mxu3 }
 0x554   : > { %v4072_v20 = vadd.f32 %v4071_v46, %v4029_v16  ;;  %4282 = vmatmul.bf16.gmra.mxu0 %v4126_v38 }
 0x555   : > { %v3988_v19 = vpop.f32.mrf.mxu1  ;;  %v4031_v10 = vpop.f32.mrf.mxu2 }
 0x556   : > { %v4105_v40 = vmax.f32 %v4072_v20, 0.0  ;;  %v3989_v4 = vadd.f32 %v3988_v19, %v3946_v49  ;;  %v4032_v26 = vadd.f32 %v4031_v10, %v7557_v24 }
 0x557   : > { %v3947_v52 = vpop.f32.mrf.mxu0 }
 0x558   : > { %v4127_v43 = vpack.c.bf16 %v4105_v40, %v4103_v7  ;;  %v3948_v9 = vadd.f32 %v3947_v52, %v7554_v55  ;;  %v4106_v27 = vmax.f32 %v3989_v4, 0.0 }
 0x55a   : > { %4325 = vmatmul.bf16.gmra.mxu1 %v4127_v43 }
 0x55b   : > { %v4074_v57 = vpop.f32.mrf.mxu3 }
 0x55c   : > { %v4075_v60 = vadd.f32 %v4074_v57, %v4032_v26 }
 0x55d   : > { %v3990_v8 = vpop.f32.mrf.mxu1  ;;  %v4033_v0 = vpop.f32.mrf.mxu2 }
 0x55e   : > { %v3991_v21 = vadd.f32 %v3990_v8, %v3948_v9  ;;  %v4034_v1 = vadd.f32 %v4033_v0, %v7557_v24  ;;  %v4107_v36 = vmax.f32 %v4075_v60, 0.0 }
 0x55f   : > { %v3950_v30 = vpop.f32.mrf.mxu0 }
 0x560   : > { %v4108_v58 = vmax.f32 %v3991_v21, 0.0  ;;  %v3951_v17 = vadd.f32 %v3950_v30, %v7554_v55 }
 0x562   : > { %v4128_v14 = vpack.c.bf16 %v4108_v58, %v4106_v27 }
 0x563   : > { %v4076_v11 = vpop.f32.mrf.mxu3 }
 0x564   : > { %v4077_v45 = vadd.f32 %v4076_v11, %v4034_v1  ;;  %4287 = vmatmul.bf16.gmra.mxu0 %v4128_v14 }
 0x565   : > { %v3993_v41 = vpop.f32.mrf.mxu1  ;;  %v4036_v48 = vpop.f32.mrf.mxu2 }
 0x566   : > { %v4109_v50 = vmax.f32 %v4077_v45, 0.0  ;;  %v3994_v34 = vadd.f32 %v3993_v41, %v3951_v17  ;;  %v4037_v12 = vadd.f32 %v4036_v48, %v7557_v24 }
 0x567   : > { %v3952_v25 = vpop.f32.mrf.mxu0 }
 0x568   : > { %v4129_v37 = vpack.c.bf16 %v4109_v50, %v4107_v36  ;;  %v3953_v29 = vadd.f32 %v3952_v25, %v7554_v55  ;;  %v4110_v33 = vmax.f32 %v3994_v34, 0.0 }
 0x56a   : > { %4330 = vmatmul.bf16.gmra.mxu1 %v4129_v37 }
 0x56b   : > { %v4079_v23 = vpop.f32.mrf.mxu3 }
 0x56c   : > { %v4080_v13 = vadd.f32 %v4079_v23, %v4037_v12 }
 0x56d   : > { %v3995_v5 = vpop.f32.mrf.mxu1  ;;  %v4038_v51 = vpop.f32.mrf.mxu2 }
 0x56e   : > { %v3996_v59 = vadd.f32 %v3995_v5, %v3953_v29  ;;  %v4039_v31 = vadd.f32 %v4038_v51, %v7557_v24  ;;  %v4111_v15 = vmax.f32 %v4080_v13, 0.0 }
 0x56f   : > { %v3955_v6 = vpop.f32.mrf.mxu0 }
 0x570   : > { %v4112_v32 = vmax.f32 %v3996_v59, 0.0  ;;  %v3956_v44 = vadd.f32 %v3955_v6, %v7554_v55 }
 0x572   : > { %v4130_v62 = vpack.c.bf16 %v4112_v32, %v4110_v33 }
 0x573   : > { %v4081_v18 = vpop.f32.mrf.mxu3 }
 0x574   : > { %v4082_v56 = vadd.f32 %v4081_v18, %v4039_v31  ;;  %4292 = vmatmul.bf16.gmra.mxu0 %v4130_v62 }
 0x575   : > { %v3998_v22 = vpop.f32.mrf.mxu1  ;;  %v4041_v39 = vpop.f32.mrf.mxu2 }
 0x576   : > { %v4113_v54 = vmax.f32 %v4082_v56, 0.0  ;;  %v3999_v61 = vadd.f32 %v3998_v22, %v3956_v44  ;;  %v4042_v38 = vadd.f32 %v4041_v39, %v7557_v24 }
 0x577   : > { %v3957_v28 = vpop.f32.mrf.mxu0 }
 0x578   : > { %v4131_v53 = vpack.c.bf16 %v4113_v54, %v4111_v15  ;;  %v3958_v3 = vadd.f32 %v3957_v28, %v7554_v55  ;;  %v4114_v16 = vmax.f32 %v3999_v61, 0.0 }
 0x57a   : > { %4335 = vmatmul.bf16.gmra.mxu1 %v4131_v53 }
 0x57b   : > { %v4084_v42 = vpop.f32.mrf.mxu3 }
 0x57c   : > { %v4085_v20 = vadd.f32 %v4084_v42, %v4042_v38 }
 0x57d   : > { %v4000_v47 = vpop.f32.mrf.mxu1  ;;  %v4043_v2 = vpop.f32.mrf.mxu2 }
 0x57e   : > { %v4001_v63 = vadd.f32 %v4000_v47, %v3958_v3  ;;  %v4044_v10 = vadd.f32 %v4043_v2, %v7557_v24  ;;  %v4115_v49 = vmax.f32 %v4085_v20, 0.0 }
 0x57f   : > { %v3960_v35 = vpop.f32.mrf.mxu0 }
 0x580   : > { %v4116_v46 = vmax.f32 %v4001_v63, 0.0  ;;  %v3961_v8 = vadd.f32 %v3960_v35, %v7554_v55 }
 0x582   : > { %v4132_v19 = vpack.c.bf16 %v4116_v46, %v4114_v16 }
 0x583   : > { %v4086_v7 = vpop.f32.mrf.mxu3 }
 0x584   : > { %v4087_v40 = vadd.f32 %v4086_v7, %v4044_v10  ;;  %4297 = vmatmul.bf16.gmra.mxu0 %v4132_v19 }
 0x585   : > { %v4003_v52 = vpop.f32.mrf.mxu1  ;;  %v4046_v43 = vpop.f32.mrf.mxu2 }
 0x586   : > { %v4117_v57 = vmax.f32 %v4087_v40, 0.0  ;;  %v4004_v21 = vadd.f32 %v4003_v52, %v3961_v8  ;;  %v4047_v1 = vadd.f32 %v4046_v43, %v7557_v24 }
 0x587   : > { %v3962_v4 = vpop.f32.mrf.mxu0 }
 0x588   : > { %v4133_v9 = vpack.c.bf16 %v4117_v57, %v4115_v49  ;;  %v3963_v30 = vadd.f32 %v3962_v4, %v7554_v55  ;;  %v4118_v14 = vmax.f32 %v4004_v21, 0.0 }
 0x58a   : > { %4340 = vmatmul.bf16.gmra.mxu1 %v4133_v9 }
 0x58b   : > { %v4089_v0 = vpop.f32.mrf.mxu3 }
 0x58c   : > { %v4090_v45 = vadd.f32 %v4089_v0, %v4047_v1 }
 0x58d   : > { %v4005_v27 = vpop.f32.mrf.mxu1  ;;  %v4048_v26 = vpop.f32.mrf.mxu2 }
 0x58e   : > { %v4006_v58 = vadd.f32 %v4005_v27, %v3963_v30  ;;  %v4049_v48 = vadd.f32 %v4048_v26, %v7557_v24  ;;  %v4119_v17 = vmax.f32 %v4090_v45, 0.0 }
 0x58f   : > { %v3965_v60 = vpop.f32.mrf.mxu0 }
 0x590   : > { %v4120_v11 = vmax.f32 %v4006_v58, 0.0  ;;  %v3966_v29 = vadd.f32 %v3965_v60, %v7554_v55  ;;  %v6347_v55 = vld [vmem:[%s7765_s15] ss:$0 sm:$0xff] }
 0x592   : > { %v4134_v41 = vpack.c.bf16 %v4120_v11, %v4118_v14 }
 0x593   : > { %v4091_v36 = vpop.f32.mrf.mxu3 }
 0x594   : > { %v4092_v50 = vadd.f32 %v4091_v36, %v4049_v48  ;;  %4302 = vmatmul.bf16.gmra.mxu0 %v4134_v41 }
 0x595   : > { %v4008_v25 = vpop.f32.mrf.mxu1  ;;  %v4051_v37 = vpop.f32.mrf.mxu2 }
 0x596   : > { %v4121_v23 = vmax.f32 %v4092_v50, 0.0  ;;  %v4009_v51 = vadd.f32 %v4008_v25, %v3966_v29  ;;  %v4052_v32 = vadd.f32 %v4051_v37, %v7557_v24 }
 0x597   : > { %v3967_v34 = vpop.f32.mrf.mxu0 }
 0x598   : > { %v4135_v5 = vpack.c.bf16 %v4121_v23, %v4119_v17  ;;  %v4122_v12 = vmax.f32 %v4009_v51, 0.0 }
 0x59a   : > { %4345 = vmatmul.bf16.gmra.mxu1 %v4135_v5  ;;  %v4136_v62 = vpack.c.bf16 %v4122_v12, %v4122_v12 }
 0x59b   : > { %v4094_v59 = vpop.f32.mrf.mxu3 }
 0x59c   : > { %v4095_v13 = vadd.f32 %v4094_v59, %v4052_v32 }
 0x59d   : > { %v4010_v6 = vpop.f32.mrf.mxu1  ;;  %v4053_v33 = vpop.f32.mrf.mxu2 }
 0x59e   : > { %v4123_v18 = vmax.f32 %v4095_v13, 0.0 }
 0x5a0   : > { %v4137_v56 = vpack.c.bf16 %v4123_v18, %v4123_v18 }
 0x5a3   : > { %v4096_v31 = vpop.f32.mrf.mxu3 }
 0x5a4   : > { %4307 = vmatmul.bf16.gmra.mxu0 %v4136_v62 }
 0x5aa   : > { %4350 = vmatmul.bf16.gmra.mxu1 %v4137_v56 }
 0x5c1   : > { %v4278_v22 = vpop.f32.mrf.mxu0 }
 0x5c2   : > { %v4279_v39 = vadd.f32 %v6347_v55, %v4278_v22 }
 0x5c7   : > { %v4321_v15 = vpop.f32.mrf.mxu1 }
 0x5c8   : > { %v4322_v54 = vadd.f32 %v4321_v15, %v4279_v39 }
 0x5c9   : > { %v4280_v28 = vpop.f32.mrf.mxu0 }
 0x5ca   : > { %4355 = vst [vmem:[%s7588_s26] sm:$0xff] %v4322_v54  ;;  %v4281_v24 = vadd.f32 %v6347_v55, %v4280_v28 }
 0x5cf   : > { %v4323_v53 = vpop.f32.mrf.mxu1 }
 0x5d0   : > { %v4324_v44 = vadd.f32 %v4323_v53, %v4281_v24 }
 0x5d1   : > { %v4283_v42 = vpop.f32.mrf.mxu0 }
 0x5d2   : > { %4356 = vst [vmem:[%s7588_s26 + $0x8] sm:$0xff] %v4324_v44  ;;  %v4284_v61 = vadd.f32 %v6347_v55, %v4283_v42 }
 0x5d7   : > { %v4326_v3 = vpop.f32.mrf.mxu1 }
 0x5d8   : > { %v4327_v47 = vadd.f32 %v4326_v3, %v4284_v61 }
 0x5d9   : > { %v4285_v2 = vpop.f32.mrf.mxu0 }
 0x5da   : > { %4357 = vst [vmem:[%s7588_s26 + $0x10] sm:$0xff] %v4327_v47  ;;  %v4286_v63 = vadd.f32 %v6347_v55, %v4285_v2 }
 0x5df   : > { %v4328_v35 = vpop.f32.mrf.mxu1 }
 0x5e0   : > { %v4329_v16 = vadd.f32 %v4328_v35, %v4286_v63 }
 0x5e1   : > { %v4288_v38 = vpop.f32.mrf.mxu0 }
 0x5e2   : > { %4358 = vst [vmem:[%s7588_s26 + $0x18] sm:$0xff] %v4329_v16  ;;  %v4289_v46 = vadd.f32 %v6347_v55, %v4288_v38 }
 0x5e7   : > { %v4331_v20 = vpop.f32.mrf.mxu1 }
 0x5e8   : > { %v4332_v19 = vadd.f32 %v4331_v20, %v4289_v46 }
 0x5e9   : > { %v4290_v10 = vpop.f32.mrf.mxu0 }
 0x5ea   : > { %4359 = vst [vmem:[%s7588_s26 + $0x20] sm:$0xff] %v4332_v19  ;;  %v4291_v7 = vadd.f32 %v6347_v55, %v4290_v10 }
 0x5ef   : > { %v4333_v40 = vpop.f32.mrf.mxu1 }
 0x5f0   : > { %v4334_v52 = vadd.f32 %v4333_v40, %v4291_v7 }
 0x5f1   : > { %v4293_v43 = vpop.f32.mrf.mxu0 }
 0x5f2   : > { %4360 = vst [vmem:[%s7588_s26 + $0x28] sm:$0xff] %v4334_v52  ;;  %v4294_v49 = vadd.f32 %v6347_v55, %v4293_v43 }
 0x5f7   : > { %v4336_v57 = vpop.f32.mrf.mxu1 }
 0x5f8   : > { %v4337_v4 = vadd.f32 %v4336_v57, %v4294_v49 }
 0x5f9   : > { %v4295_v9 = vpop.f32.mrf.mxu0 }
 0x5fa   : > { %4361 = vst [vmem:[%s7588_s26 + $0x30] sm:$0xff] %v4337_v4  ;;  %v4296_v8 = vadd.f32 %v6347_v55, %v4295_v9 }
 0x5ff   : > { %v4338_v0 = vpop.f32.mrf.mxu1 }
 0x600   : > { %v4339_v21 = vadd.f32 %v4338_v0, %v4296_v8 }
 0x601   : > { %v4298_v30 = vpop.f32.mrf.mxu0 }
 0x602   : > { %4362 = vst [vmem:[%s7588_s26 + $0x38] sm:$0xff] %v4339_v21  ;;  %v4299_v27 = vadd.f32 %v6347_v55, %v4298_v30 }
 0x607   : > { %v4341_v26 = vpop.f32.mrf.mxu1 }
 0x608   : > { %v4342_v58 = vadd.f32 %v4341_v26, %v4299_v27 }
 0x609   : > { %v4300_v60 = vpop.f32.mrf.mxu0 }
 0x60a   : > { %4363 = vst [vmem:[%s7588_s26 + $0x40] sm:$0xff] %v4342_v58  ;;  %v4301_v14 = vadd.f32 %v6347_v55, %v4300_v60 }
 0x60f   : > { %v4343_v1 = vpop.f32.mrf.mxu1 }
 0x610   : > { %v4344_v11 = vadd.f32 %v4343_v1, %v4301_v14 }
 0x611   : > { %v4303_v45 = vpop.f32.mrf.mxu0 }
 0x612   : > { %4364 = vst [vmem:[%s7588_s26 + $0x48] sm:$0xff] %v4344_v11  ;;  %v4304_v41 = vadd.f32 %v6347_v55, %v4303_v45 }
 0x617   : > { %v4346_v48 = vpop.f32.mrf.mxu1 }
 0x618   : > { %v4347_v36 = vadd.f32 %v4346_v48, %v4304_v41 }
 0x619   : > { %v4305_v50 = vpop.f32.mrf.mxu0 }
 0x61a   : > { %4365 = vst [vmem:[%s7588_s26 + $0x50] sm:$0xff] %v4347_v36  ;;  %v4306_v25 = vadd.f32 %v6347_v55, %v4305_v50 }
 0x61f   : > { %v4348_v37 = vpop.f32.mrf.mxu1 }
 0x620   : > { %v4349_v17 = vadd.f32 %v4348_v37, %v4306_v25 }
 0x621   : > { %v4308_v23 = vpop.f32.mrf.mxu0 }
 0x622   : > { %4366 = vst [vmem:[%s7588_s26 + $0x58] sm:$0xff] %v4349_v17  ;;  %v4309_v34 = vadd.f32 %v6347_v55, %v4308_v23 }
 0x627   : > { %v4351_v29 = vpop.f32.mrf.mxu1 }
 0x628   : > { %v4352_v5 = vadd.f32 %v4351_v29, %v4309_v34 }
 0x629   : > { %v4310_v51 = vpop.f32.mrf.mxu0 }
 0x62a   : > { %4367 = vst [vmem:[%s7588_s26 + $0x60] sm:$0xff] %v4352_v5 }
 0x62b   : > { %4374 = sbr.rel (!%p6949_p10) target bundleno = 1644 (0x66c), region = 140 }
 0x62f   : > { %v4353_v59 = vpop.f32.mrf.mxu1 }
 0x630   : > { %s7781_s28 = smov (!%p4377_p1, %s4376_s28), 13 }
 0x631   : > { %s5846_s13 = sshll.u32 %s7781_s28, 3 }
 0x632   : > { %p5849_p3 = scmp.eq.s32.totalorder %s5846_s13, 0 }
 0x633   : > { %6348 = sdivrem.u32 (!%p5849_p3), %s7781_s28, 13 }
 0x634   : > { %4385 = sbr.rel (%p5849_p3) target bundleno = 1644 (0x66c), region = 144 }
 0x63c   : > { %s7616_s17 = spop.drf %6348 }
 0x63d   : > { %s6350_s22 = spop.drf %6348  ;;  %p5850_p10 = scmp.le.s32.totalorder %s7616_s17, 0 }
 0x63e   : > { %s7768_s1 = smov (!%p5850_p10), %s7610_s18  ;;  %s7769_s14 = smov (!%p5850_p10), %s7588_s26 }
 0x63f   : > { %4603 = sbr.rel (%p5850_p10) target bundleno = 1618 (0x652), region = 226  ;;  %s7625_s3 = smov (!%p5850_p10), 0  }
 0x640   : > { %s7627_s27 = smov (!%p5850_p10), 0  }
 0x644 LB: >> { %v4474_v6 = vld [vmem:[%s6757_s14] sm:$0xff]  ;;  %v4476_v33 = vld [vmem:[%s6757_s14 + $0x8] sm:$0xff]  ;;  %v4478_v12 = vld [vmem:[%s6757_s14 + $0x10] sm:$0xff]  ;;  %s4500_s2 = sadd.s32 1, %s6761_s3  ;;  %s4468_s27 = sadd.s32 1, %s6765_s27   ;;  %s6765_s27 = sphi %s7627_s27, %s4468_s27   ;;  %s6761_s3 = sphi %s7625_s3, %s7772_s3   ;;  %s6757_s14 = sphi %s7769_s14, %s7771_s14   ;;  %s6753_s1 = sphi %s7768_s1, %s7770_s1  }
 0x645   : >> { %4475 = vst [vmem:[%s6753_s1] sm:$0xff] %v4474_v6  ;;  %v4480_v32 = vld [vmem:[%s6757_s14 + $0x18] sm:$0xff]  ;;  %p4501_p4 = scmp.ge.s32.totalorder %s4500_s2, %s7616_s17  ;;  %v4482_v13 = vld [vmem:[%s6757_s14 + $0x20] sm:$0xff]  ;;  %v4484_v62 = vld [vmem:[%s6757_s14 + $0x28] sm:$0xff]  ;;  %p4467_p5 = scmp.ge.s32.totalorder %s4468_s27, %s7616_s17 }
 0x646   : >> { %4477 = vst [vmem:[%s6753_s1 + $0x8] sm:$0xff] %v4476_v33  ;;  %v4486_v31 = vld [vmem:[%s6757_s14 + $0x30] sm:$0xff]  ;;  %v4488_v18 = vld [vmem:[%s6757_s14 + $0x38] sm:$0xff]  ;;  %v4490_v56 = vld [vmem:[%s6757_s14 + $0x40] sm:$0xff] }
 0x647   : >> { %4479 = vst [vmem:[%s6753_s1 + $0x10] sm:$0xff] %v4478_v12  ;;  %s7783_s2 = smov (%p4501_p4, %s4500_s2), 0  ;;  %v4492_v22 = vld [vmem:[%s6757_s14 + $0x48] sm:$0xff]  ;;  %v4494_v55 = vld [vmem:[%s6757_s14 + $0x50] sm:$0xff]  ;;  %v4496_v39 = vld [vmem:[%s6757_s14 + $0x58] sm:$0xff] }
 0x648   : >> { %4481 = vst [vmem:[%s6753_s1 + $0x18] sm:$0xff] %v4480_v32  ;;  %s4503_s23 = smul.u32 104, %s7783_s2  ;;  %v4498_v15 = vld [vmem:[%s6757_s14 + $0x60] sm:$0xff]  ;;  %s7772_s3 = smov %s7783_s2 }
 0x649   : >> { %4483 = vst [vmem:[%s6753_s1 + $0x20] sm:$0xff] %v4482_v13 }
 0x64a   : >> { %4485 = vst [vmem:[%s6753_s1 + $0x28] sm:$0xff] %v4484_v62  ;;  %s4505_s25 = scalar_lea.vmem %s7588_s26, %s4503_s23 [#allocation18]   ;;  %s4506_s15 = scalar_lea.vmem %s7610_s18, %s4503_s23  }
 0x64b   : >> { %4487 = vst [vmem:[%s6753_s1 + $0x30] sm:$0xff] %v4486_v31  ;;  %s7771_s14 = smov %s4505_s25 }
 0x64c   : >> { %4489 = vst [vmem:[%s6753_s1 + $0x38] sm:$0xff] %v4488_v18 }
 0x64d   : >> { %4491 = vst [vmem:[%s6753_s1 + $0x40] sm:$0xff] %v4490_v56  ;;  %4470 = sbr.rel (!%p4467_p5) target bundleno = 1604 (0x644), region = 232 }
 0x64e   : >> { %4493 = vst [vmem:[%s6753_s1 + $0x48] sm:$0xff] %v4492_v22 }
 0x64f   : >> { %4495 = vst [vmem:[%s6753_s1 + $0x50] sm:$0xff] %v4494_v55 }
 0x650   : >> { %4497 = vst [vmem:[%s6753_s1 + $0x58] sm:$0xff] %v4496_v39 }
 0x651   : >> { %4499 = vst [vmem:[%s6753_s1 + $0x60] sm:$0xff] %v4498_v15  ;;  %s7770_s1 = smov %s4506_s15 }
 0x652 PF: > { %6351 = sdivrem.u32 %s7781_s28, 13 }
 0x653   : > { %s5851_s19 = smul.u32 104, %s7616_s17 }
 0x655   : > { %s7681_s24 = scalar_lea.vmem %s7588_s26, %s5851_s19 [#allocation18]   ;;  %s4513_s5 = scalar_lea.vmem %s7610_s18, %s5851_s19  }
 0x65b   : > { %s6352_s29 = spop.drf %6351 }
 0x65c   : > { %s6353_s0 = spop.drf %6351 }
 0x65d   : > { %p5853_p2 = scmp.le.s32.totalorder %s6353_s0, 0 }
 0x65e   : > { %s6767_s21 = smov (!%p5853_p2), %s4513_s5   ;;  %s6771_s13 = smov (!%p5853_p2), %s7681_s24  }
 0x65f   : > { %4617 = sbr.rel (%p5853_p2) target bundleno = 1644 (0x66c), region = 237  ;;  %s6775_s22 = smov (!%p5853_p2), 0  }
 0x660   : > { %s6779_s27 = smov (!%p5853_p2), 0  }
 0x664 LB: >> { %v4523_v54 = vld [vmem:[%s6773_s13] sm:$0xff]  ;;  %s4525_s26 = sadd.s32 1, %s6777_s22  ;;  %s4517_s27 = sadd.s32 1, %s6781_s27   ;;  %s6781_s27 = sphi %s6779_s27, %s4517_s27   ;;  %s6777_s22 = sphi %s6775_s22, %s6776_s22   ;;  %s6773_s13 = sphi %s6771_s13, %s4530_s13   ;;  %s6769_s21 = sphi %s6767_s21, %s4531_s21  }
 0x665   : >> { %4524 = vst [vmem:[%s6769_s21] sm:$0xff] %v4523_v54  ;;  %p4526_p11 = scmp.ge.s32.totalorder %s4525_s26, %s6353_s0  ;;  %p4516_p6 = scmp.ge.s32.totalorder %s4517_s27, %s6353_s0 }
 0x667   : >> { %s7785_s26 = smov (%p4526_p11, %s4525_s26), 0  ;;  %4519 = sbr.rel (!%p4516_p6) target bundleno = 1636 (0x664), region = 243 }
 0x668   : >> { %s5854_s28 = sshll.u32 %s7785_s26, 3  ;;  %s6776_s22 = smov %s7785_s26  }
 0x669   : >> { %s4530_s13 = scalar_lea.vmem %s7681_s24, %s5854_s28 [#allocation18]   ;;  %s4531_s21 = scalar_lea.vmem %s4513_s5, %s5854_s28  }
 0x66c PF: > { %s7773_s21 = sld [smem:[#allocation25_spill]]  ;;  %s7775_s0 = smov %s6741_s30 }
 0x66d   : > { %s7774_s18 = sld [smem:[#allocation26_spill]]  ;;  %s7776_s30 = smov %s6745_s20 }
 0x672   : > { %p34_p7 = scmp.ge.s32.totalorder %s7773_s21, 4  }
 0x673   : > { %s7777_s20 = smov %s7774_s18 }
 0x674   :  { %36 = sbr.rel (!%p34_p7) target bundleno = 21 (0x15), region = 254 }
 0x679   :  { %4547 = vsyncpa [#allocation3], 1 }
 0x67a   :  { %4549 = vsyncpa [#allocation3 + $0x1], 1 }
 0x67b   :  { %4550 = vsyncpa [#allocation5], 1 }
 0x67c   :  { %4551 = vsyncpa [#allocation8], 1 }
 0x67d   :  { %4552 = vsyncpa [#allocation11], 1 }
 0x67e   :  { %4553 = vsyncpa [#allocation14], 1 }
 0x67f   :  { %4554 = vsyncpa [#allocation17], 1 }

</bundles_post_ra>
